<compile_context>
chip_gen: v7x
topology: tpu7x:2x2x1
jax: 0.10.0
libtpu: 0.0.40
codegen_flags: <defaults>
</compile_context>

<pallas_src>
import functools

import jax
import jax.numpy as jnp
from jax import lax
from jax.experimental import pallas as pl
from jax.experimental.pallas import tpu as pltpu

EPS = 1e-5
_COL0 = 8  # sublane-aligned column at which padded interiors live in scratch


# ----------------------------- kernel helpers -----------------------------

def _conv3x3_taps(planes, w_ref, row0, col0, ho, wo, cin, cout):
    """Sum of 9 shifted-window matmuls (one per 3x3 tap).

    planes[t]  : (1, R, C, cin) f32 value holding the zero-padded input plane
                 for tap t (several taps may share the same plane).
    row0/col0  : static window origin of tap t inside planes[t].
    Returns an (ho*wo, cout) f32 accumulator.
    """
    m = ho * wo
    acc = jnp.zeros((m, cout), jnp.float32)
    for t in range(9):
        patch = planes[t][:, row0[t]:row0[t] + ho, col0[t]:col0[t] + wo, :]
        patch = patch.reshape(m, cin).astype(jnp.bfloat16)
        # TODO(synk): fold the 9 taps into a single K=9*Cin contraction once
        # minor-dim concatenation support is confirmed; per-tap dots keep the
        # MXU contraction depth shallow (K=Cin).
        acc = acc + jnp.dot(patch, w_ref[t], preferred_element_type=jnp.float32)
    return acc


# --------------------------- stride-1 block kernel ---------------------------

def _block_s1_body(x_ref, s1, b1, w1, s2, b2, w2, wsc, o_ref, yp, z2p):
    _, h, w, cin = x_ref.shape
    cout = o_ref.shape[-1]
    m = h * w

    # y = relu(bn1(x)) written into the zero-padded scratch (halo handled here,
    # interior stored at sublane-aligned column _COL0).
    y = jnp.maximum(x_ref[...] * s1[...] + b1[...], 0.0)
    yp[...] = jnp.zeros_like(yp)
    yp[:, 1:h + 1, _COL0:_COL0 + w, :] = y
    ypv = yp[...]

    row0 = [t // 3 for t in range(9)]
    col0 = [_COL0 - 1 + (t % 3) for t in range(9)]
    acc1 = _conv3x3_taps([ypv] * 9, w1, row0, col0, h, w, cin, cout)

    # relu(bn2(conv1)) into the second padded scratch, then the 3x3 conv2.
    a2 = jnp.maximum(acc1.reshape(1, h, w, cout) * s2[...] + b2[...], 0.0)
    z2p[...] = jnp.zeros_like(z2p)
    z2p[:, 1:h + 1, _COL0:_COL0 + w, :] = a2
    z2v = z2p[...]
    acc2 = _conv3x3_taps([z2v] * 9, w2, row0, col0, h, w, cout, cout)

    if wsc is None:                      # identity residual (cin == cout)
        o_ref[...] = acc2.reshape(1, h, w, cout) + x_ref[...]
    else:                                # 1x1 shortcut on y, fused add
        res = jnp.dot(y.reshape(m, cin).astype(jnp.bfloat16), wsc[...],
                      preferred_element_type=jnp.float32)
        o_ref[...] = (acc2 + res).reshape(1, h, w, cout)


def _block_s1_plain_kernel(x_ref, s1, b1, w1, s2, b2, w2, o_ref, yp, z2p):
    _block_s1_body(x_ref, s1, b1, w1, s2, b2, w2, None, o_ref, yp, z2p)


def _block_s1_shortcut_kernel(x_ref, s1, b1, w1, s2, b2, w2, wsc, o_ref, yp, z2p):
    _block_s1_body(x_ref, s1, b1, w1, s2, b2, w2, wsc, o_ref, yp, z2p)


# --------------------------- stride-2 block kernel ---------------------------

def _block_s2_kernel(q00, q01, q10, q11, s1, b1, w1, s2, b2, w2, wsc,
                     o_ref, p00, p01, p10, p11, z2p):
    # qab = x[:, a::2, b::2, :] (glue-side phase split of the block input).
    _, ho, wo, cin = q00.shape
    cout = o_ref.shape[-1]
    m = ho * wo

    def bn1_relu(q):
        return jnp.maximum(q[...] * s1[...] + b1[...], 0.0)

    # Phase planes of the zero-padded y = relu(bn1(x)):
    #   P[a][b][r, c] = y_pad[2r + a, 2c + b]  ==>  P[a][b] <- relu(bn1(Q[1-a][1-b]))
    # so the stride-2 conv becomes 9 unit-stride windows over these planes.
    y_p00 = bn1_relu(q11)
    y_p01 = bn1_relu(q10)
    y_p10 = bn1_relu(q01)
    y_p11 = bn1_relu(q00)   # == y at the strided positions (shortcut input)

    p00[...] = jnp.zeros_like(p00)
    p00[:, 1:ho + 1, _COL0:_COL0 + wo, :] = y_p00
    p01[...] = jnp.zeros_like(p01)
    p01[:, 1:ho + 1, _COL0:_COL0 + wo, :] = y_p01
    p10[...] = jnp.zeros_like(p10)
    p10[:, 0:ho, _COL0:_COL0 + wo, :] = y_p10
    p11[...] = jnp.zeros_like(p11)
    p11[:, 0:ho, _COL0:_COL0 + wo, :] = y_p11
    pv = ((p00[...], p01[...]), (p10[...], p11[...]))

    # conv1 at stride 2, computed directly: tap (dy, dx) is the window of
    # P[dy % 2][dx % 2] shifted by (dy // 2, dx // 2).
    planes, row0, col0 = [], [], []
    for t in range(9):
        dy, dx = divmod(t, 3)
        a, b_ = dy % 2, dx % 2
        planes.append(pv[a][b_])
        row0.append(dy // 2)
        # interior of b==0 planes starts at original column 1, of b==1 planes
        # at original column 0; both are stored at scratch column _COL0.
        col0.append((_COL0 - 1 if b_ == 0 else _COL0) + dx // 2)
    acc1 = _conv3x3_taps(planes, w1, row0, col0, ho, wo, cin, cout)

    # relu(bn2(.)) then the stride-1 3x3 conv2.
    a2 = jnp.maximum(acc1.reshape(1, ho, wo, cout) * s2[...] + b2[...], 0.0)
    z2p[...] = jnp.zeros_like(z2p)
    z2p[:, 1:ho + 1, _COL0:_COL0 + wo, :] = a2
    z2v = z2p[...]
    row0 = [t // 3 for t in range(9)]
    col0 = [_COL0 - 1 + (t % 3) for t in range(9)]
    acc2 = _conv3x3_taps([z2v] * 9, w2, row0, col0, ho, wo, cout, cout)

    # 1x1 stride-2 shortcut on y (matmul on the strided samples) + fused add.
    res = jnp.dot(y_p11.reshape(m, cin).astype(jnp.bfloat16), wsc[...],
                  preferred_element_type=jnp.float32)
    o_ref[...] = (acc2 + res).reshape(1, ho, wo, cout)


# ----------------------------- pallas_call glue -----------------------------

def _basic_block_nhwc(p, x):
    n, h, w, cin = x.shape
    cout = p["w2"].shape[-1]
    stride = p["stride"]
    has_sc = p["wsc"] is not None
    cparams = pltpu.CompilerParams(dimension_semantics=("parallel",))

    bn_in = pl.BlockSpec((1, 1, 1, cin), lambda i: (0, 0, 0, 0))
    bn_out = pl.BlockSpec((1, 1, 1, cout), lambda i: (0, 0, 0, 0))
    w1_spec = pl.BlockSpec((9, cin, cout), lambda i: (0, 0, 0))
    w2_spec = pl.BlockSpec((9, cout, cout), lambda i: (0, 0, 0))
    wsc_spec = pl.BlockSpec((cin, cout), lambda i: (0, 0))

    if stride == 1:
        in_specs = [pl.BlockSpec((1, h, w, cin), lambda i: (i, 0, 0, 0)),
                    bn_in, bn_in, w1_spec, bn_out, bn_out, w2_spec]
        args = [x, p["s1"], p["b1"], p["w1"], p["s2"], p["b2"], p["w2"]]
        if has_sc:
            in_specs.append(wsc_spec)
            args.append(p["wsc"])
        kernel = _block_s1_shortcut_kernel if has_sc else _block_s1_plain_kernel
        scratch = [pltpu.VMEM((1, h + 2, w + _COL0 + 1, cin), jnp.float32),
                   pltpu.VMEM((1, h + 2, w + _COL0 + 1, cout), jnp.float32)]
        return pl.pallas_call(
            kernel,
            grid=(n,),
            in_specs=in_specs,
            out_specs=pl.BlockSpec((1, h, w, cout), lambda i: (i, 0, 0, 0)),
            out_shape=jax.ShapeDtypeStruct((n, h, w, cout), jnp.float32),
            scratch_shapes=scratch,
            compiler_params=cparams,
        )(*args)

    # stride == 2: phase-split the block input in glue (cheap XLA slices) so
    # the strided conv is computed directly with unit-stride windows in VMEM.
    assert stride == 2 and h % 2 == 0 and w % 2 == 0 and has_sc
    ho, wo = h // 2, w // 2
    q = [x[:, a::2, b::2, :] for a in (0, 1) for b in (0, 1)]
    in_specs = ([pl.BlockSpec((1, ho, wo, cin), lambda i: (i, 0, 0, 0))
                 for _ in range(4)]
                + [bn_in, bn_in, w1_spec, bn_out, bn_out, w2_spec, wsc_spec])
    args = q + [p["s1"], p["b1"], p["w1"], p["s2"], p["b2"], p["w2"], p["wsc"]]
    scratch = ([pltpu.VMEM((1, ho + 1, wo + _COL0, cin), jnp.float32)
                for _ in range(4)]
               + [pltpu.VMEM((1, ho + 2, wo + _COL0 + 1, cout), jnp.float32)])
    return pl.pallas_call(
        _block_s2_kernel,
        grid=(n,),
        in_specs=in_specs,
        out_specs=pl.BlockSpec((1, ho, wo, cout), lambda i: (i, 0, 0, 0)),
        out_shape=jax.ShapeDtypeStruct((n, ho, wo, cout), jnp.float32),
        scratch_shapes=scratch,
        compiler_params=cparams,
    )(*args)


def basic_block_forward(params, x_nchw):
    """PyTorch-layout wrapper: NCHW in -> NCHW out."""
    x = jnp.transpose(x_nchw, (0, 2, 3, 1)).astype(jnp.float32)
    out = _basic_block_nhwc(params, x)
    return jnp.transpose(out, (0, 3, 1, 2))


# ----------------------------- parameters -----------------------------

def basic_block_init(key, in_channels, out_channels, stride):
    k1, k2, k3, k4 = jax.random.split(key, 4)

    def bn_params(kk, c):
        kg, kb, km, kv = jax.random.split(kk, 4)
        gamma = 1.0 + 0.1 * jax.random.normal(kg, (c,), jnp.float32)
        beta = 0.1 * jax.random.normal(kb, (c,), jnp.float32)
        mean = 0.1 * jax.random.normal(km, (c,), jnp.float32)
        var = 0.5 + jax.random.uniform(kv, (c,), jnp.float32)
        scale = gamma / jnp.sqrt(var + EPS)
        bias = beta - mean * scale
        return scale.reshape(1, 1, 1, c), bias.reshape(1, 1, 1, c)

    s1, b1 = bn_params(k1, in_channels)
    s2, b2 = bn_params(k2, out_channels)
    w1 = (jax.random.normal(k3, (3, 3, in_channels, out_channels), jnp.float32)
          * (2.0 / (9 * out_channels)) ** 0.5)
    w2 = (jax.random.normal(k4, (3, 3, out_channels, out_channels), jnp.float32)
          * (2.0 / (9 * out_channels)) ** 0.5)
    wsc = None
    if in_channels != out_channels:
        wsc = (jax.random.normal(jax.random.fold_in(key, 7),
                                 (in_channels, out_channels), jnp.float32)
               * (2.0 / out_channels) ** 0.5).astype(jnp.bfloat16)
    return {
        "stride": stride,
        "s1": s1, "b1": b1,
        "w1": w1.reshape(9, in_channels, out_channels).astype(jnp.bfloat16),
        "s2": s2, "b2": b2,
        "w2": w2.reshape(9, out_channels, out_channels).astype(jnp.bfloat16),
        "wsc": wsc,
    }


# ----------------------------- pure-JAX reference -----------------------------

def basic_block_reference(p, x_nchw):
    x = jnp.transpose(x_nchw, (0, 2, 3, 1)).astype(jnp.float32)
    cin = x.shape[-1]
    cout = p["w2"].shape[-1]
    s = p["stride"]
    w1 = p["w1"].astype(jnp.float32).reshape(3, 3, cin, cout)
    w2 = p["w2"].astype(jnp.float32).reshape(3, 3, cout, cout)
    hi = lax.Precision.HIGHEST
    dn = ("NHWC", "HWIO", "NHWC")

    y = jnp.maximum(x * p["s1"] + p["b1"], 0.0)
    z = lax.conv_general_dilated(y, w1, (s, s), ((1, 1), (1, 1)),
                                 dimension_numbers=dn, precision=hi)
    z = jnp.maximum(z * p["s2"] + p["b2"], 0.0)
    z = lax.conv_general_dilated(z, w2, (1, 1), ((1, 1), (1, 1)),
                                 dimension_numbers=dn, precision=hi)
    if p["wsc"] is not None:
        wsc = p["wsc"].astype(jnp.float32)
        out = z + jnp.einsum("nhwc,cd->nhwd", y[:, ::s, ::s, :], wsc,
                             precision=hi)
    else:
        out = x + z
    return jnp.transpose(out, (0, 3, 1, 2))


# ----------------------------- main -----------------------------

if __name__ == "__main__":
    key = jax.random.PRNGKey(0)
    kx, ka, kb, kc = jax.random.split(key, 4)
    n, cin, h, w = 2, 16, 16, 16
    x = jax.random.normal(kx, (n, cin, h, w), jnp.float32)   # NCHW, like PyTorch

    blocks = [
        basic_block_init(ka, 16, 16, stride=1),   # identity residual
        basic_block_init(kb, 16, 32, stride=2),   # downsampling 1x1 shortcut
        basic_block_init(kc, 16, 32, stride=1),   # channel-changing shortcut
    ]
    expected = [(n, 16, h, w), (n, 32, h // 2, w // 2), (n, 32, h, w)]

    for p, shp in zip(blocks, expected):
        fwd = jax.jit(functools.partial(basic_block_forward, p))
        out = fwd(x)
        jax.block_until_ready(out)
        assert out.shape == shp and out.dtype == jnp.float32, (out.shape, shp)
        ref = basic_block_reference(p, x)
        err = float(jnp.max(jnp.abs(out - ref)))
        scale = float(jnp.max(jnp.abs(ref)))
        assert err <= 3e-2 * scale + 3e-2, (err, scale)

    print("KERNEL_OK")
</pallas_src>

<mosaic_0001>
module attributes {stable_mosaic.version = 11 : i64} {
  func.func @_block_s1_plain_kernel(%arg0: i32, %arg1: memref<1x16x16x16xf32, #tpu.memory_space<vmem>>, %arg2: memref<1x1x1x16xf32, #tpu.memory_space<vmem>>, %arg3: memref<1x1x1x16xf32, #tpu.memory_space<vmem>>, %arg4: memref<9x16x16xbf16, #tpu.memory_space<vmem>>, %arg5: memref<1x1x1x16xf32, #tpu.memory_space<vmem>>, %arg6: memref<1x1x1x16xf32, #tpu.memory_space<vmem>>, %arg7: memref<9x16x16xbf16, #tpu.memory_space<vmem>>, %arg8: memref<1x16x16x16xf32, #tpu.memory_space<vmem>>, %arg9: memref<1x18x25x16xf32, #tpu.memory_space<vmem>>, %arg10: memref<1x18x25x16xf32, #tpu.memory_space<vmem>>) attributes {dimension_semantics = [#tpu.dimension_semantics<parallel>], iteration_bounds = array<i64: 2>, scalar_prefetch = 0 : i64, scratch_operands = 2 : i64, tpu.core_type = #tpu.core_type<tc>, window_params = [{transform_indices = @transform_0, window_bounds = array<i64: 1, 16, 16, 16>}, {pipeline_mode = #tpu.pipeline_mode<synchronous>, transform_indices = @transform_1, window_bounds = array<i64: 1, 1, 1, 16>}, {pipeline_mode = #tpu.pipeline_mode<synchronous>, transform_indices = @transform_2, window_bounds = array<i64: 1, 1, 1, 16>}, {pipeline_mode = #tpu.pipeline_mode<synchronous>, transform_indices = @transform_3, window_bounds = array<i64: 9, 16, 16>}, {pipeline_mode = #tpu.pipeline_mode<synchronous>, transform_indices = @transform_4, window_bounds = array<i64: 1, 1, 1, 16>}, {pipeline_mode = #tpu.pipeline_mode<synchronous>, transform_indices = @transform_5, window_bounds = array<i64: 1, 1, 1, 16>}, {pipeline_mode = #tpu.pipeline_mode<synchronous>, transform_indices = @transform_6, window_bounds = array<i64: 9, 16, 16>}, {transform_indices = @transform_7, window_bounds = array<i64: 1, 16, 16, 16>}]} {
    %c0 = arith.constant 0 : index
    %c0_0 = arith.constant 0 : index
    %c0_1 = arith.constant 0 : index
    %c0_2 = arith.constant 0 : index
    %0 = vector.load %arg1[%c0, %c0_0, %c0_1, %c0_2] : memref<1x16x16x16xf32, #tpu.memory_space<vmem>>, vector<1x16x16x16xf32>
    %c0_3 = arith.constant 0 : index
    %c0_4 = arith.constant 0 : index
    %c0_5 = arith.constant 0 : index
    %c0_6 = arith.constant 0 : index
    %1 = vector.load %arg2[%c0_3, %c0_4, %c0_5, %c0_6] : memref<1x1x1x16xf32, #tpu.memory_space<vmem>>, vector<1x1x1x16xf32>
    %2 = vector.broadcast %1 : vector<1x1x1x16xf32> to vector<1x16x16x16xf32>
    %3 = arith.mulf %0, %2 : vector<1x16x16x16xf32>
    %c0_7 = arith.constant 0 : index
    %c0_8 = arith.constant 0 : index
    %c0_9 = arith.constant 0 : index
    %c0_10 = arith.constant 0 : index
    %4 = vector.load %arg3[%c0_7, %c0_8, %c0_9, %c0_10] : memref<1x1x1x16xf32, #tpu.memory_space<vmem>>, vector<1x1x1x16xf32>
    %5 = vector.broadcast %4 : vector<1x1x1x16xf32> to vector<1x16x16x16xf32>
    %6 = arith.addf %3, %5 : vector<1x16x16x16xf32>
    %cst = arith.constant 0.000000e+00 : f32
    %7 = vector.broadcast %cst : f32 to vector<1x16x16x16xf32>
    %8 = arith.maximumf %6, %7 : vector<1x16x16x16xf32>
    %cst_11 = arith.constant 0.000000e+00 : f32
    %9 = vector.broadcast %cst_11 : f32 to vector<1x18x25x16xf32>
    %c0_12 = arith.constant 0 : index
    %c0_13 = arith.constant 0 : index
    %c0_14 = arith.constant 0 : index
    %c0_15 = arith.constant 0 : index
    %10 = vector.load %arg9[%c0_12, %c0_13, %c0_14, %c0_15] : memref<1x18x25x16xf32, #tpu.memory_space<vmem>>, vector<1x18x25x16xf32>
    tpu.vector_store %arg9[%c0_12, %c0_13, %c0_14, %c0_15], %9 {strides = array<i32>} : memref<1x18x25x16xf32, #tpu.memory_space<vmem>>, vector<1x18x25x16xf32>,
    %c0_16 = arith.constant 0 : index
    %c1 = arith.constant 1 : index
    %c8 = arith.constant 8 : index
    %c0_17 = arith.constant 0 : index
    %11 = vector.load %arg9[%c0_16, %c1, %c8, %c0_17] : memref<1x18x25x16xf32, #tpu.memory_space<vmem>>, vector<1x16x16x16xf32>
    tpu.vector_store %arg9[%c0_16, %c1, %c8, %c0_17], %8 {strides = array<i32>} : memref<1x18x25x16xf32, #tpu.memory_space<vmem>>, vector<1x16x16x16xf32>,
    %c0_18 = arith.constant 0 : index
    %c0_19 = arith.constant 0 : index
    %c0_20 = arith.constant 0 : index
    %c0_21 = arith.constant 0 : index
    %12 = vector.load %arg9[%c0_18, %c0_19, %c0_20, %c0_21] : memref<1x18x25x16xf32, #tpu.memory_space<vmem>>, vector<1x18x25x16xf32>
    %cst_22 = arith.constant 0.000000e+00 : f32
    %13 = vector.broadcast %cst_22 : f32 to vector<256x16xf32>
    %14 = vector.extract_strided_slice %12 {offsets = [0, 0, 7, 0], sizes = [1, 16, 16, 16], strides = [1, 1, 1, 1]} : vector<1x18x25x16xf32> to vector<1x16x16x16xf32>
    %15 = vector.shape_cast %14 : vector<1x16x16x16xf32> to vector<256x16xf32>
    %16 = arith.truncf %15 : vector<256x16xf32> to vector<256x16xbf16>
    %c0_23 = arith.constant 0 : index
    %c0_24 = arith.constant 0 : index
    %c0_25 = arith.constant 0 : index
    %17 = vector.load %arg4[%c0_23, %c0_24, %c0_25] : memref<9x16x16xbf16, #tpu.memory_space<vmem>>, vector<1x16x16xbf16>
    %18 = vector.shape_cast %17 : vector<1x16x16xbf16> to vector<16x16xbf16>
    %cst_26 = arith.constant dense<0.000000e+00> : vector<256x16xf32>
    %19 = tpu.matmul %16, %18, %cst_26 {dimension_numbers = #tpu.dot_dimension_numbers<[1], [0], [0], [1], [0, 0, 1, 1], [], []>} : vector<256x16xbf16>, vector<16x16xbf16>, vector<256x16xf32> -> vector<256x16xf32>
    %20 = arith.addf %13, %19 : vector<256x16xf32>
    %21 = vector.extract_strided_slice %12 {offsets = [0, 0, 8, 0], sizes = [1, 16, 16, 16], strides = [1, 1, 1, 1]} : vector<1x18x25x16xf32> to vector<1x16x16x16xf32>
    %22 = vector.shape_cast %21 : vector<1x16x16x16xf32> to vector<256x16xf32>
    %23 = arith.truncf %22 : vector<256x16xf32> to vector<256x16xbf16>
    %c1_27 = arith.constant 1 : index
    %c0_28 = arith.constant 0 : index
    %c0_29 = arith.constant 0 : index
    %24 = vector.load %arg4[%c1_27, %c0_28, %c0_29] : memref<9x16x16xbf16, #tpu.memory_space<vmem>>, vector<1x16x16xbf16>
    %25 = vector.shape_cast %24 : vector<1x16x16xbf16> to vector<16x16xbf16>
    %cst_30 = arith.constant dense<0.000000e+00> : vector<256x16xf32>
    %26 = tpu.matmul %23, %25, %cst_30 {dimension_numbers = #tpu.dot_dimension_numbers<[1], [0], [0], [1], [0, 0, 1, 1], [], []>} : vector<256x16xbf16>, vector<16x16xbf16>, vector<256x16xf32> -> vector<256x16xf32>
    %27 = arith.addf %20, %26 : vector<256x16xf32>
    %28 = vector.extract_strided_slice %12 {offsets = [0, 0, 9, 0], sizes = [1, 16, 16, 16], strides = [1, 1, 1, 1]} : vector<1x18x25x16xf32> to vector<1x16x16x16xf32>
    %29 = vector.shape_cast %28 : vector<1x16x16x16xf32> to vector<256x16xf32>
    %30 = arith.truncf %29 : vector<256x16xf32> to vector<256x16xbf16>
    %c2 = arith.constant 2 : index
    %c0_31 = arith.constant 0 : index
    %c0_32 = arith.constant 0 : index
    %31 = vector.load %arg4[%c2, %c0_31, %c0_32] : memref<9x16x16xbf16, #tpu.memory_space<vmem>>, vector<1x16x16xbf16>
    %32 = vector.shape_cast %31 : vector<1x16x16xbf16> to vector<16x16xbf16>
    %cst_33 = arith.constant dense<0.000000e+00> : vector<256x16xf32>
    %33 = tpu.matmul %30, %32, %cst_33 {dimension_numbers = #tpu.dot_dimension_numbers<[1], [0], [0], [1], [0, 0, 1, 1], [], []>} : vector<256x16xbf16>, vector<16x16xbf16>, vector<256x16xf32> -> vector<256x16xf32>
    %34 = arith.addf %27, %33 : vector<256x16xf32>
    %35 = vector.extract_strided_slice %12 {offsets = [0, 1, 7, 0], sizes = [1, 16, 16, 16], strides = [1, 1, 1, 1]} : vector<1x18x25x16xf32> to vector<1x16x16x16xf32>
    %36 = vector.shape_cast %35 : vector<1x16x16x16xf32> to vector<256x16xf32>
    %37 = arith.truncf %36 : vector<256x16xf32> to vector<256x16xbf16>
    %c3 = arith.constant 3 : index
    %c0_34 = arith.constant 0 : index
    %c0_35 = arith.constant 0 : index
    %38 = vector.load %arg4[%c3, %c0_34, %c0_35] : memref<9x16x16xbf16, #tpu.memory_space<vmem>>, vector<1x16x16xbf16>
    %39 = vector.shape_cast %38 : vector<1x16x16xbf16> to vector<16x16xbf16>
    %cst_36 = arith.constant dense<0.000000e+00> : vector<256x16xf32>
    %40 = tpu.matmul %37, %39, %cst_36 {dimension_numbers = #tpu.dot_dimension_numbers<[1], [0], [0], [1], [0, 0, 1, 1], [], []>} : vector<256x16xbf16>, vector<16x16xbf16>, vector<256x16xf32> -> vector<256x16xf32>
    %41 = arith.addf %34, %40 : vector<256x16xf32>
    %42 = vector.extract_strided_slice %12 {offsets = [0, 1, 8, 0], sizes = [1, 16, 16, 16], strides = [1, 1, 1, 1]} : vector<1x18x25x16xf32> to vector<1x16x16x16xf32>
    %43 = vector.shape_cast %42 : vector<1x16x16x16xf32> to vector<256x16xf32>
    %44 = arith.truncf %43 : vector<256x16xf32> to vector<256x16xbf16>
    %c4 = arith.constant 4 : index
    %c0_37 = arith.constant 0 : index
    %c0_38 = arith.constant 0 : index
    %45 = vector.load %arg4[%c4, %c0_37, %c0_38] : memref<9x16x16xbf16, #tpu.memory_space<vmem>>, vector<1x16x16xbf16>
    %46 = vector.shape_cast %45 : vector<1x16x16xbf16> to vector<16x16xbf16>
    %cst_39 = arith.constant dense<0.000000e+00> : vector<256x16xf32>
    %47 = tpu.matmul %44, %46, %cst_39 {dimension_numbers = #tpu.dot_dimension_numbers<[1], [0], [0], [1], [0, 0, 1, 1], [], []>} : vector<256x16xbf16>, vector<16x16xbf16>, vector<256x16xf32> -> vector<256x16xf32>
    %48 = arith.addf %41, %47 : vector<256x16xf32>
    %49 = vector.extract_strided_slice %12 {offsets = [0, 1, 9, 0], sizes = [1, 16, 16, 16], strides = [1, 1, 1, 1]} : vector<1x18x25x16xf32> to vector<1x16x16x16xf32>
    %50 = vector.shape_cast %49 : vector<1x16x16x16xf32> to vector<256x16xf32>
    %51 = arith.truncf %50 : vector<256x16xf32> to vector<256x16xbf16>
    %c5 = arith.constant 5 : index
    %c0_40 = arith.constant 0 : index
    %c0_41 = arith.constant 0 : index
    %52 = vector.load %arg4[%c5, %c0_40, %c0_41] : memref<9x16x16xbf16, #tpu.memory_space<vmem>>, vector<1x16x16xbf16>
    %53 = vector.shape_cast %52 : vector<1x16x16xbf16> to vector<16x16xbf16>
    %cst_42 = arith.constant dense<0.000000e+00> : vector<256x16xf32>
    %54 = tpu.matmul %51, %53, %cst_42 {dimension_numbers = #tpu.dot_dimension_numbers<[1], [0], [0], [1], [0, 0, 1, 1], [], []>} : vector<256x16xbf16>, vector<16x16xbf16>, vector<256x16xf32> -> vector<256x16xf32>
    %55 = arith.addf %48, %54 : vector<256x16xf32>
    %56 = vector.extract_strided_slice %12 {offsets = [0, 2, 7, 0], sizes = [1, 16, 16, 16], strides = [1, 1, 1, 1]} : vector<1x18x25x16xf32> to vector<1x16x16x16xf32>
    %57 = vector.shape_cast %56 : vector<1x16x16x16xf32> to vector<256x16xf32>
    %58 = arith.truncf %57 : vector<256x16xf32> to vector<256x16xbf16>
    %c6 = arith.constant 6 : index
    %c0_43 = arith.constant 0 : index
    %c0_44 = arith.constant 0 : index
    %59 = vector.load %arg4[%c6, %c0_43, %c0_44] : memref<9x16x16xbf16, #tpu.memory_space<vmem>>, vector<1x16x16xbf16>
    %60 = vector.shape_cast %59 : vector<1x16x16xbf16> to vector<16x16xbf16>
    %cst_45 = arith.constant dense<0.000000e+00> : vector<256x16xf32>
    %61 = tpu.matmul %58, %60, %cst_45 {dimension_numbers = #tpu.dot_dimension_numbers<[1], [0], [0], [1], [0, 0, 1, 1], [], []>} : vector<256x16xbf16>, vector<16x16xbf16>, vector<256x16xf32> -> vector<256x16xf32>
    %62 = arith.addf %55, %61 : vector<256x16xf32>
    %63 = vector.extract_strided_slice %12 {offsets = [0, 2, 8, 0], sizes = [1, 16, 16, 16], strides = [1, 1, 1, 1]} : vector<1x18x25x16xf32> to vector<1x16x16x16xf32>
    %64 = vector.shape_cast %63 : vector<1x16x16x16xf32> to vector<256x16xf32>
    %65 = arith.truncf %64 : vector<256x16xf32> to vector<256x16xbf16>
    %c7 = arith.constant 7 : index
    %c0_46 = arith.constant 0 : index
    %c0_47 = arith.constant 0 : index
    %66 = vector.load %arg4[%c7, %c0_46, %c0_47] : memref<9x16x16xbf16, #tpu.memory_space<vmem>>, vector<1x16x16xbf16>
    %67 = vector.shape_cast %66 : vector<1x16x16xbf16> to vector<16x16xbf16>
    %cst_48 = arith.constant dense<0.000000e+00> : vector<256x16xf32>
    %68 = tpu.matmul %65, %67, %cst_48 {dimension_numbers = #tpu.dot_dimension_numbers<[1], [0], [0], [1], [0, 0, 1, 1], [], []>} : vector<256x16xbf16>, vector<16x16xbf16>, vector<256x16xf32> -> vector<256x16xf32>
    %69 = arith.addf %62, %68 : vector<256x16xf32>
    %70 = vector.extract_strided_slice %12 {offsets = [0, 2, 9, 0], sizes = [1, 16, 16, 16], strides = [1, 1, 1, 1]} : vector<1x18x25x16xf32> to vector<1x16x16x16xf32>
    %71 = vector.shape_cast %70 : vector<1x16x16x16xf32> to vector<256x16xf32>
    %72 = arith.truncf %71 : vector<256x16xf32> to vector<256x16xbf16>
    %c8_49 = arith.constant 8 : index
    %c0_50 = arith.constant 0 : index
    %c0_51 = arith.constant 0 : index
    %73 = vector.load %arg4[%c8_49, %c0_50, %c0_51] : memref<9x16x16xbf16, #tpu.memory_space<vmem>>, vector<1x16x16xbf16>
    %74 = vector.shape_cast %73 : vector<1x16x16xbf16> to vector<16x16xbf16>
    %cst_52 = arith.constant dense<0.000000e+00> : vector<256x16xf32>
    %75 = tpu.matmul %72, %74, %cst_52 {dimension_numbers = #tpu.dot_dimension_numbers<[1], [0], [0], [1], [0, 0, 1, 1], [], []>} : vector<256x16xbf16>, vector<16x16xbf16>, vector<256x16xf32> -> vector<256x16xf32>
    %76 = arith.addf %69, %75 : vector<256x16xf32>
    %77 = vector.shape_cast %76 : vector<256x16xf32> to vector<1x16x16x16xf32>
    %c0_53 = arith.constant 0 : index
    %c0_54 = arith.constant 0 : index
    %c0_55 = arith.constant 0 : index
    %c0_56 = arith.constant 0 : index
    %78 = vector.load %arg5[%c0_53, %c0_54, %c0_55, %c0_56] : memref<1x1x1x16xf32, #tpu.memory_space<vmem>>, vector<1x1x1x16xf32>
    %79 = vector.broadcast %78 : vector<1x1x1x16xf32> to vector<1x16x16x16xf32>
    %80 = arith.mulf %77, %79 : vector<1x16x16x16xf32>
    %c0_57 = arith.constant 0 : index
    %c0_58 = arith.constant 0 : index
    %c0_59 = arith.constant 0 : index
    %c0_60 = arith.constant 0 : index
    %81 = vector.load %arg6[%c0_57, %c0_58, %c0_59, %c0_60] : memref<1x1x1x16xf32, #tpu.memory_space<vmem>>, vector<1x1x1x16xf32>
    %82 = vector.broadcast %81 : vector<1x1x1x16xf32> to vector<1x16x16x16xf32>
    %83 = arith.addf %80, %82 : vector<1x16x16x16xf32>
    %cst_61 = arith.constant 0.000000e+00 : f32
    %84 = vector.broadcast %cst_61 : f32 to vector<1x16x16x16xf32>
    %85 = arith.maximumf %83, %84 : vector<1x16x16x16xf32>
    %cst_62 = arith.constant 0.000000e+00 : f32
    %86 = vector.broadcast %cst_62 : f32 to vector<1x18x25x16xf32>
    %c0_63 = arith.constant 0 : index
    %c0_64 = arith.constant 0 : index
    %c0_65 = arith.constant 0 : index
    %c0_66 = arith.constant 0 : index
    %87 = vector.load %arg10[%c0_63, %c0_64, %c0_65, %c0_66] : memref<1x18x25x16xf32, #tpu.memory_space<vmem>>, vector<1x18x25x16xf32>
    tpu.vector_store %arg10[%c0_63, %c0_64, %c0_65, %c0_66], %86 {strides = array<i32>} : memref<1x18x25x16xf32, #tpu.memory_space<vmem>>, vector<1x18x25x16xf32>,
    %c0_67 = arith.constant 0 : index
    %c1_68 = arith.constant 1 : index
    %c8_69 = arith.constant 8 : index
    %c0_70 = arith.constant 0 : index
    %88 = vector.load %arg10[%c0_67, %c1_68, %c8_69, %c0_70] : memref<1x18x25x16xf32, #tpu.memory_space<vmem>>, vector<1x16x16x16xf32>
    tpu.vector_store %arg10[%c0_67, %c1_68, %c8_69, %c0_70], %85 {strides = array<i32>} : memref<1x18x25x16xf32, #tpu.memory_space<vmem>>, vector<1x16x16x16xf32>,
    %c0_71 = arith.constant 0 : index
    %c0_72 = arith.constant 0 : index
    %c0_73 = arith.constant 0 : index
    %c0_74 = arith.constant 0 : index
    %89 = vector.load %arg10[%c0_71, %c0_72, %c0_73, %c0_74] : memref<1x18x25x16xf32, #tpu.memory_space<vmem>>, vector<1x18x25x16xf32>
    %cst_75 = arith.constant 0.000000e+00 : f32
    %90 = vector.broadcast %cst_75 : f32 to vector<256x16xf32>
    %91 = vector.extract_strided_slice %89 {offsets = [0, 0, 7, 0], sizes = [1, 16, 16, 16], strides = [1, 1, 1, 1]} : vector<1x18x25x16xf32> to vector<1x16x16x16xf32>
    %92 = vector.shape_cast %91 : vector<1x16x16x16xf32> to vector<256x16xf32>
    %93 = arith.truncf %92 : vector<256x16xf32> to vector<256x16xbf16>
    %c0_76 = arith.constant 0 : index
    %c0_77 = arith.constant 0 : index
    %c0_78 = arith.constant 0 : index
    %94 = vector.load %arg7[%c0_76, %c0_77, %c0_78] : memref<9x16x16xbf16, #tpu.memory_space<vmem>>, vector<1x16x16xbf16>
    %95 = vector.shape_cast %94 : vector<1x16x16xbf16> to vector<16x16xbf16>
    %cst_79 = arith.constant dense<0.000000e+00> : vector<256x16xf32>
    %96 = tpu.matmul %93, %95, %cst_79 {dimension_numbers = #tpu.dot_dimension_numbers<[1], [0], [0], [1], [0, 0, 1, 1], [], []>} : vector<256x16xbf16>, vector<16x16xbf16>, vector<256x16xf32> -> vector<256x16xf32>
    %97 = arith.addf %90, %96 : vector<256x16xf32>
    %98 = vector.extract_strided_slice %89 {offsets = [0, 0, 8, 0], sizes = [1, 16, 16, 16], strides = [1, 1, 1, 1]} : vector<1x18x25x16xf32> to vector<1x16x16x16xf32>
    %99 = vector.shape_cast %98 : vector<1x16x16x16xf32> to vector<256x16xf32>
    %100 = arith.truncf %99 : vector<256x16xf32> to vector<256x16xbf16>
    %c1_80 = arith.constant 1 : index
    %c0_81 = arith.constant 0 : index
    %c0_82 = arith.constant 0 : index
    %101 = vector.load %arg7[%c1_80, %c0_81, %c0_82] : memref<9x16x16xbf16, #tpu.memory_space<vmem>>, vector<1x16x16xbf16>
    %102 = vector.shape_cast %101 : vector<1x16x16xbf16> to vector<16x16xbf16>
    %cst_83 = arith.constant dense<0.000000e+00> : vector<256x16xf32>
    %103 = tpu.matmul %100, %102, %cst_83 {dimension_numbers = #tpu.dot_dimension_numbers<[1], [0], [0], [1], [0, 0, 1, 1], [], []>} : vector<256x16xbf16>, vector<16x16xbf16>, vector<256x16xf32> -> vector<256x16xf32>
    %104 = arith.addf %97, %103 : vector<256x16xf32>
    %105 = vector.extract_strided_slice %89 {offsets = [0, 0, 9, 0], sizes = [1, 16, 16, 16], strides = [1, 1, 1, 1]} : vector<1x18x25x16xf32> to vector<1x16x16x16xf32>
    %106 = vector.shape_cast %105 : vector<1x16x16x16xf32> to vector<256x16xf32>
    %107 = arith.truncf %106 : vector<256x16xf32> to vector<256x16xbf16>
    %c2_84 = arith.constant 2 : index
    %c0_85 = arith.constant 0 : index
    %c0_86 = arith.constant 0 : index
    %108 = vector.load %arg7[%c2_84, %c0_85, %c0_86] : memref<9x16x16xbf16, #tpu.memory_space<vmem>>, vector<1x16x16xbf16>
    %109 = vector.shape_cast %108 : vector<1x16x16xbf16> to vector<16x16xbf16>
    %cst_87 = arith.constant dense<0.000000e+00> : vector<256x16xf32>
    %110 = tpu.matmul %107, %109, %cst_87 {dimension_numbers = #tpu.dot_dimension_numbers<[1], [0], [0], [1], [0, 0, 1, 1], [], []>} : vector<256x16xbf16>, vector<16x16xbf16>, vector<256x16xf32> -> vector<256x16xf32>
    %111 = arith.addf %104, %110 : vector<256x16xf32>
    %112 = vector.extract_strided_slice %89 {offsets = [0, 1, 7, 0], sizes = [1, 16, 16, 16], strides = [1, 1, 1, 1]} : vector<1x18x25x16xf32> to vector<1x16x16x16xf32>
    %113 = vector.shape_cast %112 : vector<1x16x16x16xf32> to vector<256x16xf32>
    %114 = arith.truncf %113 : vector<256x16xf32> to vector<256x16xbf16>
    %c3_88 = arith.constant 3 : index
    %c0_89 = arith.constant 0 : index
    %c0_90 = arith.constant 0 : index
    %115 = vector.load %arg7[%c3_88, %c0_89, %c0_90] : memref<9x16x16xbf16, #tpu.memory_space<vmem>>, vector<1x16x16xbf16>
    %116 = vector.shape_cast %115 : vector<1x16x16xbf16> to vector<16x16xbf16>
    %cst_91 = arith.constant dense<0.000000e+00> : vector<256x16xf32>
    %117 = tpu.matmul %114, %116, %cst_91 {dimension_numbers = #tpu.dot_dimension_numbers<[1], [0], [0], [1], [0, 0, 1, 1], [], []>} : vector<256x16xbf16>, vector<16x16xbf16>, vector<256x16xf32> -> vector<256x16xf32>
    %118 = arith.addf %111, %117 : vector<256x16xf32>
    %119 = vector.extract_strided_slice %89 {offsets = [0, 1, 8, 0], sizes = [1, 16, 16, 16], strides = [1, 1, 1, 1]} : vector<1x18x25x16xf32> to vector<1x16x16x16xf32>
    %120 = vector.shape_cast %119 : vector<1x16x16x16xf32> to vector<256x16xf32>
    %121 = arith.truncf %120 : vector<256x16xf32> to vector<256x16xbf16>
    %c4_92 = arith.constant 4 : index
    %c0_93 = arith.constant 0 : index
    %c0_94 = arith.constant 0 : index
    %122 = vector.load %arg7[%c4_92, %c0_93, %c0_94] : memref<9x16x16xbf16, #tpu.memory_space<vmem>>, vector<1x16x16xbf16>
    %123 = vector.shape_cast %122 : vector<1x16x16xbf16> to vector<16x16xbf16>
    %cst_95 = arith.constant dense<0.000000e+00> : vector<256x16xf32>
    %124 = tpu.matmul %121, %123, %cst_95 {dimension_numbers = #tpu.dot_dimension_numbers<[1], [0], [0], [1], [0, 0, 1, 1], [], []>} : vector<256x16xbf16>, vector<16x16xbf16>, vector<256x16xf32> -> vector<256x16xf32>
    %125 = arith.addf %118, %124 : vector<256x16xf32>
    %126 = vector.extract_strided_slice %89 {offsets = [0, 1, 9, 0], sizes = [1, 16, 16, 16], strides = [1, 1, 1, 1]} : vector<1x18x25x16xf32> to vector<1x16x16x16xf32>
    %127 = vector.shape_cast %126 : vector<1x16x16x16xf32> to vector<256x16xf32>
    %128 = arith.truncf %127 : vector<256x16xf32> to vector<256x16xbf16>
    %c5_96 = arith.constant 5 : index
    %c0_97 = arith.constant 0 : index
    %c0_98 = arith.constant 0 : index
    %129 = vector.load %arg7[%c5_96, %c0_97, %c0_98] : memref<9x16x16xbf16, #tpu.memory_space<vmem>>, vector<1x16x16xbf16>
    %130 = vector.shape_cast %129 : vector<1x16x16xbf16> to vector<16x16xbf16>
    %cst_99 = arith.constant dense<0.000000e+00> : vector<256x16xf32>
    %131 = tpu.matmul %128, %130, %cst_99 {dimension_numbers = #tpu.dot_dimension_numbers<[1], [0], [0], [1], [0, 0, 1, 1], [], []>} : vector<256x16xbf16>, vector<16x16xbf16>, vector<256x16xf32> -> vector<256x16xf32>
    %132 = arith.addf %125, %131 : vector<256x16xf32>
    %133 = vector.extract_strided_slice %89 {offsets = [0, 2, 7, 0], sizes = [1, 16, 16, 16], strides = [1, 1, 1, 1]} : vector<1x18x25x16xf32> to vector<1x16x16x16xf32>
    %134 = vector.shape_cast %133 : vector<1x16x16x16xf32> to vector<256x16xf32>
    %135 = arith.truncf %134 : vector<256x16xf32> to vector<256x16xbf16>
    %c6_100 = arith.constant 6 : index
    %c0_101 = arith.constant 0 : index
    %c0_102 = arith.constant 0 : index
    %136 = vector.load %arg7[%c6_100, %c0_101, %c0_102] : memref<9x16x16xbf16, #tpu.memory_space<vmem>>, vector<1x16x16xbf16>
    %137 = vector.shape_cast %136 : vector<1x16x16xbf16> to vector<16x16xbf16>
    %cst_103 = arith.constant dense<0.000000e+00> : vector<256x16xf32>
    %138 = tpu.matmul %135, %137, %cst_103 {dimension_numbers = #tpu.dot_dimension_numbers<[1], [0], [0], [1], [0, 0, 1, 1], [], []>} : vector<256x16xbf16>, vector<16x16xbf16>, vector<256x16xf32> -> vector<256x16xf32>
    %139 = arith.addf %132, %138 : vector<256x16xf32>
    %140 = vector.extract_strided_slice %89 {offsets = [0, 2, 8, 0], sizes = [1, 16, 16, 16], strides = [1, 1, 1, 1]} : vector<1x18x25x16xf32> to vector<1x16x16x16xf32>
    %141 = vector.shape_cast %140 : vector<1x16x16x16xf32> to vector<256x16xf32>
    %142 = arith.truncf %141 : vector<256x16xf32> to vector<256x16xbf16>
    %c7_104 = arith.constant 7 : index
    %c0_105 = arith.constant 0 : index
    %c0_106 = arith.constant 0 : index
    %143 = vector.load %arg7[%c7_104, %c0_105, %c0_106] : memref<9x16x16xbf16, #tpu.memory_space<vmem>>, vector<1x16x16xbf16>
    %144 = vector.shape_cast %143 : vector<1x16x16xbf16> to vector<16x16xbf16>
    %cst_107 = arith.constant dense<0.000000e+00> : vector<256x16xf32>
    %145 = tpu.matmul %142, %144, %cst_107 {dimension_numbers = #tpu.dot_dimension_numbers<[1], [0], [0], [1], [0, 0, 1, 1], [], []>} : vector<256x16xbf16>, vector<16x16xbf16>, vector<256x16xf32> -> vector<256x16xf32>
    %146 = arith.addf %139, %145 : vector<256x16xf32>
    %147 = vector.extract_strided_slice %89 {offsets = [0, 2, 9, 0], sizes = [1, 16, 16, 16], strides = [1, 1, 1, 1]} : vector<1x18x25x16xf32> to vector<1x16x16x16xf32>
    %148 = vector.shape_cast %147 : vector<1x16x16x16xf32> to vector<256x16xf32>
    %149 = arith.truncf %148 : vector<256x16xf32> to vector<256x16xbf16>
    %c8_108 = arith.constant 8 : index
    %c0_109 = arith.constant 0 : index
    %c0_110 = arith.constant 0 : index
    %150 = vector.load %arg7[%c8_108, %c0_109, %c0_110] : memref<9x16x16xbf16, #tpu.memory_space<vmem>>, vector<1x16x16xbf16>
    %151 = vector.shape_cast %150 : vector<1x16x16xbf16> to vector<16x16xbf16>
    %cst_111 = arith.constant dense<0.000000e+00> : vector<256x16xf32>
    %152 = tpu.matmul %149, %151, %cst_111 {dimension_numbers = #tpu.dot_dimension_numbers<[1], [0], [0], [1], [0, 0, 1, 1], [], []>} : vector<256x16xbf16>, vector<16x16xbf16>, vector<256x16xf32> -> vector<256x16xf32>
    %153 = arith.addf %146, %152 : vector<256x16xf32>
    %154 = vector.shape_cast %153 : vector<256x16xf32> to vector<1x16x16x16xf32>
    %c0_112 = arith.constant 0 : index
    %c0_113 = arith.constant 0 : index
    %c0_114 = arith.constant 0 : index
    %c0_115 = arith.constant 0 : index
    %155 = vector.load %arg1[%c0_112, %c0_113, %c0_114, %c0_115] : memref<1x16x16x16xf32, #tpu.memory_space<vmem>>, vector<1x16x16x16xf32>
    %156 = arith.addf %154, %155 : vector<1x16x16x16xf32>
    %c0_116 = arith.constant 0 : index
    %c0_117 = arith.constant 0 : index
    %c0_118 = arith.constant 0 : index
    %c0_119 = arith.constant 0 : index
    %157 = vector.load %arg8[%c0_116, %c0_117, %c0_118, %c0_119] : memref<1x16x16x16xf32, #tpu.memory_space<vmem>>, vector<1x16x16x16xf32>
    tpu.vector_store %arg8[%c0_116, %c0_117, %c0_118, %c0_119], %156 {strides = array<i32>} : memref<1x16x16x16xf32, #tpu.memory_space<vmem>>, vector<1x16x16x16xf32>,
    return
  }
  func.func @transform_0(%arg0: i32) -> (i32, i32, i32, i32) {
    %c0_i32 = arith.constant 0 : i32
    %c0_i32_0 = arith.constant 0 : i32
    %c0_i32_1 = arith.constant 0 : i32
    %c0_i32_2 = arith.constant 0 : i32
    return %arg0, %c0_i32, %c0_i32_0, %c0_i32_1 : i32, i32, i32, i32
  }
  func.func @transform_1(%arg0: i32) -> (i32, i32, i32, i32) {
    %c0_i32 = arith.constant 0 : i32
    %c0_i32_0 = arith.constant 0 : i32
    %c0_i32_1 = arith.constant 0 : i32
    %c0_i32_2 = arith.constant 0 : i32
    %c0_i32_3 = arith.constant 0 : i32
    return %c0_i32, %c0_i32_0, %c0_i32_1, %c0_i32_2 : i32, i32, i32, i32
  }
  func.func @transform_2(%arg0: i32) -> (i32, i32, i32, i32) {
    %c0_i32 = arith.constant 0 : i32
    %c0_i32_0 = arith.constant 0 : i32
    %c0_i32_1 = arith.constant 0 : i32
    %c0_i32_2 = arith.constant 0 : i32
    %c0_i32_3 = arith.constant 0 : i32
    return %c0_i32, %c0_i32_0, %c0_i32_1, %c0_i32_2 : i32, i32, i32, i32
  }
  func.func @transform_3(%arg0: i32) -> (i32, i32, i32) {
    %c0_i32 = arith.constant 0 : i32
    %c0_i32_0 = arith.constant 0 : i32
    %c0_i32_1 = arith.constant 0 : i32
    %c0_i32_2 = arith.constant 0 : i32
    return %c0_i32, %c0_i32_0, %c0_i32_1 : i32, i32, i32
  }
  func.func @transform_4(%arg0: i32) -> (i32, i32, i32, i32) {
    %c0_i32 = arith.constant 0 : i32
    %c0_i32_0 = arith.constant 0 : i32
    %c0_i32_1 = arith.constant 0 : i32
    %c0_i32_2 = arith.constant 0 : i32
    %c0_i32_3 = arith.constant 0 : i32
    return %c0_i32, %c0_i32_0, %c0_i32_1, %c0_i32_2 : i32, i32, i32, i32
  }
  func.func @transform_5(%arg0: i32) -> (i32, i32, i32, i32) {
    %c0_i32 = arith.constant 0 : i32
    %c0_i32_0 = arith.constant 0 : i32
    %c0_i32_1 = arith.constant 0 : i32
    %c0_i32_2 = arith.constant 0 : i32
    %c0_i32_3 = arith.constant 0 : i32
    return %c0_i32, %c0_i32_0, %c0_i32_1, %c0_i32_2 : i32, i32, i32, i32
  }
  func.func @transform_6(%arg0: i32) -> (i32, i32, i32) {
    %c0_i32 = arith.constant 0 : i32
    %c0_i32_0 = arith.constant 0 : i32
    %c0_i32_1 = arith.constant 0 : i32
    %c0_i32_2 = arith.constant 0 : i32
    return %c0_i32, %c0_i32_0, %c0_i32_1 : i32, i32, i32
  }
  func.func @transform_7(%arg0: i32) -> (i32, i32, i32, i32) {
    %c0_i32 = arith.constant 0 : i32
    %c0_i32_0 = arith.constant 0 : i32
    %c0_i32_1 = arith.constant 0 : i32
    %c0_i32_2 = arith.constant 0 : i32
    return %arg0, %c0_i32, %c0_i32_0, %c0_i32_1 : i32, i32, i32, i32
  }
}

</mosaic_0001>

<bundles_post_ra>
// kernel: basic_block_forward.1
= control target key start
LH: loop header
LB: loop body
LE: loop exit
PB: predicated region body
PF: predicated region fallthrough
CT: control target
= control target key end

     0   :  { %s7488_s24 = smov 0   ;;  %s9610_s0 = inlined_call_operand.vmem [shape: f32[2,16,16,16], index: 0, kind: input, shape index: {}]   ;;  %s9611_s1 = inlined_call_operand.vmem [shape: f32[1,1,1,16], index: 1, kind: input, shape index: {}]   ;;  %s9612_s2 = inlined_call_operand.vmem [shape: f32[1,1,1,16], index: 2, kind: input, shape index: {}]   ;;  %s9613_s3 = inlined_call_operand.vmem [shape: bf16[9,16,16], index: 3, kind: input, shape index: {}]   ;;  %s9614_s4 = inlined_call_operand.vmem [shape: f32[1,1,1,16], index: 4, kind: input, shape index: {}]   ;;  %s9615_s5 = inlined_call_operand.vmem [shape: f32[1,1,1,16], index: 5, kind: input, shape index: {}]   ;;  %s9616_s6 = inlined_call_operand.vmem [shape: bf16[9,16,16], index: 6, kind: input, shape index: {}]   ;;  %s9617_s7 = inlined_call_operand.vmem [shape: f32[2,16,16,16], index: 7, kind: output, shape index: {}]  }
   0x1 LB: > { %s5627_s25 = sadd.s32 4294967295, %s7445_s24   ;;  %p5631_p0 = scmp.ge.s32.totalorder %s7445_s24, 1  ;;  %s7445_s24 = sphi %s7488_s24, %s17_s24  }
   0x2   : > { %p237_p1 = scmp.lt.s32.totalorder %s7445_s24, 3 }
   0x4   : > { %p238_p2 = pnand %p5631_p0, %p237_p1 }
   0x6   : > { %241 = sbr.rel (%p238_p2) target bundleno = 1626 (0x65a), region = 48 }
   0xd   : > { %v7499_v0 = vld [vmem:[%s9613_s3 + $0x8] sm:$0xff]   ;;  %vm422_vm0 = vcmask 130048   ;;  %v7504_v1 = vld [vmem:[%s9613_s3] sm:$0xff]   ;;  %v7447_v2 = vmov 0.0   ;;  %p7725_p3 = scmp.lt.s32.totalorder %s5627_s25, 1  ;;  %vm426_vm1 = vcmask 122880  }
   0xe   : > { %6288 = vmatprep.subr.bf16.mxu0 %v7499_v0  ;;  %424 = vst.msk [vmem:[#allocation2 + $0x8] sm:$0xff] %vm422_vm0, %v7447_v2  ;;  %425 = vst.msk [vmem:[#allocation2 + $0x10] sm:$0xff] %vm422_vm0, %v7447_v2  ;;  %v7812_v3 = vld [vmem:[%s9611_s1] ss:$0 sm:$0xff]  ;;  %vm1245_vm2 = vcmask 1046528   ;;  %vm649_vm3 = vcmask 1040384  }
   0xf   : > { %423 = vst.msk [vmem:[#allocation2] sm:$0xff] %vm422_vm0, %v7447_v2  ;;  %428 = vst.msk [vmem:[#allocation2 + $0x20] sm:$0xff] %vm422_vm0, %v7447_v2  ;;  %6289 = vmatpush3.bf16.msra.mxu0 %v7499_v0  ;;  %s9819_s25 = smov (!%p7725_p3, %s5627_s25), 1  ;;  %v7818_v4 = vld [vmem:[%s9612_s2] ss:$0 sm:$0xff] }
  0x10   : > { %429 = vst.msk [vmem:[#allocation2 + $0x28] sm:$0xff] %vm422_vm0, %v7447_v2  ;;  %430 = vst.msk [vmem:[#allocation2 + $0x30] sm:$0xff] %vm422_vm0, %v7447_v2  ;;  %6322 = vmatprep.subr.bf16.mxu0 %v7504_v1  ;;  %s5980_s10 = sshll.u32 %s9819_s25, 8 }
  0x11   : > { %432 = vst.msk [vmem:[#allocation2 + $0x40] sm:$0xff] %vm422_vm0, %v7447_v2  ;;  %433 = vst.msk [vmem:[#allocation2 + $0x48] sm:$0xff] %vm422_vm0, %v7447_v2  ;;  %s7825_s15 = scalar_lea.vmem %s9610_s0, %s5980_s10  ;;  %s9511_s16 = scalar_lea.vmem %s9617_s7, %s5980_s10 }
  0x12   : > { %434 = vst.msk [vmem:[#allocation2 + $0x50] sm:$0xff] %vm422_vm0, %v7447_v2  ;;  %436 = vst.msk [vmem:[#allocation2 + $0x60] sm:$0xff] %vm422_vm0, %v7447_v2  ;;  %v280_v5 = vld [vmem:[%s7825_s15] sm:$0xff]  ;;  %v281_v6 = vld [vmem:[%s7825_s15 + $0x8] sm:$0xff] }
  0x13   : > { %437 = vst.msk [vmem:[#allocation2 + $0x68] sm:$0xff] %vm422_vm0, %v7447_v2  ;;  %438 = vst.msk [vmem:[#allocation2 + $0x70] sm:$0xff] %vm422_vm0, %v7447_v2  ;;  %v282_v7 = vld [vmem:[%s7825_s15 + $0x10] sm:$0xff]  ;;  %v319_v10 = vmul.f32 %v7812_v3, %v280_v5  ;;  %v320_v11 = vmul.f32 %v7812_v3, %v281_v6  ;;  %v283_v14 = vld [vmem:[%s7825_s15 + $0x18] sm:$0xff] }
  0x14   : > { %440 = vst.msk [vmem:[#allocation2 + $0x80] sm:$0xff] %vm422_vm0, %v7447_v2  ;;  %441 = vst.msk [vmem:[#allocation2 + $0x88] sm:$0xff] %vm422_vm0, %v7447_v2  ;;  %v321_v12 = vmul.f32 %v7812_v3, %v282_v7  ;;  %v284_v17 = vld [vmem:[%s7825_s15 + $0x20] sm:$0xff]  ;;  %v285_v18 = vld [vmem:[%s7825_s15 + $0x28] sm:$0xff]  ;;  %v322_v20 = vmul.f32 %v7812_v3, %v283_v14 }
  0x15   : > { %442 = vst.msk [vmem:[#allocation2 + $0x90] sm:$0xff] %vm422_vm0, %v7447_v2  ;;  %444 = vst.msk [vmem:[#allocation2 + $0xa0] sm:$0xff] %vm422_vm0, %v7447_v2  ;;  %v7830_v8 = vld [vmem:[#allocation2 + $0x8] sm:$0xff]  ;;  %v7832_v9 = vld [vmem:[#allocation2 + $0x10] sm:$0xff]  ;;  %v358_v15 = vadd.f32 %v7818_v4, %v319_v10  ;;  %v359_v16 = vadd.f32 %v7818_v4, %v320_v11  ;;  %v323_v22 = vmul.f32 %v7812_v3, %v284_v17 }
  0x16   : > { %445 = vst.msk [vmem:[#allocation2 + $0xa8] sm:$0xff] %vm422_vm0, %v7447_v2  ;;  %446 = vst.msk [vmem:[#allocation2 + $0xb0] sm:$0xff] %vm422_vm0, %v7447_v2  ;;  %v780_v13 = vpack.c.bf16 %v7832_v9, %v7830_v8  ;;  %v286_v19 = vld [vmem:[%s7825_s15 + $0x30] sm:$0xff]  ;;  %v360_v21 = vadd.f32 %v7818_v4, %v321_v12  ;;  %v287_v23 = vld [vmem:[%s7825_s15 + $0x38] sm:$0xff]  ;;  %v324_v28 = vmul.f32 %v7812_v3, %v285_v18 }
  0x17   : > { %448 = vst.msk [vmem:[#allocation2 + $0xc0] sm:$0xff] %vm422_vm0, %v7447_v2  ;;  %449 = vst.msk [vmem:[#allocation2 + $0xc8] sm:$0xff] %vm422_vm0, %v7447_v2  ;;  %v288_v24 = vld [vmem:[%s7825_s15 + $0x40] sm:$0xff]  ;;  %v289_v25 = vld [vmem:[%s7825_s15 + $0x48] sm:$0xff]  ;;  %v390_v26 = vmax.f32 %v358_v15, 0.0  ;;  %v391_v27 = vmax.f32 %v359_v16, 0.0  ;;  %v325_v29 = vmul.f32 %v7812_v3, %v286_v19  ;;  %v361_v31 = vadd.f32 %v7818_v4, %v322_v20 }
  0x18   : > { %450 = vst.msk [vmem:[#allocation2 + $0xd0] sm:$0xff] %vm422_vm0, %v7447_v2  ;;  %452 = vst.msk [vmem:[#allocation2 + $0xe0] sm:$0xff] %vm422_vm0, %v7447_v2  ;;  %6290 = vmatprep.mubr.msk.bf16.mxu0 %vm422_vm0, %v780_v13  ;;  %v290_v30 = vld [vmem:[%s7825_s15 + $0x50] sm:$0xff]  ;;  %v392_v32 = vmax.f32 %v360_v21, 0.0  ;;  %v362_v33 = vadd.f32 %v7818_v4, %v323_v22  ;;  %v326_v34 = vmul.f32 %v7812_v3, %v287_v23  ;;  %v291_v39 = vld [vmem:[%s7825_s15 + $0x58] sm:$0xff] }
  0x19   : > { %453 = vst.msk [vmem:[#allocation2 + $0xe8] sm:$0xff] %vm422_vm0, %v7447_v2  ;;  %454 = vst.msk [vmem:[#allocation2 + $0xf0] sm:$0xff] %vm422_vm0, %v7447_v2  ;;  %v363_v35 = vadd.f32 %v7818_v4, %v324_v28  ;;  %v364_v36 = vadd.f32 %v7818_v4, %v325_v29  ;;  %v327_v37 = vmul.f32 %v7812_v3, %v288_v24  ;;  %v292_v40 = vld [vmem:[%s7825_s15 + $0x60] sm:$0xff]  ;;  %v393_v41 = vmax.f32 %v361_v31, 0.0  ;;  %v293_v45 = vld [vmem:[%s7825_s15 + $0x68] sm:$0xff] }
  0x1a   : > { %456 = vst.msk [vmem:[#allocation2 + $0x100] sm:$0xff] %vm422_vm0, %v7447_v2  ;;  %457 = vst.msk [vmem:[#allocation2 + $0x108] sm:$0xff] %vm422_vm0, %v7447_v2  ;;  %v328_v38 = vmul.f32 %v7812_v3, %v289_v25  ;;  %v394_v42 = vmax.f32 %v362_v33, 0.0  ;;  %v365_v43 = vadd.f32 %v7818_v4, %v326_v34  ;;  %v329_v44 = vmul.f32 %v7812_v3, %v290_v30  ;;  %v294_v46 = vld [vmem:[%s7825_s15 + $0x70] sm:$0xff]  ;;  %v295_v51 = vld [vmem:[%s7825_s15 + $0x78] sm:$0xff] }
  0x1b   : > { %458 = vst.msk [vmem:[#allocation2 + $0x110] sm:$0xff] %vm422_vm0, %v7447_v2  ;;  %460 = vst.msk [vmem:[#allocation2 + $0x120] sm:$0xff] %vm422_vm0, %v7447_v2  ;;  %v395_v47 = vmax.f32 %v363_v35, 0.0  ;;  %v396_v48 = vmax.f32 %v364_v36, 0.0  ;;  %v366_v49 = vadd.f32 %v7818_v4, %v327_v37  ;;  %v330_v53 = vmul.f32 %v7812_v3, %v291_v39  ;;  %v7907_v15 = vld [vmem:[%s9613_s3 + $0x10] sm:$0xff]   ;;  %v296_v18 = vld [vmem:[%s7825_s15 + $0x80] sm:$0xff] }
  0x1c   : > { %461 = vst.msk [vmem:[#allocation2 + $0x128] sm:$0xff] %vm422_vm0, %v7447_v2  ;;  %462 = vst.msk [vmem:[#allocation2 + $0x130] sm:$0xff] %vm422_vm0, %v7447_v2  ;;  %v367_v50 = vadd.f32 %v7818_v4, %v328_v38  ;;  %v397_v52 = vmax.f32 %v365_v43, 0.0  ;;  %v368_v54 = vadd.f32 %v7818_v4, %v329_v44  ;;  %v331_v55 = vmul.f32 %v7812_v3, %v292_v40  ;;  %v297_v19 = vld [vmem:[%s7825_s15 + $0x88] sm:$0xff]  ;;  %v298_v30 = vld [vmem:[%s7825_s15 + $0x90] sm:$0xff] }
  0x1d   : > { %464 = vst.msk [vmem:[#allocation2 + $0x140] sm:$0xff] %vm422_vm0, %v7447_v2  ;;  %465 = vst.msk [vmem:[#allocation2 + $0x148] sm:$0xff] %vm422_vm0, %v7447_v2  ;;  %v398_v56 = vmax.f32 %v366_v49, 0.0  ;;  %v332_v58 = vmul.f32 %v7812_v3, %v293_v45  ;;  %v333_v59 = vmul.f32 %v7812_v3, %v294_v46  ;;  %v369_v60 = vadd.f32 %v7818_v4, %v330_v53  ;;  %v299_v33 = vld [vmem:[%s7825_s15 + $0x98] sm:$0xff]  ;;  %v300_v37 = vld [vmem:[%s7825_s15 + $0xa0] sm:$0xff] }
  0x1e   : > { %466 = vst.msk [vmem:[#allocation2 + $0x150] sm:$0xff] %vm422_vm0, %v7447_v2  ;;  %468 = vst.msk [vmem:[#allocation2 + $0x160] sm:$0xff] %vm422_vm0, %v7447_v2  ;;  %v399_v57 = vmax.f32 %v367_v50, 0.0  ;;  %v400_v61 = vmax.f32 %v368_v54, 0.0  ;;  %v370_v62 = vadd.f32 %v7818_v4, %v331_v55  ;;  %v334_v63 = vmul.f32 %v7812_v3, %v295_v51  ;;  %v301_v45 = vld [vmem:[%s7825_s15 + $0xa8] sm:$0xff]  ;;  %v304_v49 = vld [vmem:[%s7825_s15 + $0xc0] sm:$0xff] }
  0x1f   : > { %469 = vst.msk [vmem:[#allocation2 + $0x168] sm:$0xff] %vm422_vm0, %v7447_v2  ;;  %470 = vst.msk [vmem:[#allocation2 + $0x170] sm:$0xff] %vm422_vm0, %v7447_v2  ;;  %v371_v0 = vadd.f32 %v7818_v4, %v332_v58  ;;  %v401_v7 = vmax.f32 %v369_v60, 0.0  ;;  %v336_v29 = vmul.f32 %v7812_v3, %v297_v19  ;;  %v337_v34 = vmul.f32 %v7812_v3, %v298_v30  ;;  %v305_v53 = vld [vmem:[%s7825_s15 + $0xc8] sm:$0xff]  ;;  %v306_v54 = vld [vmem:[%s7825_s15 + $0xd0] sm:$0xff] }
  0x20   : > { %472 = vst.msk [vmem:[#allocation2 + $0x180] sm:$0xff] %vm422_vm0, %v7447_v2  ;;  %473 = vst.msk [vmem:[#allocation2 + $0x188] sm:$0xff] %vm422_vm0, %v7447_v2  ;;  %v402_v10 = vmax.f32 %v370_v62, 0.0  ;;  %v373_v11 = vadd.f32 %v7818_v4, %v334_v63  ;;  %v338_v44 = vmul.f32 %v7812_v3, %v299_v33  ;;  %v651_v50 = vrot.slane %v7830_v8, 7 }
  0x21   : > { %474 = vst.msk [vmem:[#allocation2 + $0x190] sm:$0xff] %vm422_vm0, %v7447_v2  ;;  %476 = vst.msk [vmem:[#allocation2 + $0x1a0] sm:$0xff] %vm422_vm0, %v7447_v2  ;;  %v403_v17 = vmax.f32 %v371_v0, 0.0  ;;  %v375_v36 = vadd.f32 %v7818_v4, %v336_v29  ;;  %v376_v46 = vadd.f32 %v7818_v4, %v337_v34  ;;  %v653_v51 = vrot.slane %v7832_v9, 7 }
  0x22   : > { %477 = vst.msk [vmem:[#allocation2 + $0x1a8] sm:$0xff] %vm422_vm0, %v7447_v2  ;;  %478 = vst.msk [vmem:[#allocation2 + $0x1b0] sm:$0xff] %vm422_vm0, %v7447_v2  ;;  %v405_v22 = vmax.f32 %v373_v11, 0.0  ;;  %v339_v58 = vmul.f32 %v7812_v3, %v300_v37  ;;  %v340_v60 = vmul.f32 %v7812_v3, %v301_v45  ;;  %v343_v63 = vmul.f32 %v7812_v3, %v304_v49  ;;  %v308_v11 = vld [vmem:[%s7825_s15 + $0xe0] sm:$0xff] }
  0x23   : > { %480 = vst.msk [vmem:[#allocation2 + $0x1c0] sm:$0xff] %vm422_vm0, %v7447_v2  ;;  %481 = vst.msk [vmem:[#allocation2 + $0x1c8] sm:$0xff] %vm422_vm0, %v7447_v2  ;;  %v407_v43 = vmax.f32 %v375_v36, 0.0  ;;  %v309_v36 = vld [vmem:[%s7825_s15 + $0xe8] sm:$0xff] }
  0x24   : > { %482 = vst.msk [vmem:[#allocation2 + $0x1d0] sm:$0xff] %vm422_vm0, %v7447_v2  ;;  %484 = vst.msk [vmem:[#allocation2 + $0x1e0] sm:$0xff] %vm422_vm0, %v7447_v2  ;;  %v382_v19 = vadd.f32 %v7818_v4, %v343_v63 }
  0x25   : > { %485 = vst.msk [vmem:[#allocation2 + $0x1e8] sm:$0xff] %vm422_vm0, %v7447_v2  ;;  %486 = vst.msk [vmem:[#allocation2 + $0x1f0] sm:$0xff] %vm422_vm0, %v7447_v2 }
  0x26   : > { %488 = vst.msk [vmem:[#allocation2 + $0x200] sm:$0xff] %vm422_vm0, %v7447_v2  ;;  %489 = vst.msk [vmem:[#allocation2 + $0x208] sm:$0xff] %vm422_vm0, %v7447_v2 }
  0x27   : > { %490 = vst.msk [vmem:[#allocation2 + $0x210] sm:$0xff] %vm422_vm0, %v7447_v2  ;;  %492 = vst.msk [vmem:[#allocation2 + $0x220] sm:$0xff] %vm422_vm0, %v7447_v2 }
  0x28   : > { %493 = vst.msk [vmem:[#allocation2 + $0x228] sm:$0xff] %vm422_vm0, %v7447_v2  ;;  %494 = vst.msk [vmem:[#allocation2 + $0x230] sm:$0xff] %vm422_vm0, %v7447_v2 }
  0x29   : > { %3006 = vst.msk [vmem:[#allocation3] sm:$0xff] %vm422_vm0, %v7447_v2  ;;  %3007 = vst.msk [vmem:[#allocation3 + $0x8] sm:$0xff] %vm422_vm0, %v7447_v2 }
  0x2a   : > { %3008 = vst.msk [vmem:[#allocation3 + $0x10] sm:$0xff] %vm422_vm0, %v7447_v2  ;;  %3010 = vst.msk [vmem:[#allocation3 + $0x20] sm:$0xff] %vm422_vm0, %v7447_v2 }
  0x2b   : > { %3011 = vst.msk [vmem:[#allocation3 + $0x28] sm:$0xff] %vm422_vm0, %v7447_v2  ;;  %3012 = vst.msk [vmem:[#allocation3 + $0x30] sm:$0xff] %vm422_vm0, %v7447_v2 }
  0x2c   : > { %3014 = vst.msk [vmem:[#allocation3 + $0x40] sm:$0xff] %vm422_vm0, %v7447_v2  ;;  %3015 = vst.msk [vmem:[#allocation3 + $0x48] sm:$0xff] %vm422_vm0, %v7447_v2 }
  0x2d   : > { %3016 = vst.msk [vmem:[#allocation3 + $0x50] sm:$0xff] %vm422_vm0, %v7447_v2  ;;  %3018 = vst.msk [vmem:[#allocation3 + $0x60] sm:$0xff] %vm422_vm0, %v7447_v2 }
  0x2e   : > { %3019 = vst.msk [vmem:[#allocation3 + $0x68] sm:$0xff] %vm422_vm0, %v7447_v2  ;;  %3020 = vst.msk [vmem:[#allocation3 + $0x70] sm:$0xff] %vm422_vm0, %v7447_v2 }
  0x2f   : > { %3022 = vst.msk [vmem:[#allocation3 + $0x80] sm:$0xff] %vm422_vm0, %v7447_v2  ;;  %3023 = vst.msk [vmem:[#allocation3 + $0x88] sm:$0xff] %vm422_vm0, %v7447_v2 }
  0x30   : > { %3024 = vst.msk [vmem:[#allocation3 + $0x90] sm:$0xff] %vm422_vm0, %v7447_v2  ;;  %3026 = vst.msk [vmem:[#allocation3 + $0xa0] sm:$0xff] %vm422_vm0, %v7447_v2 }
  0x31   : > { %3027 = vst.msk [vmem:[#allocation3 + $0xa8] sm:$0xff] %vm422_vm0, %v7447_v2  ;;  %3028 = vst.msk [vmem:[#allocation3 + $0xb0] sm:$0xff] %vm422_vm0, %v7447_v2 }
  0x32   : > { %3030 = vst.msk [vmem:[#allocation3 + $0xc0] sm:$0xff] %vm422_vm0, %v7447_v2  ;;  %3031 = vst.msk [vmem:[#allocation3 + $0xc8] sm:$0xff] %vm422_vm0, %v7447_v2 }
  0x33   : > { %3032 = vst.msk [vmem:[#allocation3 + $0xd0] sm:$0xff] %vm422_vm0, %v7447_v2  ;;  %3034 = vst.msk [vmem:[#allocation3 + $0xe0] sm:$0xff] %vm422_vm0, %v7447_v2 }
  0x34   : > { %3035 = vst.msk [vmem:[#allocation3 + $0xe8] sm:$0xff] %vm422_vm0, %v7447_v2  ;;  %3036 = vst.msk [vmem:[#allocation3 + $0xf0] sm:$0xff] %vm422_vm0, %v7447_v2 }
  0x35   : > { %3038 = vst.msk [vmem:[#allocation3 + $0x100] sm:$0xff] %vm422_vm0, %v7447_v2  ;;  %3039 = vst.msk [vmem:[#allocation3 + $0x108] sm:$0xff] %vm422_vm0, %v7447_v2 }
  0x36   : > { %3040 = vst.msk [vmem:[#allocation3 + $0x110] sm:$0xff] %vm422_vm0, %v7447_v2  ;;  %3042 = vst.msk [vmem:[#allocation3 + $0x120] sm:$0xff] %vm422_vm0, %v7447_v2 }
  0x37   : > { %3043 = vst.msk [vmem:[#allocation3 + $0x128] sm:$0xff] %vm422_vm0, %v7447_v2  ;;  %3044 = vst.msk [vmem:[#allocation3 + $0x130] sm:$0xff] %vm422_vm0, %v7447_v2 }
  0x38   : > { %3046 = vst.msk [vmem:[#allocation3 + $0x140] sm:$0xff] %vm422_vm0, %v7447_v2  ;;  %3047 = vst.msk [vmem:[#allocation3 + $0x148] sm:$0xff] %vm422_vm0, %v7447_v2 }
  0x39   : > { %3048 = vst.msk [vmem:[#allocation3 + $0x150] sm:$0xff] %vm422_vm0, %v7447_v2  ;;  %3050 = vst.msk [vmem:[#allocation3 + $0x160] sm:$0xff] %vm422_vm0, %v7447_v2 }
  0x3a   : > { %3051 = vst.msk [vmem:[#allocation3 + $0x168] sm:$0xff] %vm422_vm0, %v7447_v2  ;;  %3052 = vst.msk [vmem:[#allocation3 + $0x170] sm:$0xff] %vm422_vm0, %v7447_v2 }
  0x3b   : > { %3054 = vst.msk [vmem:[#allocation3 + $0x180] sm:$0xff] %vm422_vm0, %v7447_v2  ;;  %3055 = vst.msk [vmem:[#allocation3 + $0x188] sm:$0xff] %vm422_vm0, %v7447_v2 }
  0x3c   : > { %3056 = vst.msk [vmem:[#allocation3 + $0x190] sm:$0xff] %vm422_vm0, %v7447_v2  ;;  %3058 = vst.msk [vmem:[#allocation3 + $0x1a0] sm:$0xff] %vm422_vm0, %v7447_v2 }
  0x3d   : > { %3059 = vst.msk [vmem:[#allocation3 + $0x1a8] sm:$0xff] %vm422_vm0, %v7447_v2  ;;  %3060 = vst.msk [vmem:[#allocation3 + $0x1b0] sm:$0xff] %vm422_vm0, %v7447_v2 }
  0x3e   : > { %3062 = vst.msk [vmem:[#allocation3 + $0x1c0] sm:$0xff] %vm422_vm0, %v7447_v2  ;;  %3063 = vst.msk [vmem:[#allocation3 + $0x1c8] sm:$0xff] %vm422_vm0, %v7447_v2 }
  0x3f   : > { %3064 = vst.msk [vmem:[#allocation3 + $0x1d0] sm:$0xff] %vm422_vm0, %v7447_v2  ;;  %3066 = vst.msk [vmem:[#allocation3 + $0x1e0] sm:$0xff] %vm422_vm0, %v7447_v2 }
  0x40   : > { %3067 = vst.msk [vmem:[#allocation3 + $0x1e8] sm:$0xff] %vm422_vm0, %v7447_v2  ;;  %3068 = vst.msk [vmem:[#allocation3 + $0x1f0] sm:$0xff] %vm422_vm0, %v7447_v2 }
  0x41   : > { %3070 = vst.msk [vmem:[#allocation3 + $0x200] sm:$0xff] %vm422_vm0, %v7447_v2  ;;  %3071 = vst.msk [vmem:[#allocation3 + $0x208] sm:$0xff] %vm422_vm0, %v7447_v2 }
  0x42   : > { %3072 = vst.msk [vmem:[#allocation3 + $0x210] sm:$0xff] %vm422_vm0, %v7447_v2  ;;  %3074 = vst.msk [vmem:[#allocation3 + $0x220] sm:$0xff] %vm422_vm0, %v7447_v2 }
  0x43   : > { %3075 = vst.msk [vmem:[#allocation3 + $0x228] sm:$0xff] %vm422_vm0, %v7447_v2  ;;  %3076 = vst.msk [vmem:[#allocation3 + $0x230] sm:$0xff] %vm422_vm0, %v7447_v2 }
  0x44   : > { %431 = vst.msk [vmem:[#allocation2 + $0x38] sm:$0x1] %vm426_vm1, %v7447_v2  ;;  %427 = vst.msk [vmem:[#allocation2 + $0x18] sm:$0x1] %vm426_vm1, %v7447_v2 }
  0x45   : > { %435 = vst.msk [vmem:[#allocation2 + $0x58] sm:$0x1] %vm426_vm1, %v7447_v2  ;;  %439 = vst.msk [vmem:[#allocation2 + $0x78] sm:$0x1] %vm426_vm1, %v7447_v2 }
  0x46   : > { %443 = vst.msk [vmem:[#allocation2 + $0x98] sm:$0x1] %vm426_vm1, %v7447_v2  ;;  %447 = vst.msk [vmem:[#allocation2 + $0xb8] sm:$0x1] %vm426_vm1, %v7447_v2 }
  0x47   : > { %451 = vst.msk [vmem:[#allocation2 + $0xd8] sm:$0x1] %vm426_vm1, %v7447_v2  ;;  %455 = vst.msk [vmem:[#allocation2 + $0xf8] sm:$0x1] %vm426_vm1, %v7447_v2 }
  0x48   : > { %459 = vst.msk [vmem:[#allocation2 + $0x118] sm:$0x1] %vm426_vm1, %v7447_v2  ;;  %463 = vst.msk [vmem:[#allocation2 + $0x138] sm:$0x1] %vm426_vm1, %v7447_v2 }
  0x49   : > { %467 = vst.msk [vmem:[#allocation2 + $0x158] sm:$0x1] %vm426_vm1, %v7447_v2  ;;  %471 = vst.msk [vmem:[#allocation2 + $0x178] sm:$0x1] %vm426_vm1, %v7447_v2 }
  0x4a   : > { %475 = vst.msk [vmem:[#allocation2 + $0x198] sm:$0x1] %vm426_vm1, %v7447_v2  ;;  %479 = vst.msk [vmem:[#allocation2 + $0x1b8] sm:$0x1] %vm426_vm1, %v7447_v2 }
  0x4b   : > { %483 = vst.msk [vmem:[#allocation2 + $0x1d8] sm:$0x1] %vm426_vm1, %v7447_v2  ;;  %487 = vst.msk [vmem:[#allocation2 + $0x1f8] sm:$0x1] %vm426_vm1, %v7447_v2 }
  0x4c   : > { %491 = vst.msk [vmem:[#allocation2 + $0x218] sm:$0x1] %vm426_vm1, %v7447_v2  ;;  %495 = vst.msk [vmem:[#allocation2 + $0x238] sm:$0x1] %vm426_vm1, %v7447_v2 }
  0x4d   : > { %3009 = vst.msk [vmem:[#allocation3 + $0x18] sm:$0x1] %vm426_vm1, %v7447_v2  ;;  %3013 = vst.msk [vmem:[#allocation3 + $0x38] sm:$0x1] %vm426_vm1, %v7447_v2 }
  0x4e   : > { %3017 = vst.msk [vmem:[#allocation3 + $0x58] sm:$0x1] %vm426_vm1, %v7447_v2  ;;  %3021 = vst.msk [vmem:[#allocation3 + $0x78] sm:$0x1] %vm426_vm1, %v7447_v2 }
  0x4f   : > { %3025 = vst.msk [vmem:[#allocation3 + $0x98] sm:$0x1] %vm426_vm1, %v7447_v2  ;;  %3029 = vst.msk [vmem:[#allocation3 + $0xb8] sm:$0x1] %vm426_vm1, %v7447_v2 }
  0x50   : > { %3033 = vst.msk [vmem:[#allocation3 + $0xd8] sm:$0x1] %vm426_vm1, %v7447_v2  ;;  %3037 = vst.msk [vmem:[#allocation3 + $0xf8] sm:$0x1] %vm426_vm1, %v7447_v2 }
  0x51   : > { %3041 = vst.msk [vmem:[#allocation3 + $0x118] sm:$0x1] %vm426_vm1, %v7447_v2  ;;  %3045 = vst.msk [vmem:[#allocation3 + $0x138] sm:$0x1] %vm426_vm1, %v7447_v2 }
  0x52   : > { %3049 = vst.msk [vmem:[#allocation3 + $0x158] sm:$0x1] %vm426_vm1, %v7447_v2  ;;  %3053 = vst.msk [vmem:[#allocation3 + $0x178] sm:$0x1] %vm426_vm1, %v7447_v2 }
  0x53   : > { %3057 = vst.msk [vmem:[#allocation3 + $0x198] sm:$0x1] %vm426_vm1, %v7447_v2  ;;  %3061 = vst.msk [vmem:[#allocation3 + $0x1b8] sm:$0x1] %vm426_vm1, %v7447_v2 }
  0x54   : > { %3065 = vst.msk [vmem:[#allocation3 + $0x1d8] sm:$0x1] %vm426_vm1, %v7447_v2  ;;  %3069 = vst.msk [vmem:[#allocation3 + $0x1f8] sm:$0x1] %vm426_vm1, %v7447_v2 }
  0x55   : > { %3073 = vst.msk [vmem:[#allocation3 + $0x218] sm:$0x1] %vm426_vm1, %v7447_v2  ;;  %3077 = vst.msk [vmem:[#allocation3 + $0x238] sm:$0x1] %vm426_vm1, %v7447_v2  ;;  %v372_v2 = vadd.f32 %v7818_v4, %v333_v59  ;;  %v307_v59 = vld [vmem:[%s7825_s15 + $0xd8] sm:$0xff] }
  0x56   : > { %9690 = vst [vmem:[#allocation4_spill] sm:$0xff] %v7812_v3  ;;  %9691 = vst [vmem:[#allocation5_spill] sm:$0xff] %v7818_v4 }
  0x57   : > { %497 = vst.msk [vmem:[#allocation2 + $0x28] sm:$0xff] %vm422_vm0, %v390_v26  ;;  %498 = vst.msk [vmem:[#allocation2 + $0x30] sm:$0xff] %vm422_vm0, %v391_v27  ;;  %v404_v21 = vmax.f32 %v372_v2, 0.0  ;;  %v378_v2 = vadd.f32 %v7818_v4, %v339_v58 }
  0x58   : > { %499 = vst.msk [vmem:[#allocation2 + $0x48] sm:$0xff] %vm422_vm0, %v392_v32  ;;  %500 = vst.msk [vmem:[#allocation2 + $0x50] sm:$0xff] %vm422_vm0, %v393_v41 }
  0x59   : > { %501 = vst.msk [vmem:[#allocation2 + $0x68] sm:$0xff] %vm422_vm0, %v394_v42  ;;  %502 = vst.msk [vmem:[#allocation2 + $0x70] sm:$0xff] %vm422_vm0, %v395_v47  ;;  %v302_v47 = vld [vmem:[%s7825_s15 + $0xb0] sm:$0xff] }
  0x5a   : > { %503 = vst.msk [vmem:[#allocation2 + $0x88] sm:$0xff] %vm422_vm0, %v396_v48  ;;  %504 = vst.msk [vmem:[#allocation2 + $0x90] sm:$0xff] %vm422_vm0, %v397_v52  ;;  %v303_v48 = vld [vmem:[%s7825_s15 + $0xb8] sm:$0xff] }
  0x5b   : > { %505 = vst.msk [vmem:[#allocation2 + $0xa8] sm:$0xff] %vm422_vm0, %v398_v56  ;;  %506 = vst.msk [vmem:[#allocation2 + $0xb0] sm:$0xff] %vm422_vm0, %v399_v57  ;;  %v377_v56 = vadd.f32 %v7818_v4, %v338_v44  ;;  %v408_v57 = vmax.f32 %v376_v46, 0.0  ;;  %v342_v62 = vmul.f32 %v7812_v3, %v303_v48  ;;  %v347_v46 = vmul.f32 %v7812_v3, %v308_v11  ;;  %v533_v11 = vld [vmem:[#allocation2 + $0x20] sm:$0xff] }
  0x5c   : > { %507 = vst.msk [vmem:[#allocation2 + $0xc8] sm:$0xff] %vm422_vm0, %v400_v61  ;;  %508 = vst.msk [vmem:[#allocation2 + $0xd0] sm:$0xff] %vm422_vm0, %v401_v7  ;;  %v341_v61 = vmul.f32 %v7812_v3, %v302_v47  ;;  %v344_v7 = vmul.f32 %v7812_v3, %v305_v53  ;;  %v529_v47 = vld [vmem:[#allocation2] sm:$0xff] }
  0x5d   : > { %509 = vst.msk [vmem:[#allocation2 + $0xe8] sm:$0xff] %vm422_vm0, %v402_v10  ;;  %510 = vst.msk [vmem:[#allocation2 + $0xf0] sm:$0xff] %vm422_vm0, %v403_v17  ;;  %v409_v0 = vmax.f32 %v377_v56, 0.0  ;;  %v345_v10 = vmul.f32 %v7812_v3, %v306_v54  ;;  %v348_v54 = vmul.f32 %v7812_v3, %v309_v36  ;;  %v386_v56 = vadd.f32 %v7818_v4, %v347_v46 }
  0x5e   : > { %v7891_v5 = vld [vmem:[#allocation2 + $0x28] sm:$0xff]  ;;  %v7893_v6 = vld [vmem:[#allocation2 + $0x30] sm:$0xff]  ;;  %511 = vst.msk [vmem:[#allocation2 + $0x108] sm:$0xff] %vm422_vm0, %v404_v21  ;;  %512 = vst.msk [vmem:[#allocation2 + $0x110] sm:$0xff] %vm422_vm0, %v405_v22  ;;  %v380_v17 = vadd.f32 %v7818_v4, %v341_v61  ;;  %v410_v21 = vmax.f32 %v378_v2, 0.0  ;;  %v383_v22 = vadd.f32 %v7818_v4, %v344_v7  ;;  %v650_v58 = vrot.slane %v529_v47, 7 }
  0x5f   : > { %v7899_v12 = vpack.c.bf16 %v7893_v6, %v7891_v5  ;;  %v1251_v13 = vrot.slane %v7891_v5, 1  ;;  %v7902_v14 = vld [vmem:[#allocation2 + $0x48] sm:$0xff]  ;;  %v1252_v16 = vrot.slane %v7893_v6, 1  ;;  %v7916_v20 = vld [vmem:[#allocation2 + $0x50] sm:$0xff]  ;;  %514 = vst.msk [vmem:[#allocation2 + $0x130] sm:$0xff] %vm422_vm0, %v407_v43  ;;  %515 = vst.msk [vmem:[#allocation2 + $0x148] sm:$0xff] %vm422_vm0, %v408_v57  ;;  %v384_v29 = vadd.f32 %v7818_v4, %v345_v10 }
  0x60   : > { %v7926_v24 = vpack.c.bf16 %v7916_v20, %v7902_v14  ;;  %v7928_v25 = vld [vmem:[#allocation2 + $0x68] sm:$0xff]  ;;  %v7930_v26 = vld [vmem:[#allocation2 + $0x70] sm:$0xff]  ;;  %516 = vst.msk [vmem:[#allocation2 + $0x150] sm:$0xff] %vm422_vm0, %v409_v0  ;;  %v412_v33 = vmax.f32 %v380_v17, 0.0  ;;  %517 = vst.msk [vmem:[#allocation2 + $0x168] sm:$0xff] %vm422_vm0, %v410_v21  ;;  %v415_v43 = vmax.f32 %v383_v22, 0.0  ;;  %v387_v61 = vadd.f32 %v7818_v4, %v348_v54 }
  0x61   : > { %9692 = vst [vmem:[#allocation6_spill] sm:$0xff] %v7899_v12  ;;  %6291 = vmatmul.mubr.msk.bf16.vlgmr.msra.gmra.mrb[0].mxu0 %vm422_vm0, %v7899_v12  ;;  %v7921_v23 = vsel %vm1245_vm2, %v1251_v13, %v1252_v16  ;;  %v7933_v27 = vld [vmem:[#allocation2 + $0x88] sm:$0xff]  ;;  %v7935_v28 = vld [vmem:[#allocation2 + $0x90] sm:$0xff]  ;;  %v7947_v31 = vpack.c.bf16 %v7930_v26, %v7928_v25  ;;  %v379_v13 = vadd.f32 %v7818_v4, %v340_v60  ;;  %v416_v45 = vmax.f32 %v384_v29, 0.0 }
  0x62   : > { %6323 = vmatpush3.bf16.msra.mxu0 %v7504_v1  ;;  %9693 = vst [vmem:[#allocation7_spill] sm:$0xff] %v7926_v24  ;;  %v335_v1 = vmul.f32 %v7812_v3, %v296_v18  ;;  %6294 = vmatprep.mubr.msk.bf16.mxu0 %vm422_vm0, %v7926_v24  ;;  %v7951_v32 = vpack.c.bf16 %v7935_v28, %v7933_v27  ;;  %v7958_v38 = vld [vmem:[#allocation2 + $0xa8] sm:$0xff]  ;;  %v7960_v39 = vld [vmem:[#allocation2 + $0xb0] sm:$0xff]  ;;  %519 = vst.msk [vmem:[#allocation2 + $0x188] sm:$0xff] %vm422_vm0, %v412_v33  ;;  %v419_v0 = vmax.f32 %v387_v61, 0.0 }
  0x63   : > { %6356 = vmatprep.subr.bf16.mxu0 %v7907_v15  ;;  %9694 = vst [vmem:[#allocation8_spill] sm:$0xff] %v7947_v31  ;;  %v7964_v40 = vld [vmem:[#allocation2 + $0xc8] sm:$0xff]  ;;  %v7966_v41 = vld [vmem:[#allocation2 + $0xd0] sm:$0xff]  ;;  %v7980_v52 = vpack.c.bf16 %v7960_v39, %v7958_v38  ;;  %v381_v18 = vadd.f32 %v7818_v4, %v342_v62  ;;  %v411_v30 = vmax.f32 %v379_v13, 0.0  ;;  %522 = vst.msk [vmem:[#allocation2 + $0x1b0] sm:$0xff] %vm422_vm0, %v415_v43  ;;  %v418_v62 = vmax.f32 %v386_v56, 0.0 }
  0x64   : > { %9695 = vst [vmem:[#allocation9_spill] sm:$0xff] %v7951_v32  ;;  %v374_v35 = vadd.f32 %v7818_v4, %v335_v1  ;;  %v7988_v55 = vpack.c.bf16 %v7966_v41, %v7964_v40  ;;  %v346_v1 = vmul.f32 %v7812_v3, %v307_v59  ;;  %v8015_v37 = vld [vmem:[#allocation2 + $0xe8] sm:$0xff]  ;;  %523 = vst.msk [vmem:[#allocation2 + $0x1c8] sm:$0xff] %vm422_vm0, %v416_v45  ;;  %v536_v13 = vld [vmem:[#allocation2 + $0x38] sm:$0x1]  ;;  %v9618_v21 = vrot.slane %v7891_v5, 7 }
  0x65   : > { %9696 = vst [vmem:[#allocation10_spill] sm:$0xff] %v7980_v52  ;;  %v413_v34 = vmax.f32 %v381_v18, 0.0  ;;  %9698 = vst [vmem:[#allocation12_spill] sm:$0xff] %v8015_v37  ;;  %v8022_v48 = vld [vmem:[#allocation2 + $0x108] sm:$0xff]  ;;  %v8024_v49 = vld [vmem:[#allocation2 + $0x110] sm:$0xff]  ;;  %v8041_v59 = vsel %vm649_vm3, %v651_v50, %v653_v51  ;;  %v8052_v63 = vsel %vm649_vm3, %v650_v58, %v651_v50  ;;  %v1254_v22 = vrot.slane %v536_v13, 1 }
  0x66   : > { %v406_v42 = vmax.f32 %v374_v35, 0.0  ;;  %9697 = vst [vmem:[#allocation11_spill] sm:$0xff] %v7988_v55  ;;  %v414_v35 = vmax.f32 %v382_v19, 0.0  ;;  %v385_v44 = vadd.f32 %v7818_v4, %v346_v1  ;;  %518 = vst.msk [vmem:[#allocation2 + $0x170] sm:$0xff] %vm422_vm0, %v411_v30  ;;  %v8045_v60 = vpack.c.bf16 %v8024_v49, %v8022_v48  ;;  %v8063_v7 = vld [vmem:[#allocation2 + $0x130] sm:$0xff]  ;;  %v8066_v50 = vld [vmem:[#allocation2 + $0x148] sm:$0xff] }
  0x67   : > { %520 = vst.msk [vmem:[#allocation2 + $0x190] sm:$0xff] %vm422_vm0, %v413_v34  ;;  %525 = vst.msk [vmem:[#allocation2 + $0x1e8] sm:$0xff] %vm422_vm0, %v418_v62  ;;  %v8068_v10 = vld [vmem:[#allocation2 + $0x150] sm:$0xff]  ;;  %v655_v19 = vrot.slane %v533_v11, 7  ;;  %v1246_v1 = vrot.slane %v7830_v8, 1  ;;  %v8086_v33 = vld [vmem:[#allocation2 + $0x168] sm:$0xff]  ;;  %v1255_v8 = vsel %vm1245_vm2, %v1252_v16, %v1254_v22 }
  0x68   : > { %513 = vst.msk [vmem:[#allocation2 + $0x128] sm:$0xff] %vm422_vm0, %v406_v42  ;;  %v8017_v42 = vld [vmem:[#allocation2 + $0xf0] sm:$0xff]  ;;  %521 = vst.msk [vmem:[#allocation2 + $0x1a8] sm:$0xff] %vm422_vm0, %v414_v35  ;;  %v417_v53 = vmax.f32 %v385_v44, 0.0  ;;  %v8076_v18 = vpack.c.bf16 %v8068_v10, %v8066_v50  ;;  %v1256_v43 = vrot.slane %v7902_v14, 1  ;;  %v1257_v47 = vrot.slane %v7916_v20, 1 }
  0x69   : > { %6295 = vmatmul.mubr.msk.bf16.gmra.mrb[4].mxu0 %vm422_vm0, %v7947_v31  ;;  %v8036_v57 = vpack.c.bf16 %v8017_v42, %v8015_v37  ;;  %9700 = vst [vmem:[#allocation14_spill] sm:$0xff] %v8045_v60  ;;  %526 = vst.msk [vmem:[#allocation2 + $0x1f0] sm:$0xff] %vm422_vm0, %v419_v0  ;;  %v8093_v35 = vsel %vm649_vm3, %v655_v19, %v9618_v21  ;;  %v8100_v44 = vld [vmem:[#allocation2 + $0x188] sm:$0xff]  ;;  %v1266_v56 = vrot.slane %v7933_v27, 1  ;;  %v1271_v58 = vrot.slane %v7958_v38, 1  ;;  %v8115_v62 = vld [vmem:[#allocation2 + $0x40] sm:$0xff] }
  0x6a   : > { %6298 = vmatprep.mubr.msk.bf16.mxu0 %vm422_vm0, %v7951_v32  ;;  %524 = vst.msk [vmem:[#allocation2 + $0x1d0] sm:$0xff] %vm422_vm0, %v417_v53  ;;  %9702 = vst [vmem:[#allocation16_spill] sm:$0xff] %v8076_v18  ;;  %v1261_v53 = vrot.slane %v7928_v25, 1  ;;  %v1276_v11 = vrot.slane %v7964_v40, 1  ;;  %v532_v22 = vld [vmem:[#allocation2 + $0x18] sm:$0x1]  ;;  %v1258_v31 = vsel %vm1245_vm2, %v1256_v43, %v1257_v47 }
  0x6b   : > { %9699 = vst [vmem:[#allocation13_spill] sm:$0xff] %v8036_v57  ;;  %v1281_v46 = vrot.slane %v8015_v37, 1  ;;  %v8130_v0 = vld [vmem:[#allocation2 + $0x1b0] sm:$0xff]  ;;  %v8135_v29 = vld [vmem:[#allocation2 + $0x1c8] sm:$0xff]  ;;  %v540_v13 = vld [vmem:[#allocation2 + $0x58] sm:$0x1] }
  0x6c   : > { %v544_v51 = vld [vmem:[#allocation2 + $0x78] sm:$0x1]  ;;  %v9710_v32 = vrot.slane %v7930_v26, 1 }
  0x6d   : > { %v8088_v34 = vld [vmem:[#allocation2 + $0x170] sm:$0xff]  ;;  %v552_v24 = vld [vmem:[#allocation2 + $0xb8] sm:$0x1] }
  0x6e   : > { %v8102_v45 = vld [vmem:[#allocation2 + $0x190] sm:$0xff]  ;;  %v8113_v61 = vpack.c.bf16 %v8088_v34, %v8086_v33  ;;  %v1263_v43 = vsel %vm1245_vm2, %v1261_v53, %v9710_v32  ;;  %v560_v3 = vld [vmem:[#allocation2 + $0xf8] sm:$0x1] }
  0x6f   : > { %v8061_v2 = vld [vmem:[#allocation2 + $0x128] sm:$0xff]  ;;  %v8122_v19 = vpack.c.bf16 %v8102_v45, %v8100_v44 }
  0x70   : > { %v8072_v17 = vpack.c.bf16 %v8063_v7, %v8061_v2  ;;  %9703 = vst [vmem:[#allocation17_spill] sm:$0xff] %v8113_v61  ;;  %v8128_v30 = vld [vmem:[#allocation2 + $0x1a8] sm:$0xff]  ;;  %v8157_v21 = vld [vmem:[#allocation2 + $0x1f0] sm:$0xff] }
  0x71   : > { %6299 = vmatmul.mubr.msk.bf16.gmra.mrb[8].mxu0 %vm422_vm0, %v7980_v52  ;;  %9704 = vst [vmem:[#allocation18_spill] sm:$0xff] %v8122_v19  ;;  %v8151_v36 = vpack.c.bf16 %v8130_v0, %v8128_v30  ;;  %v1264_v52 = vrot.slane %v544_v51, 1  ;;  %v9714_v51 = vrot.slane %v7966_v41, 1 }
  0x72   : > { %6302 = vmatprep.mubr.msk.bf16.mxu0 %vm422_vm0, %v7988_v55  ;;  %9701 = vst [vmem:[#allocation15_spill] sm:$0xff] %v8072_v17  ;;  %v548_v55 = vld [vmem:[#allocation2 + $0x98] sm:$0x1] }
  0x73   : > { %9705 = vst [vmem:[#allocation19_spill] sm:$0xff] %v8151_v36  ;;  %v1278_v53 = vsel %vm1245_vm2, %v1276_v11, %v9714_v51  ;;  %v568_v11 = vld [vmem:[#allocation2 + $0x138] sm:$0x1] }
  0x79   : > { %6303 = vmatmul.mubr.msk.bf16.gmra.mrb[12].mxu0 %vm422_vm0, %v8036_v57  ;;  %v8169_v57 = vpack.c.bf16 %v1255_v8, %v7921_v23  ;;  %v1259_v8 = vrot.slane %v540_v13, 1 }
  0x7a   : > { %6306 = vmatprep.mubr.msk.bf16.mxu0 %vm422_vm0, %v8045_v60  ;;  %v8155_v60 = vld [vmem:[#allocation2 + $0x1e8] sm:$0xff] }
  0x7b   : > { %9708 = vst [vmem:[#allocation21_spill] sm:$0xff] %v8169_v57  ;;  %v8177_v12 = vpack.c.bf16 %v8157_v21, %v8155_v60  ;;  %v9711_v57 = vrot.slane %v7935_v28, 1 }
  0x7d   : > { %v1268_v4 = vsel %vm1245_vm2, %v1266_v56, %v9711_v57  ;;  %v564_v56 = vld [vmem:[#allocation2 + $0x118] sm:$0x1] }
  0x81   : > { %6307 = vmatmul.mubr.msk.bf16.gmra.mrb[16].mxu0 %vm422_vm0, %v8072_v17  ;;  %v9707_v17 = vrot.slane %v7832_v9, 1  ;;  %v1269_v9 = vrot.slane %v548_v55, 1 }
  0x82   : > { %6310 = vmatprep.mubr.msk.bf16.mxu0 %vm422_vm0, %v8076_v18  ;;  %v8137_v18 = vld [vmem:[#allocation2 + $0x1d0] sm:$0xff] }
  0x83   : > { %v8161_v16 = vpack.c.bf16 %v8137_v18, %v8135_v29  ;;  %v8166_v54 = vsel %vm1245_vm2, %v1246_v1, %v9707_v17  ;;  %v9709_v23 = vmov %v9707_v17  ;;  %v1260_v17 = vsel %vm1245_vm2, %v1257_v47, %v1259_v8 }
  0x84   : > { %v8197_v37 = vpack.c.bf16 %v1260_v17, %v1258_v31  ;;  %v572_v17 = vld [vmem:[#allocation2 + $0x158] sm:$0x1] }
  0x85   : > { %9706 = vst [vmem:[#allocation20_spill] sm:$0xff] %v8161_v16 }
  0x89   : > { %6311 = vmatmul.mubr.msk.bf16.gmra.mrb[20].mxu0 %vm422_vm0, %v8113_v61  ;;  %v9713_v61 = vmov %v9710_v32 }
  0x8a   : > { %6314 = vmatprep.mubr.msk.bf16.mxu0 %vm422_vm0, %v8122_v19  ;;  %v1249_v19 = vrot.slane %v532_v22, 1  ;;  %v556_v22 = vld [vmem:[#allocation2 + $0xd8] sm:$0x1]  ;;  %v1265_v32 = vsel %vm1245_vm2, %v9713_v61, %v1264_v52  ;;  %v9717_v52 = vrot.slane %v8017_v42, 1 }
  0x8b   : > { %v1279_v57 = vrot.slane %v556_v22, 1  ;;  %v8207_v55 = vpack.c.bf16 %v1265_v32, %v1263_v43  ;;  %v9718_v43 = vmov %v9714_v51  ;;  %v576_v32 = vld [vmem:[#allocation2 + $0x178] sm:$0x1]  ;;  %v9719_v51 = vrot.slane %v8024_v49, 1 }
  0x8c   : > { %v8183_v1 = vsel %vm1245_vm2, %v9709_v23, %v1249_v19  ;;  %v9712_v19 = vrot.slane %v7960_v39, 1  ;;  %v1274_v23 = vrot.slane %v552_v24, 1  ;;  %v9715_v24 = vrot.slane %v7935_v28, 1 }
  0x8d   : > { %v1283_v61 = vsel %vm1245_vm2, %v1281_v46, %v9717_v52  ;;  %v9720_v46 = vrot.slane %v8022_v48, 1 }
  0x8e   : > { %v1273_v13 = vsel %vm1245_vm2, %v1271_v58, %v9712_v19  ;;  %v1270_v31 = vsel %vm1245_vm2, %v9715_v24, %v1269_v9  ;;  %v9716_v47 = vmov %v9712_v19  ;;  %v1280_v9 = vsel %vm1245_vm2, %v9718_v43, %v1279_v57 }
  0x8f   : > { %v1275_v58 = vsel %vm1245_vm2, %v9716_v47, %v1274_v23  ;;  %v8220_v8 = vpack.c.bf16 %v1270_v31, %v1268_v4  ;;  %v1284_v19 = vrot.slane %v560_v3, 1  ;;  %v8227_v23 = vpack.c.bf16 %v1280_v9, %v1278_v53 }
  0x90   : > { %v8222_v22 = vpack.c.bf16 %v1275_v58, %v1273_v13  ;;  %v1288_v24 = vsel %vm1245_vm2, %v9720_v46, %v9719_v51  ;;  %v1289_v47 = vrot.slane %v564_v56, 1  ;;  %v9721_v4 = vrot.slane %v8063_v7, 1  ;;  %v580_v51 = vld [vmem:[#allocation2 + $0x198] sm:$0x1] }
  0x91   : > { %6315 = vmatmul.mubr.msk.bf16.gmra.mrb[24].mxu0 %vm422_vm0, %v8151_v36  ;;  %v9722_v13 = vrot.slane %v8061_v2, 1  ;;  %v9723_v58 = vmov %v9717_v52  ;;  %v1294_v57 = vrot.slane %v568_v11, 1  ;;  %v9724_v53 = vrot.slane %v8068_v10, 1 }
  0x92   : > { %6318 = vmatprep.mubr.msk.bf16.mxu0 %vm422_vm0, %v8161_v16  ;;  %v1285_v3 = vsel %vm1245_vm2, %v9723_v58, %v1284_v19  ;;  %v9725_v52 = vrot.slane %v8066_v50, 1  ;;  %v1299_v9 = vrot.slane %v572_v17, 1  ;;  %v9727_v46 = vrot.slane %v8024_v49, 1  ;;  %v584_v58 = vld [vmem:[#allocation2 + $0x1b8] sm:$0x1] }
  0x93   : > { %v1293_v31 = vsel %vm1245_vm2, %v9722_v13, %v9721_v4  ;;  %v8247_v56 = vpack.c.bf16 %v1285_v3, %v1283_v61  ;;  %v9728_v4 = vrot.slane %v8088_v34, 1  ;;  %v9729_v13 = vrot.slane %v8086_v33, 1 }
  0x94   : > { %v1298_v43 = vsel %vm1245_vm2, %v9725_v52, %v9724_v53  ;;  %v1290_v16 = vsel %vm1245_vm2, %v9727_v46, %v1289_v47  ;;  %v1304_v19 = vrot.slane %v576_v32, 1  ;;  %v9731_v53 = vrot.slane %v8063_v7, 1 }
  0x95   : > { %9726 = vst [vmem:[#allocation22_spill] sm:$0xff] %v8247_v56  ;;  %v1303_v11 = vsel %vm1245_vm2, %v9729_v13, %v9728_v4  ;;  %v8257_v36 = vpack.c.bf16 %v1290_v16, %v1288_v24  ;;  %v9732_v61 = vrot.slane %v8068_v10, 1  ;;  %v9733_v47 = vrot.slane %v8102_v45, 1  ;;  %v588_v56 = vld [vmem:[#allocation2 + $0x1d8] sm:$0x1] }
  0x96   : > { %v1295_v17 = vsel %vm1245_vm2, %v9731_v53, %v1294_v57  ;;  %v9734_v52 = vrot.slane %v8100_v44, 1  ;;  %v592_v4 = vld [vmem:[#allocation2 + $0x1f8] sm:$0x1]  ;;  %v9735_v24 = vrot.slane %v8088_v34, 1  ;;  %v1309_v13 = vrot.slane %v580_v51, 1 }
  0x97   : > { %9730 = vst [vmem:[#allocation23_spill] sm:$0xff] %v8257_v36  ;;  %v1300_v3 = vsel %vm1245_vm2, %v9732_v61, %v1299_v9  ;;  %v8270_v32 = vpack.c.bf16 %v1295_v17, %v1293_v31  ;;  %v9736_v9 = vrot.slane %v8130_v0, 1  ;;  %v9737_v61 = vrot.slane %v8128_v30, 1 }
  0x98   : > { %v1308_v46 = vsel %vm1245_vm2, %v9734_v52, %v9733_v47  ;;  %v8272_v16 = vpack.c.bf16 %v1300_v3, %v1298_v43  ;;  %v1305_v57 = vsel %vm1245_vm2, %v9735_v24, %v1304_v19  ;;  %v1314_v47 = vrot.slane %v584_v58, 1 }
  0x99   : > { %v8277_v53 = vpack.c.bf16 %v1305_v57, %v1303_v11  ;;  %v1313_v36 = vsel %vm1245_vm2, %v9737_v61, %v9736_v9  ;;  %v9738_v52 = vrot.slane %v8137_v18, 1  ;;  %v9739_v31 = vrot.slane %v8135_v29, 1  ;;  %6319 = vmatmul.mubr.msk.bf16.gmra.mrb[28].mxu0 %vm422_vm0, %v8177_v12 }
  0x9a   : > { %v9740_v51 = vrot.slane %v8102_v45, 1  ;;  %v1319_v19 = vrot.slane %v588_v56, 1  ;;  %v9741_v17 = vrot.slane %v8157_v21, 1  ;;  %v9742_v3 = vrot.slane %v8155_v60, 1 }
  0x9b   : > { %v1318_v43 = vsel %vm1245_vm2, %v9739_v31, %v9738_v52  ;;  %v1324_v24 = vrot.slane %v592_v4, 1  ;;  %v9743_v57 = vrot.slane %v7893_v6, 7  ;;  %v9744_v9 = vrot.slane %v7891_v5, 7 }
  0x9c   : > { %v1310_v11 = vsel %vm1245_vm2, %v9740_v51, %v1309_v13  ;;  %v1323_v58 = vsel %vm1245_vm2, %v9742_v3, %v9741_v17  ;;  %v9745_v52 = vpack.c.bf16 %v8041_v59, %v8052_v63  ;;  %v9746_v56 = vrot.slane %v7902_v14, 7  ;;  %v541_v63 = vld [vmem:[#allocation2 + $0x60] sm:$0xff] }
  0x9d   : > { %v659_v61 = vsel %vm649_vm3, %v9744_v9, %v9743_v57  ;;  %v9747_v13 = vrot.slane %v8115_v62, 7  ;;  %v8313_v51 = vpack.c.bf16 %v1310_v11, %v1308_v46  ;;  %v9748_v4 = vrot.slane %v8130_v0, 1  ;;  %v545_v9 = vld [vmem:[#allocation2 + $0x80] sm:$0xff] }
  0x9e   : > { %6324 = vmatprep.mubr.msk.bf16.mxu0 %vm422_vm0, %v9745_v52  ;;  %v9749_v5 = vrot.slane %v7916_v20, 7  ;;  %v9750_v17 = vmov %v9746_v56  ;;  %v9751_v57 = vrot.slane %v8137_v18, 1  ;;  %v9752_v46 = vrot.slane %v8157_v21, 1 }
  0x9f   : > { %v662_v31 = vsel %vm649_vm3, %v9747_v13, %v9746_v56  ;;  %v1315_v6 = vsel %vm1245_vm2, %v9748_v4, %v1314_v47  ;;  %v8336_v14 = vpack.c.bf16 %v659_v61, %v8093_v35  ;;  %v666_v20 = vrot.slane %v7928_v25, 7  ;;  %v549_v35 = vld [vmem:[#allocation2 + $0xa0] sm:$0xff] }
  0xa0   : > { %v664_v59 = vsel %vm649_vm3, %v9750_v17, %v9749_v5  ;;  %v8323_v3 = vpack.c.bf16 %v1315_v6, %v1313_v36  ;;  %v1320_v62 = vsel %vm1245_vm2, %v9751_v57, %v1319_v19  ;;  %v1325_v11 = vsel %vm1245_vm2, %v9752_v46, %v1324_v24  ;;  %v557_v46 = vld [vmem:[#allocation2 + $0xe0] sm:$0xff] }
  0xa1   : > { %v8331_v52 = vpack.c.bf16 %v1320_v62, %v1318_v43  ;;  %v8333_v47 = vpack.c.bf16 %v1325_v11, %v1323_v58  ;;  %v668_v36 = vrot.slane %v7930_v26, 7  ;;  %v8340_v56 = vpack.c.bf16 %v664_v59, %v662_v31  ;;  %v8347_v43 = vld [vmem:[%s9613_s3 + $0x18] sm:$0xff]   ;;  %6325 = vmatmul.mubr.msk.bf16.vlgmr.msra.gmra.mrb[0].mxu0 %vm422_vm0, %v8336_v14  ;;  %v553_v58 = vld [vmem:[#allocation2 + $0xc0] sm:$0xff] }
  0xa2   : > { %v665_v13 = vrot.slane %v541_v63, 7  ;;  %v671_v19 = vrot.slane %v7933_v27, 7  ;;  %v673_v4 = vrot.slane %v7935_v28, 7  ;;  %v670_v24 = vrot.slane %v545_v9, 7  ;;  %6357 = vmatpush3.bf16.msra.mxu0 %v7907_v15  ;;  %v561_v11 = vld [vmem:[#allocation2 + $0x100] sm:$0xff] }
  0xa3   : > { %6328 = vmatprep.mubr.msk.bf16.mxu0 %vm422_vm0, %v8340_v56  ;;  %v669_v26 = vsel %vm649_vm3, %v666_v20, %v668_v36  ;;  %6390 = vmatprep.subr.bf16.mxu0 %v8347_v43  ;;  %v676_v31 = vrot.slane %v7958_v38, 7  ;;  %v678_v15 = vrot.slane %v7960_v39, 7  ;;  %v675_v5 = vrot.slane %v549_v35, 7  ;;  %v569_v35 = vld [vmem:[#allocation2 + $0x140] sm:$0xff] }
  0xa4   : > { %v667_v25 = vsel %vm649_vm3, %v665_v13, %v666_v20  ;;  %v672_v27 = vsel %vm649_vm3, %v670_v24, %v671_v19  ;;  %v674_v28 = vsel %vm649_vm3, %v671_v19, %v673_v4  ;;  %v681_v17 = vrot.slane %v7964_v40, 7 }
  0xa5   : > { %v8359_v61 = vpack.c.bf16 %v669_v26, %v667_v25  ;;  %v8363_v6 = vpack.c.bf16 %v674_v28, %v672_v27  ;;  %v683_v59 = vrot.slane %v7966_v41, 7  ;;  %v680_v63 = vrot.slane %v553_v58, 7  ;;  %v9753_v41 = vld [vmem:[#allocation12_spill] sm:$0xff] }
  0xa6   : > { %v677_v57 = vsel %vm649_vm3, %v675_v5, %v676_v31  ;;  %v679_v38 = vsel %vm649_vm3, %v676_v31, %v678_v15  ;;  %v686_v9 = vrot.slane %v9753_v41, 7  ;;  %v688_v20 = vrot.slane %v8017_v42, 7  ;;  %v565_v28 = vld [vmem:[#allocation2 + $0x120] sm:$0xff] }
  0xa7   : > { %v682_v39 = vsel %vm649_vm3, %v680_v63, %v681_v17  ;;  %v684_v62 = vsel %vm649_vm3, %v681_v17, %v683_v59  ;;  %v8375_v40 = vpack.c.bf16 %v679_v38, %v677_v57  ;;  %v685_v13 = vrot.slane %v557_v46, 7  ;;  %v573_v38 = vld [vmem:[#allocation2 + $0x160] sm:$0xff] }
  0xa8   : > { %v8379_v36 = vpack.c.bf16 %v684_v62, %v682_v39  ;;  %v691_v19 = vrot.slane %v8022_v48, 7  ;;  %v693_v4 = vrot.slane %v8024_v49, 7  ;;  %v690_v24 = vrot.slane %v561_v11, 7  ;;  %v577_v39 = vld [vmem:[#allocation2 + $0x180] sm:$0xff] }
  0xa9   : > { %6329 = vmatmul.mubr.msk.bf16.gmra.mrb[4].mxu0 %vm422_vm0, %v8359_v61  ;;  %v687_v25 = vsel %vm649_vm3, %v685_v13, %v686_v9  ;;  %v689_v26 = vsel %vm649_vm3, %v686_v9, %v688_v20  ;;  %v696_v49 = vrot.slane %v8061_v2, 7  ;;  %v698_v58 = vrot.slane %v8063_v7, 7 }
  0xaa   : > { %6332 = vmatprep.mubr.msk.bf16.mxu0 %vm422_vm0, %v8363_v6  ;;  %v692_v42 = vsel %vm649_vm3, %v690_v24, %v691_v19  ;;  %v694_v27 = vsel %vm649_vm3, %v691_v19, %v693_v4  ;;  %v8391_v48 = vpack.c.bf16 %v689_v26, %v687_v25  ;;  %v695_v15 = vrot.slane %v565_v28, 7  ;;  %v581_v4 = vld [vmem:[#allocation2 + $0x1a0] sm:$0xff]  ;;  %v310_v26 = vld [vmem:[%s7825_s15 + $0xf0] sm:$0xff] }
  0xab   : > { %v8395_v31 = vpack.c.bf16 %v694_v27, %v692_v42  ;;  %v701_v5 = vrot.slane %v8066_v50, 7  ;;  %v703_v17 = vrot.slane %v8068_v10, 7  ;;  %v700_v59 = vrot.slane %v569_v35, 7  ;;  %v585_v24 = vld [vmem:[#allocation2 + $0x1c0] sm:$0xff]  ;;  %v311_v42 = vld [vmem:[%s7825_s15 + $0xf8] sm:$0xff] }
  0xac   : > { %v697_v63 = vsel %vm649_vm3, %v695_v15, %v696_v49  ;;  %v699_v2 = vsel %vm649_vm3, %v696_v49, %v698_v58  ;;  %v706_v10 = vrot.slane %v8086_v33, 7  ;;  %v708_v62 = vrot.slane %v8088_v34, 7  ;;  %v9754_v35 = vld [vmem:[#allocation4_spill] sm:$0xff] }
  0xad   : > { %v702_v7 = vsel %vm649_vm3, %v700_v59, %v701_v5  ;;  %v704_v57 = vsel %vm649_vm3, %v701_v5, %v703_v17  ;;  %v8407_v50 = vpack.c.bf16 %v699_v2, %v697_v63  ;;  %v705_v11 = vrot.slane %v573_v38, 7  ;;  %v9755_v59 = vld [vmem:[#allocation5_spill] sm:$0xff]  ;;  %v589_v38 = vld [vmem:[#allocation2 + $0x1e0] sm:$0xff] }
  0xae   : > { %v8411_v46 = vpack.c.bf16 %v704_v57, %v702_v7  ;;  %v711_v41 = vrot.slane %v8100_v44, 7  ;;  %v713_v9 = vrot.slane %v8102_v45, 7  ;;  %v710_v20 = vrot.slane %v577_v39, 7 }
  0xaf   : > { %v707_v33 = vsel %vm649_vm3, %v705_v11, %v706_v10  ;;  %v709_v34 = vsel %vm649_vm3, %v706_v10, %v708_v62  ;;  %v716_v44 = vrot.slane %v8128_v30, 7  ;;  %v718_v45 = vrot.slane %v8130_v0, 7 }
  0xb0   : > { %v712_v13 = vsel %vm649_vm3, %v710_v20, %v711_v41  ;;  %v714_v19 = vsel %vm649_vm3, %v711_v41, %v713_v9  ;;  %v8425_v25 = vpack.c.bf16 %v709_v34, %v707_v33  ;;  %v715_v28 = vrot.slane %v581_v4, 7  ;;  %v9757_v34 = vld [vmem:[#allocation21_spill] sm:$0xff] }
  0xb1   : > { %6333 = vmatmul.mubr.msk.bf16.gmra.mrb[8].mxu0 %vm422_vm0, %v8375_v40  ;;  %v8429_v27 = vpack.c.bf16 %v714_v19, %v712_v13  ;;  %v349_v49 = vmul.f32 %v9754_v35, %v310_v26  ;;  %v350_v58 = vmul.f32 %v9754_v35, %v311_v42  ;;  %v721_v15 = vrot.slane %v8135_v29, 7  ;;  %v7427_v35 = vld [vmem:[%s9613_s3 + $0x30] sm:$0xff]  }
  0xb2   : > { %6336 = vmatprep.mubr.msk.bf16.mxu0 %vm422_vm0, %v8379_v36  ;;  %v723_v5 = vrot.slane %v8137_v18, 7  ;;  %v720_v17 = vrot.slane %v585_v24, 7  ;;  %v717_v63 = vsel %vm649_vm3, %v715_v28, %v716_v44  ;;  %v719_v2 = vsel %vm649_vm3, %v716_v44, %v718_v45  ;;  %v9760_v28 = vld [vmem:[#allocation6_spill] sm:$0xff] }
  0xb3   : > { %v388_v30 = vadd.f32 %v9755_v59, %v349_v49  ;;  %v389_v0 = vadd.f32 %v9755_v59, %v350_v58  ;;  %v8447_v39 = vpack.c.bf16 %v719_v2, %v717_v63  ;;  %v726_v10 = vrot.slane %v8155_v60, 7  ;;  %v9761_v49 = vld [vmem:[#allocation7_spill] sm:$0xff]  ;;  %v9762_v58 = vld [vmem:[#allocation8_spill] sm:$0xff]  ;;  %v9766_v59 = vld [vmem:[#allocation13_spill] sm:$0xff] }
  0xb4   : > { %v722_v29 = vsel %vm649_vm3, %v720_v17, %v721_v15  ;;  %v724_v18 = vsel %vm649_vm3, %v721_v15, %v723_v5  ;;  %v728_v62 = vrot.slane %v8157_v21, 7  ;;  %v725_v41 = vrot.slane %v589_v38, 7  ;;  %v7425_v21 = vld [vmem:[%s9613_s3 + $0x20] sm:$0xff]   ;;  %v9763_v15 = vld [vmem:[#allocation9_spill] sm:$0xff]  ;;  %v9764_v5 = vld [vmem:[#allocation10_spill] sm:$0xff] }
  0xb5   : > { %v420_v7 = vmax.f32 %v388_v30, 0.0  ;;  %v421_v57 = vmax.f32 %v389_v0, 0.0  ;;  %v8451_v11 = vpack.c.bf16 %v724_v18, %v722_v29  ;;  %v9756_v60 = vpack.c.bf16 %v8183_v1, %v8166_v54  ;;  %v9758_v54 = vld [vmem:[#allocation22_spill] sm:$0xff]  ;;  %v9759_v1 = vld [vmem:[#allocation23_spill] sm:$0xff]  ;;  %v9769_v63 = vld [vmem:[#allocation16_spill] sm:$0xff] }
  0xb6   : > { %v727_v9 = vsel %vm649_vm3, %v725_v41, %v726_v10  ;;  %v729_v20 = vsel %vm649_vm3, %v726_v10, %v728_v62  ;;  %v9765_v17 = vld [vmem:[#allocation11_spill] sm:$0xff]  ;;  %v9767_v30 = vld [vmem:[#allocation14_spill] sm:$0xff]  ;;  %v9770_v2 = vld [vmem:[#allocation17_spill] sm:$0xff] }
  0xb7   : > { %527 = vst.msk [vmem:[#allocation2 + $0x208] sm:$0xff] %vm422_vm0, %v420_v7  ;;  %528 = vst.msk [vmem:[#allocation2 + $0x210] sm:$0xff] %vm422_vm0, %v421_v57  ;;  %v8459_v33 = vpack.c.bf16 %v729_v20, %v727_v9  ;;  %v9768_v0 = vld [vmem:[#allocation15_spill] sm:$0xff]  ;;  %v9771_v7 = vld [vmem:[#allocation18_spill] sm:$0xff] }
  0xb8   : > { %v9772_v57 = vld [vmem:[#allocation19_spill] sm:$0xff]  ;;  %v9773_v29 = vld [vmem:[#allocation20_spill] sm:$0xff] }
  0xb9   : > { %6337 = vmatmul.mubr.msk.bf16.gmra.mrb[12].mxu0 %vm422_vm0, %v8391_v48  ;;  %v7428_v38 = vld [vmem:[%s9613_s3 + $0x38] sm:$0xff]  }
  0xba   : > { %6340 = vmatprep.mubr.msk.bf16.mxu0 %vm422_vm0, %v8395_v31  ;;  %v596_v10 = vld [vmem:[#allocation2 + $0x218] sm:$0x1] }
  0xbb   : > { %v2050_v9 = vrot.slane %v596_v10, 1 }
  0xbe   : > { %v594_v13 = vld [vmem:[#allocation2 + $0x208] sm:$0xff]  ;;  %v595_v19 = vld [vmem:[#allocation2 + $0x210] sm:$0xff] }
  0xbf   : > { %v1628_v24 = vrot.slane %v594_v13, 7  ;;  %v1630_v44 = vrot.slane %v595_v19, 7  ;;  %v8573_v18 = vpack.c.bf16 %v595_v19, %v594_v13  ;;  %v2047_v62 = vrot.slane %v594_v13, 1  ;;  %v8742_v13 = vld [vmem:[%s9615_s5] ss:$0 sm:$0xff] }
  0xc0   : > { %v2048_v41 = vrot.slane %v595_v19, 1 }
  0xc1   : > { %6341 = vmatmul.mubr.msk.bf16.gmra.mrb[16].mxu0 %vm422_vm0, %v8407_v50  ;;  %v1631_v26 = vsel %vm649_vm3, %v1628_v24, %v1630_v44 }
  0xc2   : > { %6344 = vmatprep.mubr.msk.bf16.mxu0 %vm422_vm0, %v8411_v46  ;;  %v2049_v20 = vsel %vm1245_vm2, %v2047_v62, %v2048_v41 }
  0xc9   : > { %6345 = vmatmul.mubr.msk.bf16.gmra.mrb[20].mxu0 %vm422_vm0, %v8425_v25 }
  0xca   : > { %6348 = vmatprep.mubr.msk.bf16.mxu0 %vm422_vm0, %v8429_v27 }
  0xd1   : > { %6349 = vmatmul.mubr.msk.bf16.gmra.mrb[24].mxu0 %vm422_vm0, %v8447_v39 }
  0xd2   : > { %6352 = vmatprep.mubr.msk.bf16.mxu0 %vm422_vm0, %v8451_v11 }
  0xd9   : > { %6353 = vmatmul.mubr.msk.bf16.gmra.mrb[28].mxu0 %vm422_vm0, %v8459_v33 }
  0xda   : > { %6358 = vmatprep.mubr.msk.bf16.mxu0 %vm422_vm0, %v9756_v60  ;;  %v2051_v60 = vsel %vm1245_vm2, %v2048_v41, %v2050_v9  ;;  %v3114_v9 = vld [vmem:[#allocation3 + $0x18] sm:$0x1] }
  0xe1   : > { %6359 = vmatmul.mubr.msk.bf16.vlgmr.msra.gmra.mrb[0].mxu0 %vm422_vm0, %v9757_v34 }
  0xe2   : > { %6391 = vmatpush3.bf16.msra.mxu0 %v8347_v43  ;;  %6362 = vmatprep.mubr.msk.bf16.mxu0 %vm422_vm0, %v8197_v37  ;;  %v7426_v43 = vld [vmem:[%s9613_s3 + $0x28] sm:$0xff]  }
  0xe3   : > { %6424 = vmatprep.subr.bf16.mxu0 %v7425_v21 }
  0xe9   : > { %6363 = vmatmul.mubr.msk.bf16.gmra.mrb[4].mxu0 %vm422_vm0, %v8207_v55 }
  0xea   : > { %6366 = vmatprep.mubr.msk.bf16.mxu0 %vm422_vm0, %v8220_v8 }
  0xf1   : > { %6367 = vmatmul.mubr.msk.bf16.gmra.mrb[8].mxu0 %vm422_vm0, %v8222_v22 }
  0xf2   : > { %6370 = vmatprep.mubr.msk.bf16.mxu0 %vm422_vm0, %v8227_v23 }
  0xf9   : > { %6371 = vmatmul.mubr.msk.bf16.gmra.mrb[12].mxu0 %vm422_vm0, %v9758_v54 }
  0xfa   : > { %6374 = vmatprep.mubr.msk.bf16.mxu0 %vm422_vm0, %v9759_v1 }
 0x101   : > { %6375 = vmatmul.mubr.msk.bf16.gmra.mrb[16].mxu0 %vm422_vm0, %v8270_v32 }
 0x102   : > { %6378 = vmatprep.mubr.msk.bf16.mxu0 %vm422_vm0, %v8272_v16 }
 0x109   : > { %6379 = vmatmul.mubr.msk.bf16.gmra.mrb[20].mxu0 %vm422_vm0, %v8277_v53 }
 0x10a   : > { %6382 = vmatprep.mubr.msk.bf16.mxu0 %vm422_vm0, %v8313_v51 }
 0x111   : > { %6383 = vmatmul.mubr.msk.bf16.gmra.mrb[24].mxu0 %vm422_vm0, %v8323_v3 }
 0x112   : > { %6386 = vmatprep.mubr.msk.bf16.mxu0 %vm422_vm0, %v8331_v52 }
 0x119   : > { %6387 = vmatmul.mubr.msk.bf16.gmra.mrb[28].mxu0 %vm422_vm0, %v8333_v47 }
 0x11a   : > { %6392 = vmatprep.mubr.msk.bf16.mxu0 %vm422_vm0, %v8336_v14  ;;  %v593_v14 = vld [vmem:[#allocation2 + $0x200] sm:$0xff] }
 0x11b   : > { %v1627_v4 = vrot.slane %v593_v14, 7 }
 0x11d   : > { %v1629_v45 = vsel %vm649_vm3, %v1627_v4, %v1628_v24 }
 0x11e   : > { %v8536_v42 = vpack.c.bf16 %v1631_v26, %v1629_v45 }
 0x121   : > { %6393 = vmatmul.mubr.msk.bf16.vlgmr.msra.gmra.mrb[0].mxu0 %vm422_vm0, %v8340_v56 }
 0x122   : > { %6425 = vmatpush3.bf16.msra.mxu0 %v7425_v21  ;;  %6396 = vmatprep.mubr.msk.bf16.mxu0 %vm422_vm0, %v8359_v61  ;;  %v8612_v21 = vpack.c.bf16 %v2051_v60, %v2049_v20 }
 0x123   : > { %6458 = vmatprep.subr.bf16.mxu0 %v7426_v43 }
 0x129   : > { %6397 = vmatmul.mubr.msk.bf16.gmra.mrb[4].mxu0 %vm422_vm0, %v8363_v6 }
 0x12a   : > { %6400 = vmatprep.mubr.msk.bf16.mxu0 %vm422_vm0, %v8375_v40 }
 0x131   : > { %6401 = vmatmul.mubr.msk.bf16.gmra.mrb[8].mxu0 %vm422_vm0, %v8379_v36 }
 0x132   : > { %6404 = vmatprep.mubr.msk.bf16.mxu0 %vm422_vm0, %v8391_v48 }
 0x139   : > { %6405 = vmatmul.mubr.msk.bf16.gmra.mrb[12].mxu0 %vm422_vm0, %v8395_v31 }
 0x13a   : > { %6408 = vmatprep.mubr.msk.bf16.mxu0 %vm422_vm0, %v8407_v50 }
 0x141   : > { %6409 = vmatmul.mubr.msk.bf16.gmra.mrb[16].mxu0 %vm422_vm0, %v8411_v46 }
 0x142   : > { %6412 = vmatprep.mubr.msk.bf16.mxu0 %vm422_vm0, %v8425_v25 }
 0x149   : > { %6413 = vmatmul.mubr.msk.bf16.gmra.mrb[20].mxu0 %vm422_vm0, %v8429_v27 }
 0x14a   : > { %6416 = vmatprep.mubr.msk.bf16.mxu0 %vm422_vm0, %v8447_v39 }
 0x151   : > { %6417 = vmatmul.mubr.msk.bf16.gmra.mrb[24].mxu0 %vm422_vm0, %v8451_v11 }
 0x152   : > { %6420 = vmatprep.mubr.msk.bf16.mxu0 %vm422_vm0, %v8459_v33 }
 0x159   : > { %6421 = vmatmul.mubr.msk.bf16.gmra.mrb[28].mxu0 %vm422_vm0, %v8536_v42 }
 0x15a   : > { %6426 = vmatprep.mubr.msk.bf16.mxu0 %vm422_vm0, %v9760_v28 }
 0x161   : > { %6427 = vmatmul.mubr.msk.bf16.vlgmr.msra.gmra.mrb[0].mxu0 %vm422_vm0, %v9761_v49 }
 0x162   : > { %6459 = vmatpush3.bf16.msra.mxu0 %v7426_v43  ;;  %6430 = vmatprep.mubr.msk.bf16.mxu0 %vm422_vm0, %v9762_v58  ;;  %v8737_v43 = vld [vmem:[%s9614_s4] ss:$0 sm:$0xff] }
 0x163   : > { %6492 = vmatprep.subr.bf16.mxu0 %v7427_v35 }
 0x169   : > { %6431 = vmatmul.mubr.msk.bf16.gmra.mrb[4].mxu0 %vm422_vm0, %v9763_v15 }
 0x16a   : > { %6434 = vmatprep.mubr.msk.bf16.mxu0 %vm422_vm0, %v9764_v5 }
 0x171   : > { %6435 = vmatmul.mubr.msk.bf16.gmra.mrb[8].mxu0 %vm422_vm0, %v9765_v17 }
 0x172   : > { %6438 = vmatprep.mubr.msk.bf16.mxu0 %vm422_vm0, %v9766_v59 }
 0x179   : > { %6439 = vmatmul.mubr.msk.bf16.gmra.mrb[12].mxu0 %vm422_vm0, %v9767_v30 }
 0x17a   : > { %6442 = vmatprep.mubr.msk.bf16.mxu0 %vm422_vm0, %v9768_v0 }
 0x181   : > { %6443 = vmatmul.mubr.msk.bf16.gmra.mrb[16].mxu0 %vm422_vm0, %v9769_v63 }
 0x182   : > { %6446 = vmatprep.mubr.msk.bf16.mxu0 %vm422_vm0, %v9770_v2 }
 0x189   : > { %6447 = vmatmul.mubr.msk.bf16.gmra.mrb[20].mxu0 %vm422_vm0, %v9771_v7 }
 0x18a   : > { %6450 = vmatprep.mubr.msk.bf16.mxu0 %vm422_vm0, %v9772_v57 }
 0x191   : > { %6451 = vmatmul.mubr.msk.bf16.gmra.mrb[24].mxu0 %vm422_vm0, %v9773_v29 }
 0x192   : > { %6454 = vmatprep.mubr.msk.bf16.mxu0 %vm422_vm0, %v8177_v12 }
 0x199   : > { %6455 = vmatmul.mubr.msk.bf16.gmra.mrb[28].mxu0 %vm422_vm0, %v8573_v18 }
 0x19a   : > { %6460 = vmatprep.mubr.msk.bf16.mxu0 %vm422_vm0, %v9757_v34  ;;  %v7429_v34 = vld [vmem:[%s9613_s3 + $0x40] sm:$0xff]  }
 0x1a1   : > { %6461 = vmatmul.mubr.msk.bf16.vlgmr.msra.gmra.mrb[0].mxu0 %vm422_vm0, %v8197_v37 }
 0x1a2   : > { %6493 = vmatpush3.bf16.msra.mxu0 %v7427_v35  ;;  %6464 = vmatprep.mubr.msk.bf16.mxu0 %vm422_vm0, %v8207_v55 }
 0x1a3   : > { %6526 = vmatprep.subr.bf16.mxu0 %v7428_v38 }
 0x1a9   : > { %6465 = vmatmul.mubr.msk.bf16.gmra.mrb[4].mxu0 %vm422_vm0, %v8220_v8 }
 0x1aa   : > { %6468 = vmatprep.mubr.msk.bf16.mxu0 %vm422_vm0, %v8222_v22 }
 0x1b1   : > { %6469 = vmatmul.mubr.msk.bf16.gmra.mrb[8].mxu0 %vm422_vm0, %v8227_v23 }
 0x1b2   : > { %6472 = vmatprep.mubr.msk.bf16.mxu0 %vm422_vm0, %v9758_v54 }
 0x1b9   : > { %6473 = vmatmul.mubr.msk.bf16.gmra.mrb[12].mxu0 %vm422_vm0, %v9759_v1 }
 0x1ba   : > { %6476 = vmatprep.mubr.msk.bf16.mxu0 %vm422_vm0, %v8270_v32 }
 0x1c1   : > { %6477 = vmatmul.mubr.msk.bf16.gmra.mrb[16].mxu0 %vm422_vm0, %v8272_v16 }
 0x1c2   : > { %6480 = vmatprep.mubr.msk.bf16.mxu0 %vm422_vm0, %v8277_v53 }
 0x1c9   : > { %6481 = vmatmul.mubr.msk.bf16.gmra.mrb[20].mxu0 %vm422_vm0, %v8313_v51 }
 0x1ca   : > { %6484 = vmatprep.mubr.msk.bf16.mxu0 %vm422_vm0, %v8323_v3 }
 0x1d1   : > { %6485 = vmatmul.mubr.msk.bf16.gmra.mrb[24].mxu0 %vm422_vm0, %v8331_v52 }
 0x1d2   : > { %6488 = vmatprep.mubr.msk.bf16.mxu0 %vm422_vm0, %v8333_v47 }
 0x1d9   : > { %6489 = vmatmul.mubr.msk.bf16.gmra.mrb[28].mxu0 %vm422_vm0, %v8612_v21 }
 0x1da   : > { %6494 = vmatprep.mubr.msk.bf16.mxu0 %vm422_vm0, %v8340_v56  ;;  %v597_v56 = vld [vmem:[#allocation2 + $0x220] sm:$0xff] }
 0x1e1   : > { %6495 = vmatmul.mubr.msk.bf16.vlgmr.msra.gmra.mrb[0].mxu0 %vm422_vm0, %v8359_v61  ;;  %v598_v61 = vld [vmem:[#allocation2 + $0x228] sm:$0xff] }
 0x1e2   : > { %6527 = vmatpush3.bf16.msra.mxu0 %v7428_v38  ;;  %6498 = vmatprep.mubr.msk.bf16.mxu0 %vm422_vm0, %v8363_v6  ;;  %v599_v6 = vld [vmem:[#allocation2 + $0x230] sm:$0xff] }
 0x1e3   : > { %6560 = vmatprep.subr.bf16.mxu0 %v7429_v34 }
 0x1e9   : > { %6499 = vmatmul.mubr.msk.bf16.gmra.mrb[4].mxu0 %vm422_vm0, %v8375_v40  ;;  %v2263_v40 = vrot.slane %v597_v56, 7 }
 0x1ea   : > { %6502 = vmatprep.mubr.msk.bf16.mxu0 %vm422_vm0, %v8379_v36  ;;  %v2264_v36 = vrot.slane %v598_v61, 7 }
 0x1f1   : > { %6503 = vmatmul.mubr.msk.bf16.gmra.mrb[8].mxu0 %vm422_vm0, %v8391_v48  ;;  %v2266_v48 = vrot.slane %v599_v6, 7 }
 0x1f2   : > { %6506 = vmatprep.mubr.msk.bf16.mxu0 %vm422_vm0, %v8395_v31  ;;  %v2265_v31 = vsel %vm649_vm3, %v2263_v40, %v2264_v36 }
 0x1f9   : > { %6507 = vmatmul.mubr.msk.bf16.gmra.mrb[12].mxu0 %vm422_vm0, %v8407_v50  ;;  %v2267_v50 = vsel %vm649_vm3, %v2264_v36, %v2266_v48 }
 0x1fa   : > { %6510 = vmatprep.mubr.msk.bf16.mxu0 %vm422_vm0, %v8411_v46  ;;  %v2270_v46 = vpack.c.bf16 %v2267_v50, %v2265_v31 }
 0x201   : > { %6511 = vmatmul.mubr.msk.bf16.gmra.mrb[16].mxu0 %vm422_vm0, %v8425_v25  ;;  %v2476_v25 = vpack.c.bf16 %v599_v6, %v598_v61 }
 0x202   : > { %6514 = vmatprep.mubr.msk.bf16.mxu0 %vm422_vm0, %v8429_v27 }
 0x209   : > { %6515 = vmatmul.mubr.msk.bf16.gmra.mrb[20].mxu0 %vm422_vm0, %v8447_v39  ;;  %v3111_v39 = vld [vmem:[#allocation3] sm:$0xff] }
 0x20a   : > { %6518 = vmatprep.mubr.msk.bf16.mxu0 %vm422_vm0, %v8451_v11 }
 0x211   : > { %6519 = vmatmul.mubr.msk.bf16.gmra.mrb[24].mxu0 %vm422_vm0, %v8459_v33  ;;  %v3231_v33 = vrot.slane %v3111_v39, 7 }
 0x212   : > { %6522 = vmatprep.mubr.msk.bf16.mxu0 %vm422_vm0, %v8536_v42 }
 0x219   : > { %6523 = vmatmul.mubr.msk.bf16.gmra.mrb[28].mxu0 %vm422_vm0, %v2270_v46 }
 0x21a   : > { %6528 = vmatprep.mubr.msk.bf16.mxu0 %vm422_vm0, %v9761_v49 }
 0x221   : > { %6529 = vmatmul.mubr.msk.bf16.vlgmr.msra.gmra.mrb[0].mxu0 %vm422_vm0, %v9762_v58 }
 0x222   : > { %6561 = vmatpush3.bf16.msra.mxu0 %v7429_v34  ;;  %6532 = vmatprep.mubr.msk.bf16.mxu0 %vm422_vm0, %v9763_v15  ;;  %v3829_v34 = vrot.slane %v3114_v9, 1 }
 0x229   : > { %6533 = vmatmul.mubr.msk.bf16.gmra.mrb[4].mxu0 %vm422_vm0, %v9764_v5 }
 0x22a   : > { %6536 = vmatprep.mubr.msk.bf16.mxu0 %vm422_vm0, %v9765_v17 }
 0x231   : > { %6537 = vmatmul.mubr.msk.bf16.gmra.mrb[8].mxu0 %vm422_vm0, %v9766_v59 }
 0x232   : > { %6540 = vmatprep.mubr.msk.bf16.mxu0 %vm422_vm0, %v9767_v30 }
 0x239   : > { %6541 = vmatmul.mubr.msk.bf16.gmra.mrb[12].mxu0 %vm422_vm0, %v9768_v0 }
 0x23a   : > { %6544 = vmatprep.mubr.msk.bf16.mxu0 %vm422_vm0, %v9769_v63 }
 0x241   : > { %6545 = vmatmul.mubr.msk.bf16.gmra.mrb[16].mxu0 %vm422_vm0, %v9770_v2 }
 0x242   : > { %6548 = vmatprep.mubr.msk.bf16.mxu0 %vm422_vm0, %v9771_v7 }
 0x249   : > { %6549 = vmatmul.mubr.msk.bf16.gmra.mrb[20].mxu0 %vm422_vm0, %v9772_v57 }
 0x24a   : > { %6552 = vmatprep.mubr.msk.bf16.mxu0 %vm422_vm0, %v9773_v29 }
 0x251   : > { %6553 = vmatmul.mubr.msk.bf16.gmra.mrb[24].mxu0 %vm422_vm0, %v8177_v12  ;;  %v600_v12 = vld [vmem:[#allocation2 + $0x238] sm:$0x1] }
 0x252   : > { %6556 = vmatprep.mubr.msk.bf16.mxu0 %vm422_vm0, %v8573_v18 }
 0x259   : > { %6557 = vmatmul.mubr.msk.bf16.gmra.mrb[28].mxu0 %vm422_vm0, %v2476_v25 }
 0x25a   : > { %6562 = vmatprep.mubr.msk.bf16.mxu0 %vm422_vm0, %v8197_v37  ;;  %v2683_v37 = vrot.slane %v598_v61, 1 }
 0x261   : > { %6563 = vmatmul.mubr.msk.bf16.vlgmr.msra.gmra.mrb[0].mxu0 %vm422_vm0, %v8207_v55  ;;  %v2684_v55 = vrot.slane %v599_v6, 1  ;;  %v3118_v6 = vld [vmem:[#allocation3 + $0x38] sm:$0x1] }
 0x262   : > { %6566 = vmatprep.mubr.msk.bf16.mxu0 %vm422_vm0, %v8220_v8  ;;  %v2686_v8 = vrot.slane %v600_v12, 1 }
 0x269   : > { %6567 = vmatmul.mubr.msk.bf16.gmra.mrb[4].mxu0 %vm422_vm0, %v8222_v22  ;;  %v2685_v22 = vsel %vm1245_vm2, %v2683_v37, %v2684_v55 }
 0x26a   : > { %6570 = vmatprep.mubr.msk.bf16.mxu0 %vm422_vm0, %v8227_v23  ;;  %v2687_v23 = vsel %vm1245_vm2, %v2684_v55, %v2686_v8  ;;  %v3834_v8 = vrot.slane %v3118_v6, 1 }
 0x271   : > { %6571 = vmatmul.mubr.msk.bf16.gmra.mrb[8].mxu0 %vm422_vm0, %v9758_v54 }
 0x272   : > { %6574 = vmatprep.mubr.msk.bf16.mxu0 %vm422_vm0, %v9759_v1 }
 0x279   : > { %6575 = vmatmul.mubr.msk.bf16.gmra.mrb[12].mxu0 %vm422_vm0, %v8270_v32  ;;  %v2690_v32 = vpack.c.bf16 %v2687_v23, %v2685_v22 }
 0x27a   : > { %6578 = vmatprep.mubr.msk.bf16.mxu0 %vm422_vm0, %v8272_v16  ;;  %v7430_v16 = vld [vmem:[%s9616_s6 + $0x8] sm:$0xff]  }
 0x27b   : > { %6594 = vmatprep.subr.bf16.mxu1 %v7430_v16 }
 0x27c   : > { %6595 = vmatpush3.bf16.msra.mxu1 %v7430_v16 }
 0x281   : > { %6579 = vmatmul.mubr.msk.bf16.gmra.mrb[16].mxu0 %vm422_vm0, %v8277_v53  ;;  %v3112_v53 = vld [vmem:[#allocation3 + $0x8] sm:$0xff] }
 0x282   : > { %6582 = vmatprep.mubr.msk.bf16.mxu0 %vm422_vm0, %v8313_v51  ;;  %v3113_v51 = vld [vmem:[#allocation3 + $0x10] sm:$0xff]  ;;  %v3826_v0 = vrot.slane %v3112_v53, 1 }
 0x283   : > { %v3234_v27 = vrot.slane %v3113_v51, 7  ;;  %v3827_v63 = vrot.slane %v3113_v51, 1 }
 0x285   : > { %v8763_v20 = vsel %vm1245_vm2, %v3826_v0, %v3827_v63  ;;  %v8771_v48 = vsel %vm1245_vm2, %v3827_v63, %v3829_v34 }
 0x289   : > { %6583 = vmatmul.mubr.msk.bf16.gmra.mrb[20].mxu0 %vm422_vm0, %v8323_v3  ;;  %v3361_v3 = vpack.c.bf16 %v3113_v51, %v3112_v53  ;;  %v8794_v51 = vld [vmem:[%s9616_s6 + $0x10] sm:$0xff]  }
 0x28a   : > { %6586 = vmatprep.mubr.msk.bf16.mxu0 %vm422_vm0, %v8331_v52  ;;  %v8723_v52 = vld [vmem:[%s9616_s6] sm:$0xff]  }
 0x28b   : > { %6596 = vmatprep.mubr.msk.bf16.mxu1 %vm422_vm0, %v3361_v3  ;;  %6628 = vmatprep.subr.bf16.mxu1 %v8723_v52 }
 0x291   : > { %6587 = vmatmul.mubr.msk.bf16.gmra.mrb[24].mxu0 %vm422_vm0, %v8333_v47  ;;  %v3232_v47 = vrot.slane %v3112_v53, 7 }
 0x292   : > { %6590 = vmatprep.mubr.msk.bf16.mxu0 %vm422_vm0, %v8612_v21 }
 0x293   : > { %v8727_v11 = vsel %vm649_vm3, %v3232_v47, %v3234_v27  ;;  %v8730_v54 = vsel %vm649_vm3, %v3231_v33, %v3232_v47 }
 0x299   : > { %6591 = vmatmul.mubr.msk.bf16.gmra.mrb[28].mxu0 %vm422_vm0, %v2690_v32 }
 0x334   : > { %v6564_v14 = vpop.f32.mrb[0].mxu0 }
 0x335   : > { %v2905_v19 = vmul.f32 %v6564_v14, %v8737_v43  ;;  %v2737_v4 = vpop.f32.mrb[1].mxu0 }
 0x336   : > { %v2903_v24 = vmul.f32 %v8737_v43, %v2737_v4  ;;  %v6565_v44 = vpop.f32.mrb[2].mxu0 }
 0x337   : > { %v2944_v45 = vadd.f32 %v8742_v13, %v2905_v19  ;;  %v2906_v26 = vmul.f32 %v6565_v44, %v8737_v43  ;;  %v2740_v42 = vpop.f32.mrb[3].mxu0 }
 0x338   : > { %v2942_v28 = vadd.f32 %v8742_v13, %v2903_v24  ;;  %v2904_v35 = vmul.f32 %v8737_v43, %v2740_v42 }
 0x339   : > { %v2976_v49 = vmax.f32 %v2944_v45, 0.0  ;;  %v2945_v58 = vadd.f32 %v8742_v13, %v2906_v26 }
 0x33a   : > { %v2974_v15 = vmax.f32 %v2942_v28, 0.0  ;;  %v2943_v5 = vadd.f32 %v8742_v13, %v2904_v35 }
 0x33b   : > { %3081 = vst.msk [vmem:[#allocation3 + $0x48] sm:$0xff] %vm422_vm0, %v2976_v49  ;;  %v2977_v17 = vmax.f32 %v2945_v58, 0.0 }
 0x33c   : > { %3079 = vst.msk [vmem:[#allocation3 + $0x28] sm:$0xff] %vm422_vm0, %v2974_v15  ;;  %v2975_v59 = vmax.f32 %v2943_v5, 0.0  ;;  %v6568_v30 = vpop.f32.mrb[4].mxu0  ;;  %v3122_v15 = vld [vmem:[#allocation3 + $0x58] sm:$0x1] }
 0x33d   : > { %3082 = vst.msk [vmem:[#allocation3 + $0x50] sm:$0xff] %vm422_vm0, %v2977_v17  ;;  %v2909_v2 = vmul.f32 %v6568_v30, %v8737_v43  ;;  %v2753_v7 = vpop.f32.mrb[5].mxu0 }
 0x33e   : > { %3080 = vst.msk [vmem:[#allocation3 + $0x30] sm:$0xff] %vm422_vm0, %v2975_v59  ;;  %v2907_v57 = vmul.f32 %v8737_v43, %v2753_v7  ;;  %v6569_v29 = vpop.f32.mrb[6].mxu0 }
 0x33f   : > { %v2948_v18 = vadd.f32 %v8742_v13, %v2909_v2  ;;  %v2910_v38 = vmul.f32 %v6569_v29, %v8737_v43  ;;  %v2756_v10 = vpop.f32.mrb[7].mxu0 }
 0x340   : > { %v2946_v62 = vadd.f32 %v8742_v13, %v2907_v57  ;;  %v2908_v41 = vmul.f32 %v8737_v43, %v2756_v10  ;;  %v3839_v10 = vrot.slane %v3122_v15, 1 }
 0x341   : > { %v2980_v60 = vmax.f32 %v2948_v18, 0.0  ;;  %v2949_v21 = vadd.f32 %v8742_v13, %v2910_v38 }
 0x342   : > { %v2978_v56 = vmax.f32 %v2946_v62, 0.0  ;;  %v2947_v61 = vadd.f32 %v8742_v13, %v2908_v41  ;;  %v8789_v53 = vld [vmem:[#allocation3 + $0x48] sm:$0xff] }
 0x343   : > { %3085 = vst.msk [vmem:[#allocation3 + $0x88] sm:$0xff] %vm422_vm0, %v2980_v60  ;;  %v2981_v40 = vmax.f32 %v2949_v21, 0.0  ;;  %v8768_v36 = vld [vmem:[#allocation3 + $0x28] sm:$0xff]  ;;  %v3836_v35 = vrot.slane %v8789_v53, 1 }
 0x344   : > { %3083 = vst.msk [vmem:[#allocation3 + $0x68] sm:$0xff] %vm422_vm0, %v2978_v56  ;;  %v2979_v31 = vmax.f32 %v2947_v61, 0.0  ;;  %v6572_v50 = vpop.f32.mrb[8].mxu0  ;;  %v8774_v46 = vld [vmem:[#allocation3 + $0x50] sm:$0xff]  ;;  %v3831_v16 = vrot.slane %v8768_v36, 1 }
 0x345   : > { %3086 = vst.msk [vmem:[#allocation3 + $0x90] sm:$0xff] %vm422_vm0, %v2981_v40  ;;  %v2913_v12 = vmul.f32 %v6572_v50, %v8737_v43  ;;  %v2769_v37 = vpop.f32.mrb[9].mxu0  ;;  %v8780_v55 = vld [vmem:[#allocation3 + $0x30] sm:$0xff]  ;;  %v8801_v33 = vpack.c.bf16 %v8774_v46, %v8789_v53  ;;  %v3837_v4 = vrot.slane %v8774_v46, 1  ;;  %v3126_v61 = vld [vmem:[#allocation3 + $0x78] sm:$0x1] }
 0x346   : > { %3084 = vst.msk [vmem:[#allocation3 + $0x70] sm:$0xff] %vm422_vm0, %v2979_v31  ;;  %v2911_v22 = vmul.f32 %v8737_v43, %v2769_v37  ;;  %v6573_v23 = vpop.f32.mrb[10].mxu0  ;;  %v8786_v32 = vpack.c.bf16 %v8780_v55, %v8768_v36  ;;  %v3832_v39 = vrot.slane %v8780_v55, 1 }
 0x347   : > { %v2952_v3 = vadd.f32 %v8742_v13, %v2913_v12  ;;  %v2914_v47 = vmul.f32 %v6573_v23, %v8737_v43  ;;  %v2772_v27 = vpop.f32.mrb[11].mxu0  ;;  %9775 = vst [vmem:[#allocation4_spill] sm:$0xff] %v8801_v33  ;;  %v3838_v59 = vsel %vm1245_vm2, %v3836_v35, %v3837_v4  ;;  %v3840_v12 = vsel %vm1245_vm2, %v3837_v4, %v3839_v10 }
 0x348   : > { %9774 = vst [vmem:[#allocation12_spill] sm:$0xff] %v8786_v32  ;;  %v2950_v14 = vadd.f32 %v8742_v13, %v2911_v22  ;;  %v2912_v19 = vmul.f32 %v8737_v43, %v2772_v27  ;;  %6597 = vmatmul.mubr.msk.bf16.vlgmr.msra.gmra.mrb[0].mxu1 %vm422_vm0, %v8786_v32  ;;  %v3833_v45 = vsel %vm1245_vm2, %v3831_v16, %v3832_v39  ;;  %v3844_v23 = vrot.slane %v3126_v61, 1  ;;  %v3130_v16 = vld [vmem:[#allocation3 + $0x98] sm:$0x1] }
 0x349   : > { %v2984_v24 = vmax.f32 %v2952_v3, 0.0  ;;  %v2953_v44 = vadd.f32 %v8742_v13, %v2914_v47  ;;  %v3835_v26 = vsel %vm1245_vm2, %v3832_v39, %v3834_v8  ;;  %6629 = vmatpush3.bf16.msra.mxu1 %v8723_v52  ;;  %6600 = vmatprep.mubr.msk.bf16.mxu1 %vm422_vm0, %v8801_v33  ;;  %v8857_v22 = vpack.c.bf16 %v3840_v12, %v3838_v59 }
 0x34a   : > { %v2982_v42 = vmax.f32 %v2950_v14, 0.0  ;;  %v2951_v28 = vadd.f32 %v8742_v13, %v2912_v19  ;;  %6662 = vmatprep.subr.bf16.mxu1 %v8794_v51  ;;  %v8818_v58 = vpack.c.bf16 %v3835_v26, %v3833_v45  ;;  %v8837_v38 = vld [vmem:[#allocation3 + $0x88] sm:$0xff] }
 0x34b   : > { %3089 = vst.msk [vmem:[#allocation3 + $0xc8] sm:$0xff] %vm422_vm0, %v2984_v24  ;;  %v2985_v49 = vmax.f32 %v2953_v44, 0.0  ;;  %v8826_v63 = vld [vmem:[#allocation3 + $0x68] sm:$0xff]  ;;  %v3846_v59 = vrot.slane %v8837_v38, 1 }
 0x34c   : > { %3087 = vst.msk [vmem:[#allocation3 + $0xa8] sm:$0xff] %vm422_vm0, %v2982_v42  ;;  %v2983_v5 = vmax.f32 %v2951_v28, 0.0  ;;  %v6576_v52 = vpop.f32.mrb[12].mxu0  ;;  %v8821_v17 = vld [vmem:[#allocation3 + $0x90] sm:$0xff]  ;;  %v3841_v56 = vrot.slane %v8826_v63, 1  ;;  %v3849_v28 = vrot.slane %v3130_v16, 1 }
 0x34d   : > { %3090 = vst.msk [vmem:[#allocation3 + $0xd0] sm:$0xff] %vm422_vm0, %v2985_v49  ;;  %v2917_v30 = vmul.f32 %v6576_v52, %v8737_v43  ;;  %v2785_v0 = vpop.f32.mrb[13].mxu0  ;;  %v8828_v2 = vld [vmem:[#allocation3 + $0x70] sm:$0xff]  ;;  %v8843_v60 = vpack.c.bf16 %v8821_v17, %v8837_v38  ;;  %v3847_v24 = vrot.slane %v8821_v17, 1 }
 0x34e   : > { %3088 = vst.msk [vmem:[#allocation3 + $0xb0] sm:$0xff] %vm422_vm0, %v2983_v5  ;;  %v2915_v7 = vmul.f32 %v8737_v43, %v2785_v0  ;;  %v6577_v57 = vpop.f32.mrb[14].mxu0  ;;  %v8834_v29 = vpack.c.bf16 %v8828_v2, %v8826_v63  ;;  %v3842_v18 = vrot.slane %v8828_v2, 1 }
 0x34f   : > { %v2956_v62 = vadd.f32 %v8742_v13, %v2917_v30  ;;  %v2918_v41 = vmul.f32 %v6577_v57, %v8737_v43  ;;  %v2788_v9 = vpop.f32.mrb[15].mxu0  ;;  %9777 = vst [vmem:[#allocation21_spill] sm:$0xff] %v8843_v60 }
 0x350   : > { %9776 = vst [vmem:[#allocation5_spill] sm:$0xff] %v8834_v29  ;;  %v2954_v21 = vadd.f32 %v8742_v13, %v2915_v7  ;;  %v2916_v34 = vmul.f32 %v8737_v43, %v2788_v9  ;;  %6601 = vmatmul.mubr.msk.bf16.gmra.mrb[4].mxu1 %vm422_vm0, %v8834_v29  ;;  %v3843_v37 = vsel %vm1245_vm2, %v3841_v56, %v3842_v18 }
 0x351   : > { %v2988_v6 = vmax.f32 %v2956_v62, 0.0  ;;  %v2957_v40 = vadd.f32 %v8742_v13, %v2918_v41  ;;  %6604 = vmatprep.mubr.msk.bf16.mxu1 %vm422_vm0, %v8843_v60  ;;  %v3845_v52 = vsel %vm1245_vm2, %v3842_v18, %v3844_v23  ;;  %v3848_v18 = vsel %vm1245_vm2, %v3846_v59, %v3847_v24 }
 0x352   : > { %v2986_v31 = vmax.f32 %v2954_v21, 0.0  ;;  %v2955_v50 = vadd.f32 %v8742_v13, %v2916_v34  ;;  %v8875_v42 = vld [vmem:[#allocation3 + $0xc8] sm:$0xff]  ;;  %v8893_v41 = vpack.c.bf16 %v3845_v52, %v3843_v37  ;;  %v3850_v21 = vsel %vm1245_vm2, %v3847_v24, %v3849_v28  ;;  %v3134_v34 = vld [vmem:[#allocation3 + $0xb8] sm:$0x1] }
 0x353   : > { %3093 = vst.msk [vmem:[#allocation3 + $0x108] sm:$0xff] %vm422_vm0, %v2988_v6  ;;  %v2989_v8 = vmax.f32 %v2957_v40, 0.0  ;;  %v8864_v19 = vld [vmem:[#allocation3 + $0xa8] sm:$0xff]  ;;  %v8901_v40 = vpack.c.bf16 %v3850_v21, %v3848_v18  ;;  %v3856_v52 = vrot.slane %v8875_v42, 1 }
 0x354   : > { %3091 = vst.msk [vmem:[#allocation3 + $0xe8] sm:$0xff] %vm422_vm0, %v2986_v31  ;;  %v2987_v3 = vmax.f32 %v2955_v50, 0.0  ;;  %v6580_v47 = vpop.f32.mrb[16].mxu0  ;;  %v8860_v27 = vld [vmem:[#allocation3 + $0xd0] sm:$0xff]  ;;  %v3851_v28 = vrot.slane %v8864_v19, 1 }
 0x355   : > { %3094 = vst.msk [vmem:[#allocation3 + $0x110] sm:$0xff] %vm422_vm0, %v2989_v8  ;;  %v2921_v39 = vmul.f32 %v6580_v47, %v8737_v43  ;;  %v2801_v14 = vpop.f32.mrb[17].mxu0  ;;  %v8866_v4 = vld [vmem:[#allocation3 + $0xb0] sm:$0xff]  ;;  %v8881_v5 = vpack.c.bf16 %v8860_v27, %v8875_v42 }
 0x356   : > { %3092 = vst.msk [vmem:[#allocation3 + $0xf0] sm:$0xff] %vm422_vm0, %v2987_v3  ;;  %v2919_v44 = vmul.f32 %v8737_v43, %v2801_v14  ;;  %v6581_v45 = vpop.f32.mrb[18].mxu0  ;;  %v8873_v26 = vpack.c.bf16 %v8866_v4, %v8864_v19  ;;  %v3852_v8 = vrot.slane %v8866_v4, 1 }
 0x357   : > { %v2960_v35 = vadd.f32 %v8742_v13, %v2921_v39  ;;  %v2922_v49 = vmul.f32 %v6581_v45, %v8737_v43  ;;  %v2804_v15 = vpop.f32.mrb[19].mxu0  ;;  %9779 = vst [vmem:[#allocation23_spill] sm:$0xff] %v8881_v5  ;;  %v3854_v39 = vrot.slane %v3134_v34, 1 }
 0x358   : > { %9778 = vst [vmem:[#allocation22_spill] sm:$0xff] %v8873_v26  ;;  %v2958_v30 = vadd.f32 %v8742_v13, %v2919_v44  ;;  %v2920_v0 = vmul.f32 %v8737_v43, %v2804_v15  ;;  %6605 = vmatmul.mubr.msk.bf16.gmra.mrb[8].mxu1 %vm422_vm0, %v8873_v26 }
 0x359   : > { %v2992_v7 = vmax.f32 %v2960_v35, 0.0  ;;  %v2961_v57 = vadd.f32 %v8742_v13, %v2922_v49  ;;  %6608 = vmatprep.mubr.msk.bf16.mxu1 %vm422_vm0, %v8881_v5  ;;  %v3857_v35 = vrot.slane %v8860_v27, 1 }
 0x35a   : > { %v2990_v10 = vmax.f32 %v2958_v30, 0.0  ;;  %v2959_v62 = vadd.f32 %v8742_v13, %v2920_v0  ;;  %v8916_v47 = vld [vmem:[#allocation3 + $0x108] sm:$0xff] }
 0x35b   : > { %3097 = vst.msk [vmem:[#allocation3 + $0x148] sm:$0xff] %vm422_vm0, %v2992_v7  ;;  %v2993_v9 = vmax.f32 %v2961_v57, 0.0  ;;  %v8905_v12 = vld [vmem:[#allocation3 + $0xe8] sm:$0xff]  ;;  %v3853_v57 = vsel %vm1245_vm2, %v3851_v28, %v3852_v8 }
 0x35c   : > { %3095 = vst.msk [vmem:[#allocation3 + $0x128] sm:$0xff] %vm422_vm0, %v2990_v10  ;;  %v2991_v56 = vmax.f32 %v2959_v62, 0.0  ;;  %v6584_v61 = vpop.f32.mrb[20].mxu0  ;;  %v8899_v6 = vld [vmem:[#allocation3 + $0x110] sm:$0xff]  ;;  %v3855_v10 = vsel %vm1245_vm2, %v3852_v8, %v3854_v39 }
 0x35d   : > { %3098 = vst.msk [vmem:[#allocation3 + $0x150] sm:$0xff] %vm422_vm0, %v2993_v9  ;;  %v2925_v31 = vmul.f32 %v6584_v61, %v8737_v43  ;;  %v2817_v50 = vpop.f32.mrb[21].mxu0  ;;  %v8907_v37 = vld [vmem:[#allocation3 + $0xf0] sm:$0xff]  ;;  %v8922_v45 = vpack.c.bf16 %v8899_v6, %v8916_v47  ;;  %v8938_v18 = vpack.c.bf16 %v3855_v10, %v3853_v57  ;;  %v3138_v9 = vld [vmem:[#allocation3 + $0xd8] sm:$0x1]  ;;  %v3858_v61 = vsel %vm1245_vm2, %v3856_v52, %v3857_v35 }
 0x35e   : > { %3096 = vst.msk [vmem:[#allocation3 + $0x130] sm:$0xff] %vm422_vm0, %v2991_v56  ;;  %v2923_v23 = vmul.f32 %v8737_v43, %v2817_v50  ;;  %v6585_v16 = vpop.f32.mrb[22].mxu0  ;;  %v8914_v3 = vpack.c.bf16 %v8907_v37, %v8905_v12  ;;  %v3859_v28 = vrot.slane %v3138_v9, 1  ;;  %v3142_v57 = vld [vmem:[#allocation3 + $0xf8] sm:$0x1] }
 0x35f   : > { %v2964_v14 = vadd.f32 %v8742_v13, %v2925_v31  ;;  %v2926_v24 = vmul.f32 %v6585_v16, %v8737_v43  ;;  %v2820_v44 = vpop.f32.mrb[23].mxu0  ;;  %9781 = vst [vmem:[#allocation7_spill] sm:$0xff] %v8922_v45  ;;  %v3862_v16 = vrot.slane %v8907_v37, 1  ;;  %v3146_v9 = vld [vmem:[#allocation3 + $0x118] sm:$0x1] }
 0x360   : > { %9780 = vst [vmem:[#allocation6_spill] sm:$0xff] %v8914_v3  ;;  %v2962_v49 = vadd.f32 %v8742_v13, %v2923_v23  ;;  %v2924_v15 = vmul.f32 %v8737_v43, %v2820_v44  ;;  %6609 = vmatmul.mubr.msk.bf16.gmra.mrb[12].mxu1 %vm422_vm0, %v8914_v3  ;;  %v3866_v3 = vrot.slane %v8916_v47, 1 }
 0x361   : > { %v2996_v59 = vmax.f32 %v2964_v14, 0.0  ;;  %v2965_v30 = vadd.f32 %v8742_v13, %v2926_v24  ;;  %6612 = vmatprep.mubr.msk.bf16.mxu1 %vm422_vm0, %v8922_v45 }
 0x362   : > { %v2994_v0 = vmax.f32 %v2962_v49, 0.0  ;;  %v2963_v7 = vadd.f32 %v8742_v13, %v2924_v15  ;;  %v8957_v44 = vld [vmem:[#allocation3 + $0x148] sm:$0xff] }
 0x363   : > { %3101 = vst.msk [vmem:[#allocation3 + $0x188] sm:$0xff] %vm422_vm0, %v2996_v59  ;;  %v2997_v62 = vmax.f32 %v2965_v30, 0.0  ;;  %v8946_v8 = vld [vmem:[#allocation3 + $0x128] sm:$0xff]  ;;  %v3861_v30 = vrot.slane %v8905_v12, 1 }
 0x364   : > { %3099 = vst.msk [vmem:[#allocation3 + $0x168] sm:$0xff] %vm422_vm0, %v2994_v0  ;;  %v2995_v21 = vmax.f32 %v2963_v7, 0.0  ;;  %v6588_v34 = vpop.f32.mrb[24].mxu0  ;;  %v8941_v56 = vld [vmem:[#allocation3 + $0x150] sm:$0xff] }
 0x365   : > { %3102 = vst.msk [vmem:[#allocation3 + $0x190] sm:$0xff] %vm422_vm0, %v2997_v62  ;;  %v2929_v31 = vmul.f32 %v6588_v34, %v8737_v43  ;;  %v2833_v50 = vpop.f32.mrb[25].mxu0  ;;  %v8948_v23 = vld [vmem:[#allocation3 + $0x130] sm:$0xff]  ;;  %v8963_v59 = vpack.c.bf16 %v8941_v56, %v8957_v44 }
 0x366   : > { %3100 = vst.msk [vmem:[#allocation3 + $0x170] sm:$0xff] %vm422_vm0, %v2995_v21  ;;  %v2927_v39 = vmul.f32 %v8737_v43, %v2833_v50  ;;  %v6589_v14 = vpop.f32.mrb[26].mxu0  ;;  %v8955_v24 = vpack.c.bf16 %v8948_v23, %v8946_v8  ;;  %v3863_v50 = vsel %vm1245_vm2, %v3861_v30, %v3862_v16 }
 0x367   : > { %v2968_v49 = vadd.f32 %v8742_v13, %v2929_v31  ;;  %v2930_v15 = vmul.f32 %v6589_v14, %v8737_v43  ;;  %v2836_v52 = vpop.f32.mrb[27].mxu0  ;;  %9783 = vst [vmem:[#allocation9_spill] sm:$0xff] %v8963_v59  ;;  %v3860_v31 = vsel %vm1245_vm2, %v3857_v35, %v3859_v28  ;;  %v8986_v35 = vld [vmem:[#allocation3 + $0x198] sm:$0x1] }
 0x368   : > { %9782 = vst [vmem:[#allocation8_spill] sm:$0xff] %v8955_v24  ;;  %v2966_v0 = vadd.f32 %v8742_v13, %v2927_v39  ;;  %v2928_v7 = vmul.f32 %v8737_v43, %v2836_v52  ;;  %6613 = vmatmul.mubr.msk.bf16.gmra.mrb[16].mxu1 %vm422_vm0, %v8955_v24  ;;  %v8976_v39 = vld [vmem:[#allocation3 + $0x158] sm:$0x1]  ;;  %v8979_v52 = vpack.c.bf16 %v3860_v31, %v3858_v61 }
 0x369   : > { %v3000_v10 = vmax.f32 %v2968_v49, 0.0  ;;  %v2969_v62 = vadd.f32 %v8742_v13, %v2930_v15  ;;  %6616 = vmatprep.mubr.msk.bf16.mxu1 %vm422_vm0, %v8963_v59  ;;  %v3864_v49 = vrot.slane %v3142_v57, 1  ;;  %v8981_v15 = vld [vmem:[#allocation3 + $0x138] sm:$0x1]  ;;  %v3879_v57 = vrot.slane %v8976_v39, 1 }
 0x36a   : > { %v2998_v21 = vmax.f32 %v2966_v0, 0.0  ;;  %v2967_v34 = vadd.f32 %v8742_v13, %v2928_v7  ;;  %9784 = vst [vmem:[#allocation10_spill] sm:$0xff] %v8979_v52  ;;  %v3869_v7 = vrot.slane %v3146_v9, 1  ;;  %v9007_v59 = vld [vmem:[#allocation3 + $0x1d8] sm:$0x1] }
 0x36b   : > { %3105 = vst.msk [vmem:[#allocation3 + $0x1c8] sm:$0xff] %vm422_vm0, %v3000_v10  ;;  %v3001_v14 = vmax.f32 %v2969_v62, 0.0  ;;  %v8990_v10 = vld [vmem:[#allocation3 + $0x168] sm:$0xff]  ;;  %v8995_v62 = vld [vmem:[#allocation3 + $0x178] sm:$0x1] }
 0x36c   : > { %3103 = vst.msk [vmem:[#allocation3 + $0x1a8] sm:$0xff] %vm422_vm0, %v2998_v21  ;;  %v2999_v25 = vmax.f32 %v2967_v34, 0.0  ;;  %v6592_v0 = vpop.f32.mrb[28].mxu0  ;;  %v8984_v1 = vld [vmem:[#allocation3 + $0x190] sm:$0xff]  ;;  %v3867_v21 = vrot.slane %v8899_v6, 1  ;;  %v3884_v60 = vrot.slane %v8995_v62, 1 }
 0x36d   : > { %3106 = vst.msk [vmem:[#allocation3 + $0x1d0] sm:$0xff] %vm422_vm0, %v3001_v14  ;;  %v2933_v28 = vmul.f32 %v6592_v0, %v8737_v43  ;;  %v2849_v30 = vpop.f32.mrb[29].mxu0  ;;  %v8992_v61 = vld [vmem:[#allocation3 + $0x170] sm:$0xff]  ;;  %v9004_v14 = vld [vmem:[#allocation3 + $0x188] sm:$0xff]  ;;  %v3874_v0 = vrot.slane %v8981_v15, 1  ;;  %v3889_v15 = vrot.slane %v8986_v35, 1 }
 0x36e   : > { %3104 = vst.msk [vmem:[#allocation3 + $0x1b0] sm:$0xff] %vm422_vm0, %v2999_v25  ;;  %v2931_v9 = vmul.f32 %v8737_v43, %v2849_v30  ;;  %v6593_v34 = vpop.f32.mrb[30].mxu0  ;;  %v9002_v31 = vpack.c.bf16 %v8992_v61, %v8990_v10  ;;  %v9013_v25 = vpack.c.bf16 %v8984_v1, %v9004_v14  ;;  %v3865_v30 = vsel %vm1245_vm2, %v3862_v16, %v3864_v49  ;;  %v3166_v16 = vld [vmem:[#allocation3 + $0x1b8] sm:$0x1] }
 0x36f   : > { %v2972_v39 = vadd.f32 %v8742_v13, %v2933_v28  ;;  %v2934_v24 = vmul.f32 %v6593_v34, %v8737_v43  ;;  %v2852_v45 = vpop.f32.mrb[31].mxu0  ;;  %v3899_v49 = vrot.slane %v9007_v59, 1  ;;  %v3872_v35 = vrot.slane %v8948_v23, 1 }
 0x370   : > { %9785 = vst [vmem:[#allocation11_spill] sm:$0xff] %v9002_v31  ;;  %9786 = vst [vmem:[#allocation13_spill] sm:$0xff] %v9013_v25  ;;  %v2970_v5 = vadd.f32 %v8742_v13, %v2931_v9  ;;  %v2932_v26 = vmul.f32 %v8737_v43, %v2852_v45  ;;  %6617 = vmatmul.mubr.msk.bf16.gmra.mrb[20].mxu1 %vm422_vm0, %v9002_v31  ;;  %v9028_v43 = vpack.c.bf16 %v3865_v30, %v3863_v50 }
 0x371   : > { %v3004_v28 = vmax.f32 %v2972_v39, 0.0  ;;  %v2973_v34 = vadd.f32 %v8742_v13, %v2934_v24  ;;  %6620 = vmatprep.mubr.msk.bf16.mxu1 %vm422_vm0, %v9013_v25  ;;  %v3868_v45 = vsel %vm1245_vm2, %v3866_v3, %v3867_v21  ;;  %v3877_v39 = vrot.slane %v8941_v56, 1 }
 0x372   : > { %v3002_v29 = vmax.f32 %v2970_v5, 0.0  ;;  %v2971_v9 = vadd.f32 %v8742_v13, %v2932_v26  ;;  %9787 = vst [vmem:[#allocation14_spill] sm:$0xff] %v9028_v43  ;;  %v3870_v25 = vsel %vm1245_vm2, %v3867_v21, %v3869_v7  ;;  %v3876_v62 = vrot.slane %v8957_v44, 1  ;;  %v9049_v21 = vld [vmem:[#allocation3 + $0x1c8] sm:$0xff] }
 0x373   : > { %3109 = vst.msk [vmem:[#allocation3 + $0x208] sm:$0xff] %vm422_vm0, %v3004_v28  ;;  %v3005_v24 = vmax.f32 %v2973_v34, 0.0  ;;  %v9039_v13 = vpack.c.bf16 %v3870_v25, %v3868_v45  ;;  %v3894_v26 = vrot.slane %v3166_v16, 1  ;;  %v3871_v3 = vrot.slane %v8946_v8, 1  ;;  %v9045_v28 = vld [vmem:[#allocation3 + $0x1a8] sm:$0xff] }
 0x374   : > { %3107 = vst.msk [vmem:[#allocation3 + $0x1e8] sm:$0xff] %vm422_vm0, %v3002_v29  ;;  %v3003_v5 = vmax.f32 %v2971_v9, 0.0  ;;  %v9037_v59 = vld [vmem:[#allocation3 + $0x1d0] sm:$0xff]  ;;  %v3881_v50 = vrot.slane %v8990_v10, 1  ;;  %v3882_v30 = vrot.slane %v8992_v61, 1  ;;  %v3887_v29 = vrot.slane %v8984_v1, 1 }
 0x375   : > { %9788 = vst [vmem:[#allocation15_spill] sm:$0xff] %v9039_v13  ;;  %3110 = vst.msk [vmem:[#allocation3 + $0x210] sm:$0xff] %vm422_vm0, %v3005_v24  ;;  %v9047_v7 = vld [vmem:[#allocation3 + $0x1b0] sm:$0xff]  ;;  %v9060_v16 = vpack.c.bf16 %v9037_v59, %v9049_v21  ;;  %v3897_v9 = vrot.slane %v9037_v59, 1  ;;  %v3873_v45 = vsel %vm1245_vm2, %v3871_v3, %v3872_v35  ;;  %v3875_v24 = vsel %vm1245_vm2, %v3872_v35, %v3874_v0 }
 0x376   : > { %3108 = vst.msk [vmem:[#allocation3 + $0x1f0] sm:$0xff] %vm422_vm0, %v3003_v5  ;;  %v9055_v25 = vpack.c.bf16 %v9047_v7, %v9045_v28  ;;  %v3892_v34 = vrot.slane %v9047_v7, 1  ;;  %v3878_v5 = vsel %vm1245_vm2, %v3876_v62, %v3877_v39  ;;  %v3886_v31 = vrot.slane %v9004_v14, 1  ;;  %v3174_v62 = vld [vmem:[#allocation3 + $0x1f8] sm:$0x1] }
 0x377   : > { %9790 = vst [vmem:[#allocation17_spill] sm:$0xff] %v9060_v16  ;;  %v3891_v33 = vrot.slane %v9045_v28, 1  ;;  %v9070_v32 = vpack.c.bf16 %v3875_v24, %v3873_v45  ;;  %v3880_v13 = vsel %vm1245_vm2, %v3877_v39, %v3879_v57  ;;  %v3896_v3 = vrot.slane %v9049_v21, 1  ;;  %v3178_v39 = vld [vmem:[#allocation3 + $0x218] sm:$0x1] }
 0x378   : > { %9789 = vst [vmem:[#allocation16_spill] sm:$0xff] %v9055_v25  ;;  %6621 = vmatmul.mubr.msk.bf16.gmra.mrb[24].mxu1 %vm422_vm0, %v9055_v25  ;;  %v9076_v43 = vpack.c.bf16 %v3880_v13, %v3878_v5  ;;  %v3883_v0 = vsel %vm1245_vm2, %v3881_v50, %v3882_v30  ;;  %v3885_v35 = vsel %vm1245_vm2, %v3882_v30, %v3884_v60 }
 0x379   : > { %6624 = vmatprep.mubr.msk.bf16.mxu1 %vm422_vm0, %v9060_v16  ;;  %v9080_v52 = vpack.c.bf16 %v3885_v35, %v3883_v0  ;;  %v3888_v25 = vsel %vm1245_vm2, %v3886_v31, %v3887_v29  ;;  %v3890_v45 = vsel %vm1245_vm2, %v3887_v29, %v3889_v15  ;;  %v3893_v57 = vsel %vm1245_vm2, %v3891_v33, %v3892_v34  ;;  %v3115_v33 = vld [vmem:[#allocation3 + $0x20] sm:$0xff] }
 0x37a   : > { %v9087_v16 = vpack.c.bf16 %v3890_v45, %v3888_v25  ;;  %v3895_v13 = vsel %vm1245_vm2, %v3892_v34, %v3894_v26  ;;  %v3898_v50 = vsel %vm1245_vm2, %v3896_v3, %v3897_v9  ;;  %v3900_v60 = vsel %vm1245_vm2, %v3897_v9, %v3899_v49  ;;  %v9096_v0 = vld [vmem:[#allocation3 + $0x208] sm:$0xff]  ;;  %v3119_v35 = vld [vmem:[#allocation3 + $0x40] sm:$0xff] }
 0x37b   : > { %v9085_v24 = vld [vmem:[#allocation3 + $0x1e8] sm:$0xff]  ;;  %v9092_v30 = vpack.c.bf16 %v3895_v13, %v3893_v57  ;;  %v9094_v5 = vpack.c.bf16 %v3900_v60, %v3898_v50  ;;  %v3904_v31 = vrot.slane %v3174_v62, 1  ;;  %9791 = vst [vmem:[#allocation18_spill] sm:$0xff] %v9096_v0  ;;  %v4630_v26 = vrot.slane %v3178_v39, 1 }
 0x37c   : > { %v9098_v15 = vld [vmem:[#allocation3 + $0x210] sm:$0xff]  ;;  %v3901_v34 = vrot.slane %v9085_v24, 1  ;;  %v3239_v3 = vrot.slane %v8780_v55, 7  ;;  %v4627_v62 = vrot.slane %v9096_v0, 1  ;;  %v3236_v57 = vrot.slane %v3115_v33, 7 }
 0x37d   : > { %9792 = vst [vmem:[#allocation19_spill] sm:$0xff] %v9098_v15  ;;  %v9100_v29 = vld [vmem:[#allocation3 + $0x1f0] sm:$0xff]  ;;  %v9104_v25 = vpack.c.bf16 %v9098_v15, %v9096_v0  ;;  %v4628_v45 = vrot.slane %v9098_v15, 1  ;;  %v3244_v13 = vrot.slane %v8774_v46, 7  ;;  %v3237_v60 = vrot.slane %v8768_v36, 7 }
 0x37e   : > { %v9108_v49 = vpack.c.bf16 %v9100_v29, %v9085_v24  ;;  %v3902_v9 = vrot.slane %v9100_v29, 1  ;;  %v9795_v55 = vpack.c.bf16 %v8727_v11, %v8730_v54  ;;  %v3242_v0 = vrot.slane %v8789_v53, 7 }
 0x37f   : > { %9793 = vst [vmem:[#allocation20_spill] sm:$0xff] %v9104_v25  ;;  %v4629_v33 = vsel %vm1245_vm2, %v4627_v62, %v4628_v45  ;;  %v4631_v46 = vsel %vm1245_vm2, %v4628_v45, %v4630_v26  ;;  %v9141_v26 = vld [vmem:[%s9616_s6 + $0x18] sm:$0xff]   ;;  %v3249_v53 = vrot.slane %v8828_v2, 7  ;;  %v3127_v62 = vld [vmem:[#allocation3 + $0x80] sm:$0xff]  ;;  %v3247_v45 = vrot.slane %v8826_v63, 7 }
 0x380   : > { %9794 = vst [vmem:[#allocation24_spill] sm:$0xff] %v9108_v49  ;;  %6625 = vmatmul.mubr.msk.bf16.gmra.mrb[28].mxu1 %vm422_vm0, %v9108_v49  ;;  %v3903_v39 = vsel %vm1245_vm2, %v3901_v34, %v3902_v9  ;;  %v3905_v50 = vsel %vm1245_vm2, %v3902_v9, %v3904_v31  ;;  %v3241_v49 = vrot.slane %v3119_v35, 7  ;;  %v9130_v15 = vpack.c.bf16 %v4631_v46, %v4629_v33  ;;  %v3123_v9 = vld [vmem:[#allocation3 + $0x60] sm:$0xff] }
 0x381   : > { %6630 = vmatprep.mubr.msk.bf16.mxu1 %vm422_vm0, %v9795_v55  ;;  %v9125_v25 = vpack.c.bf16 %v3905_v50, %v3903_v39  ;;  %v3240_v31 = vsel %vm649_vm3, %v3237_v60, %v3239_v3  ;;  %v3245_v36 = vsel %vm649_vm3, %v3242_v0, %v3244_v13  ;;  %v3238_v34 = vsel %vm649_vm3, %v3236_v57, %v3237_v60  ;;  %v3135_v55 = vld [vmem:[#allocation3 + $0xc0] sm:$0xff] }
 0x382   : > { %v9135_v11 = vpack.c.bf16 %v3240_v31, %v3238_v34  ;;  %v3243_v54 = vsel %vm649_vm3, %v3241_v49, %v3242_v0  ;;  %v3254_v3 = vrot.slane %v8821_v17, 7  ;;  %v3246_v0 = vrot.slane %v3123_v9, 7 }
 0x383   : > { %v9144_v35 = vpack.c.bf16 %v3245_v36, %v3243_v54  ;;  %v3252_v49 = vrot.slane %v8837_v38, 7  ;;  %v3251_v57 = vrot.slane %v3127_v62, 7  ;;  %v3250_v2 = vsel %vm649_vm3, %v3247_v45, %v3249_v53  ;;  %v3139_v53 = vld [vmem:[#allocation3 + $0xe0] sm:$0xff] }
 0x384   : > { %v3248_v13 = vsel %vm649_vm3, %v3246_v0, %v3247_v45  ;;  %v3259_v50 = vrot.slane %v8866_v4, 7  ;;  %v3264_v38 = vrot.slane %v8860_v27, 7  ;;  %v3257_v33 = vrot.slane %v8864_v19, 7 }
 0x385   : > { %v3255_v17 = vsel %vm649_vm3, %v3252_v49, %v3254_v3  ;;  %v9158_v39 = vpack.c.bf16 %v3250_v2, %v3248_v13  ;;  %v3253_v63 = vsel %vm649_vm3, %v3251_v57, %v3252_v49  ;;  %v3262_v31 = vrot.slane %v8875_v42, 7  ;;  %v3143_v3 = vld [vmem:[#allocation3 + $0x100] sm:$0xff] }
 0x386   : > { %v9162_v60 = vpack.c.bf16 %v3255_v17, %v3253_v63  ;;  %v3261_v36 = vrot.slane %v3135_v55, 7  ;;  %v3260_v34 = vsel %vm649_vm3, %v3257_v33, %v3259_v50  ;;  %v3269_v19 = vrot.slane %v8907_v37, 7  ;;  %v3147_v63 = vld [vmem:[#allocation3 + $0x120] sm:$0xff] }
 0x387   : > { %v3265_v4 = vsel %vm649_vm3, %v3262_v31, %v3264_v38  ;;  %v3274_v45 = vrot.slane %v8899_v6, 7  ;;  %v3267_v42 = vrot.slane %v8905_v12, 7  ;;  %v3266_v0 = vrot.slane %v3139_v53, 7  ;;  %v3151_v50 = vld [vmem:[#allocation3 + $0x140] sm:$0xff] }
 0x388   : > { %6631 = vmatmul.mubr.msk.bf16.vlgmr.msra.gmra.mrb[0].mxu1 %vm422_vm0, %v9135_v11  ;;  %v3263_v27 = vsel %vm649_vm3, %v3261_v36, %v3262_v31  ;;  %v3272_v49 = vrot.slane %v8916_v47, 7  ;;  %v3271_v57 = vrot.slane %v3143_v3, 7  ;;  %v3279_v12 = vrot.slane %v8948_v23, 7 }
 0x389   : > { %6663 = vmatpush3.bf16.msra.mxu1 %v8794_v51  ;;  %6634 = vmatprep.mubr.msk.bf16.mxu1 %vm422_vm0, %v9144_v35  ;;  %v3131_v51 = vld [vmem:[#allocation3 + $0xa0] sm:$0xff]  ;;  %v9178_v62 = vpack.c.bf16 %v3265_v4, %v3263_v27  ;;  %v3270_v2 = vsel %vm649_vm3, %v3267_v42, %v3269_v19  ;;  %v3268_v17 = vsel %vm649_vm3, %v3266_v0, %v3267_v42  ;;  %v3284_v55 = vrot.slane %v8941_v56, 7 }
 0x38a   : > { %6696 = vmatprep.subr.bf16.mxu1 %v9141_v26  ;;  %v3256_v46 = vrot.slane %v3131_v51, 7  ;;  %v3275_v37 = vsel %vm649_vm3, %v3272_v49, %v3274_v45  ;;  %v9190_v13 = vpack.c.bf16 %v3270_v2, %v3268_v17  ;;  %v3273_v6 = vsel %vm649_vm3, %v3271_v57, %v3272_v49  ;;  %v3155_v4 = vld [vmem:[#allocation3 + $0x160] sm:$0xff] }
 0x38b   : > { %v9194_v51 = vpack.c.bf16 %v3275_v37, %v3273_v6  ;;  %v3277_v47 = vrot.slane %v8946_v8, 7  ;;  %v3276_v38 = vrot.slane %v3147_v63, 7  ;;  %v3289_v8 = vrot.slane %v8992_v61, 7  ;;  %v3159_v27 = vld [vmem:[#allocation3 + $0x180] sm:$0xff] }
 0x38c   : > { %v3258_v54 = vsel %vm649_vm3, %v3256_v46, %v3257_v33  ;;  %v3282_v33 = vrot.slane %v8957_v44, 7  ;;  %v3281_v46 = vrot.slane %v3151_v50, 7  ;;  %v3294_v53 = vrot.slane %v8984_v1, 7  ;;  %v3163_v57 = vld [vmem:[#allocation3 + $0x1a0] sm:$0xff] }
 0x38d   : > { %v9174_v9 = vpack.c.bf16 %v3260_v34, %v3258_v54  ;;  %v3280_v31 = vsel %vm649_vm3, %v3277_v47, %v3279_v12  ;;  %v3278_v36 = vsel %vm649_vm3, %v3276_v38, %v3277_v47  ;;  %v3287_v44 = vrot.slane %v8990_v10, 7  ;;  %v3167_v37 = vld [vmem:[#allocation3 + $0x1c0] sm:$0xff] }
 0x38e   : > { %v3285_v23 = vsel %vm649_vm3, %v3282_v33, %v3284_v55  ;;  %v9206_v34 = vpack.c.bf16 %v3280_v31, %v3278_v36  ;;  %v3283_v56 = vsel %vm649_vm3, %v3281_v46, %v3282_v33  ;;  %v3286_v19 = vrot.slane %v3155_v4, 7  ;;  %v3171_v38 = vld [vmem:[#allocation3 + $0x1e0] sm:$0xff]  ;;  %v9800_v4 = vld [vmem:[#allocation19_spill] sm:$0xff] }
 0x38f   : > { %v9210_v54 = vpack.c.bf16 %v3285_v23, %v3283_v56  ;;  %v3292_v3 = vrot.slane %v9004_v14, 7  ;;  %v3291_v45 = vrot.slane %v3159_v27, 7  ;;  %v3290_v42 = vsel %vm649_vm3, %v3287_v44, %v3289_v8  ;;  %v7435_v56 = vld [vmem:[%s9616_s6 + $0x28] sm:$0xff]  }
 0x390   : > { %6635 = vmatmul.mubr.msk.bf16.gmra.mrb[4].mxu1 %vm422_vm0, %v9158_v39  ;;  %v3288_v0 = vsel %vm649_vm3, %v3286_v19, %v3287_v44  ;;  %v3299_v10 = vrot.slane %v9047_v7, 7  ;;  %v3304_v17 = vrot.slane %v9037_v59, 7  ;;  %v3297_v14 = vrot.slane %v9045_v28, 7 }
 0x391   : > { %6638 = vmatprep.mubr.msk.bf16.mxu1 %vm422_vm0, %v9162_v60  ;;  %v3295_v61 = vsel %vm649_vm3, %v3292_v3, %v3294_v53  ;;  %v9222_v49 = vpack.c.bf16 %v3290_v42, %v3288_v0  ;;  %v3293_v1 = vsel %vm649_vm3, %v3291_v45, %v3292_v3  ;;  %v3296_v6 = vrot.slane %v3163_v57, 7  ;;  %v9801_v53 = vld [vmem:[#allocation18_spill] sm:$0xff]  ;;  %v9802_v42 = vld [vmem:[#allocation12_spill] sm:$0xff]  ;;  %v9805_v57 = vld [vmem:[#allocation21_spill] sm:$0xff] }
 0x392   : > { %v9226_v2 = vpack.c.bf16 %v3295_v61, %v3293_v1  ;;  %v3302_v63 = vrot.slane %v9049_v21, 7  ;;  %v3301_v12 = vrot.slane %v3167_v37, 7  ;;  %v3300_v50 = vsel %vm649_vm3, %v3297_v14, %v3299_v10  ;;  %v7436_v61 = vld [vmem:[%s9616_s6 + $0x30] sm:$0xff]   ;;  %v9803_v0 = vld [vmem:[#allocation4_spill] sm:$0xff]  ;;  %v9804_v1 = vld [vmem:[#allocation5_spill] sm:$0xff] }
 0x393   : > { %v3298_v55 = vsel %vm649_vm3, %v3296_v6, %v3297_v14  ;;  %v3309_v28 = vrot.slane %v9100_v29, 7  ;;  %v3307_v21 = vrot.slane %v9085_v24, 7  ;;  %v3306_v46 = vrot.slane %v3171_v38, 7  ;;  %v7434_v24 = vld [vmem:[%s9616_s6 + $0x20] sm:$0xff]   ;;  %v9806_v10 = vld [vmem:[#allocation22_spill] sm:$0xff]  ;;  %v9807_v37 = vld [vmem:[#allocation23_spill] sm:$0xff] }
 0x394   : > { %v3305_v7 = vsel %vm649_vm3, %v3302_v63, %v3304_v17  ;;  %v9238_v47 = vpack.c.bf16 %v3300_v50, %v3298_v55  ;;  %v3303_v59 = vsel %vm649_vm3, %v3301_v12, %v3302_v63  ;;  %v9796_v29 = vpack.c.bf16 %v8771_v48, %v8763_v20  ;;  %v9797_v20 = vld [vmem:[#allocation10_spill] sm:$0xff]  ;;  %v9809_v14 = vld [vmem:[#allocation7_spill] sm:$0xff]  ;;  %v9810_v6 = vld [vmem:[#allocation8_spill] sm:$0xff] }
 0x395   : > { %v9242_v33 = vpack.c.bf16 %v3305_v7, %v3303_v59  ;;  %v3310_v31 = vsel %vm649_vm3, %v3307_v21, %v3309_v28  ;;  %v3308_v23 = vsel %vm649_vm3, %v3306_v46, %v3307_v21  ;;  %v9798_v48 = vld [vmem:[#allocation14_spill] sm:$0xff]  ;;  %v4210_v8 = vrot.slane %v9800_v4, 7  ;;  %v9811_v63 = vld [vmem:[#allocation9_spill] sm:$0xff]  ;;  %v9812_v12 = vld [vmem:[#allocation11_spill] sm:$0xff] }
 0x396   : > { %v9251_v36 = vpack.c.bf16 %v3310_v31, %v3308_v23  ;;  %v4208_v44 = vrot.slane %v9801_v53, 7  ;;  %v9808_v17 = vld [vmem:[#allocation6_spill] sm:$0xff]  ;;  %v9813_v50 = vld [vmem:[#allocation13_spill] sm:$0xff]  ;;  %v9814_v7 = vld [vmem:[#allocation16_spill] sm:$0xff] }
 0x397   : > { %v9815_v55 = vld [vmem:[#allocation17_spill] sm:$0xff]  ;;  %v9816_v59 = vld [vmem:[#allocation24_spill] sm:$0xff]  ;;  %v7437_v28 = vld [vmem:[%s9616_s6 + $0x38] sm:$0xff]  }
 0x398   : > { %6639 = vmatmul.mubr.msk.bf16.gmra.mrb[8].mxu1 %vm422_vm0, %v9174_v9  ;;  %v4211_v19 = vsel %vm649_vm3, %v4208_v44, %v4210_v8  ;;  %v9817_v38 = vld [vmem:[#allocation20_spill] sm:$0xff] }
 0x399   : > { %6642 = vmatprep.mubr.msk.bf16.mxu1 %vm422_vm0, %v9178_v62 }
 0x3a0   : > { %6643 = vmatmul.mubr.msk.bf16.gmra.mrb[12].mxu1 %vm422_vm0, %v9190_v13 }
 0x3a1   : > { %6646 = vmatprep.mubr.msk.bf16.mxu1 %vm422_vm0, %v9194_v51 }
 0x3a8   : > { %6647 = vmatmul.mubr.msk.bf16.gmra.mrb[16].mxu1 %vm422_vm0, %v9206_v34 }
 0x3a9   : > { %6650 = vmatprep.mubr.msk.bf16.mxu1 %vm422_vm0, %v9210_v54 }
 0x3b0   : > { %6651 = vmatmul.mubr.msk.bf16.gmra.mrb[20].mxu1 %vm422_vm0, %v9222_v49 }
 0x3b1   : > { %6654 = vmatprep.mubr.msk.bf16.mxu1 %vm422_vm0, %v9226_v2 }
 0x3b8   : > { %6655 = vmatmul.mubr.msk.bf16.gmra.mrb[24].mxu1 %vm422_vm0, %v9238_v47 }
 0x3b9   : > { %6658 = vmatprep.mubr.msk.bf16.mxu1 %vm422_vm0, %v9242_v33 }
 0x3c0   : > { %6659 = vmatmul.mubr.msk.bf16.gmra.mrb[28].mxu1 %vm422_vm0, %v9251_v36 }
 0x3c1   : > { %6664 = vmatprep.mubr.msk.bf16.mxu1 %vm422_vm0, %v9796_v29  ;;  %v5480_v29 = vld [vmem:[%s7825_s15 + $0x20] sm:$0xff] }
 0x3c8   : > { %6665 = vmatmul.mubr.msk.bf16.vlgmr.msra.gmra.mrb[0].mxu1 %vm422_vm0, %v8818_v58 }
 0x3c9   : > { %6697 = vmatpush3.bf16.msra.mxu1 %v9141_v26  ;;  %6668 = vmatprep.mubr.msk.bf16.mxu1 %vm422_vm0, %v8857_v22  ;;  %v9799_v26 = vld [vmem:[#allocation15_spill] sm:$0xff] }
 0x3ca   : > { %6730 = vmatprep.subr.bf16.mxu1 %v7434_v24 }
 0x3d0   : > { %6669 = vmatmul.mubr.msk.bf16.gmra.mrb[4].mxu1 %vm422_vm0, %v8893_v41 }
 0x3d1   : > { %6672 = vmatprep.mubr.msk.bf16.mxu1 %vm422_vm0, %v8901_v40 }
 0x3d8   : > { %6673 = vmatmul.mubr.msk.bf16.gmra.mrb[8].mxu1 %vm422_vm0, %v8938_v18 }
 0x3d9   : > { %6676 = vmatprep.mubr.msk.bf16.mxu1 %vm422_vm0, %v9797_v20 }
 0x3e0   : > { %6677 = vmatmul.mubr.msk.bf16.gmra.mrb[12].mxu1 %vm422_vm0, %v9798_v48 }
 0x3e1   : > { %6680 = vmatprep.mubr.msk.bf16.mxu1 %vm422_vm0, %v9799_v26 }
 0x3e8   : > { %6681 = vmatmul.mubr.msk.bf16.gmra.mrb[16].mxu1 %vm422_vm0, %v9070_v32 }
 0x3e9   : > { %6684 = vmatprep.mubr.msk.bf16.mxu1 %vm422_vm0, %v9076_v43 }
 0x3f0   : > { %6685 = vmatmul.mubr.msk.bf16.gmra.mrb[20].mxu1 %vm422_vm0, %v9080_v52 }
 0x3f1   : > { %6688 = vmatprep.mubr.msk.bf16.mxu1 %vm422_vm0, %v9087_v16 }
 0x3f8   : > { %6689 = vmatmul.mubr.msk.bf16.gmra.mrb[24].mxu1 %vm422_vm0, %v9092_v30 }
 0x3f9   : > { %6692 = vmatprep.mubr.msk.bf16.mxu1 %vm422_vm0, %v9094_v5 }
 0x400   : > { %6693 = vmatmul.mubr.msk.bf16.gmra.mrb[28].mxu1 %vm422_vm0, %v9125_v25 }
 0x401   : > { %6698 = vmatprep.mubr.msk.bf16.mxu1 %vm422_vm0, %v9135_v11  ;;  %v3175_v11 = vld [vmem:[#allocation3 + $0x200] sm:$0xff] }
 0x402   : > { %v4207_v27 = vrot.slane %v3175_v11, 7 }
 0x404   : > { %v4209_v3 = vsel %vm649_vm3, %v4207_v27, %v4208_v44  ;;  %v5486_v44 = vld [vmem:[%s7825_s15 + $0x50] sm:$0xff] }
 0x405   : > { %v9330_v45 = vpack.c.bf16 %v4211_v19, %v4209_v3  ;;  %v5484_v19 = vld [vmem:[%s7825_s15 + $0x40] sm:$0xff] }
 0x408   : > { %6699 = vmatmul.mubr.msk.bf16.vlgmr.msra.gmra.mrb[0].mxu1 %vm422_vm0, %v9144_v35 }
 0x409   : > { %6731 = vmatpush3.bf16.msra.mxu1 %v7434_v24  ;;  %6702 = vmatprep.mubr.msk.bf16.mxu1 %vm422_vm0, %v9158_v39 }
 0x40a   : > { %6764 = vmatprep.subr.bf16.mxu1 %v7435_v56 }
 0x410   : > { %6703 = vmatmul.mubr.msk.bf16.gmra.mrb[4].mxu1 %vm422_vm0, %v9162_v60 }
 0x411   : > { %6706 = vmatprep.mubr.msk.bf16.mxu1 %vm422_vm0, %v9174_v9 }
 0x418   : > { %6707 = vmatmul.mubr.msk.bf16.gmra.mrb[8].mxu1 %vm422_vm0, %v9178_v62 }
 0x419   : > { %6710 = vmatprep.mubr.msk.bf16.mxu1 %vm422_vm0, %v9190_v13 }
 0x420   : > { %6711 = vmatmul.mubr.msk.bf16.gmra.mrb[12].mxu1 %vm422_vm0, %v9194_v51 }
 0x421   : > { %6714 = vmatprep.mubr.msk.bf16.mxu1 %vm422_vm0, %v9206_v34 }
 0x428   : > { %6715 = vmatmul.mubr.msk.bf16.gmra.mrb[16].mxu1 %vm422_vm0, %v9210_v54 }
 0x429   : > { %6718 = vmatprep.mubr.msk.bf16.mxu1 %vm422_vm0, %v9222_v49 }
 0x430   : > { %6719 = vmatmul.mubr.msk.bf16.gmra.mrb[20].mxu1 %vm422_vm0, %v9226_v2 }
 0x431   : > { %6722 = vmatprep.mubr.msk.bf16.mxu1 %vm422_vm0, %v9238_v47 }
 0x438   : > { %6723 = vmatmul.mubr.msk.bf16.gmra.mrb[24].mxu1 %vm422_vm0, %v9242_v33 }
 0x439   : > { %6726 = vmatprep.mubr.msk.bf16.mxu1 %vm422_vm0, %v9251_v36 }
 0x440   : > { %6727 = vmatmul.mubr.msk.bf16.gmra.mrb[28].mxu1 %vm422_vm0, %v9330_v45 }
 0x441   : > { %6732 = vmatprep.mubr.msk.bf16.mxu1 %vm422_vm0, %v9802_v42 }
 0x448   : > { %6733 = vmatmul.mubr.msk.bf16.vlgmr.msra.gmra.mrb[0].mxu1 %vm422_vm0, %v9803_v0 }
 0x449   : > { %6765 = vmatpush3.bf16.msra.mxu1 %v7435_v56  ;;  %6736 = vmatprep.mubr.msk.bf16.mxu1 %vm422_vm0, %v9804_v1  ;;  %v5481_v56 = vld [vmem:[%s7825_s15 + $0x28] sm:$0xff] }
 0x44a   : > { %6798 = vmatprep.subr.bf16.mxu1 %v7436_v61 }
 0x450   : > { %6737 = vmatmul.mubr.msk.bf16.gmra.mrb[4].mxu1 %vm422_vm0, %v9805_v57 }
 0x451   : > { %6740 = vmatprep.mubr.msk.bf16.mxu1 %vm422_vm0, %v9806_v10 }
 0x458   : > { %6741 = vmatmul.mubr.msk.bf16.gmra.mrb[8].mxu1 %vm422_vm0, %v9807_v37 }
 0x459   : > { %6744 = vmatprep.mubr.msk.bf16.mxu1 %vm422_vm0, %v9808_v17 }
 0x460   : > { %6745 = vmatmul.mubr.msk.bf16.gmra.mrb[12].mxu1 %vm422_vm0, %v9809_v14 }
 0x461   : > { %6748 = vmatprep.mubr.msk.bf16.mxu1 %vm422_vm0, %v9810_v6 }
 0x468   : > { %6749 = vmatmul.mubr.msk.bf16.gmra.mrb[16].mxu1 %vm422_vm0, %v9811_v63 }
 0x469   : > { %6752 = vmatprep.mubr.msk.bf16.mxu1 %vm422_vm0, %v9812_v12 }
 0x470   : > { %6753 = vmatmul.mubr.msk.bf16.gmra.mrb[20].mxu1 %vm422_vm0, %v9813_v50 }
 0x471   : > { %6756 = vmatprep.mubr.msk.bf16.mxu1 %vm422_vm0, %v9814_v7 }
 0x478   : > { %6757 = vmatmul.mubr.msk.bf16.gmra.mrb[24].mxu1 %vm422_vm0, %v9815_v55 }
 0x479   : > { %6760 = vmatprep.mubr.msk.bf16.mxu1 %vm422_vm0, %v9816_v59 }
 0x480   : > { %6761 = vmatmul.mubr.msk.bf16.gmra.mrb[28].mxu1 %vm422_vm0, %v9817_v38 }
 0x481   : > { %6766 = vmatprep.mubr.msk.bf16.mxu1 %vm422_vm0, %v8818_v58  ;;  %v7438_v58 = vld [vmem:[%s9616_s6 + $0x40] sm:$0xff]  }
 0x488   : > { %6767 = vmatmul.mubr.msk.bf16.vlgmr.msra.gmra.mrb[0].mxu1 %vm422_vm0, %v8857_v22 }
 0x489   : > { %6799 = vmatpush3.bf16.msra.mxu1 %v7436_v61  ;;  %6770 = vmatprep.mubr.msk.bf16.mxu1 %vm422_vm0, %v8893_v41 }
 0x48a   : > { %6832 = vmatprep.subr.bf16.mxu1 %v7437_v28 }
 0x490   : > { %6771 = vmatmul.mubr.msk.bf16.gmra.mrb[4].mxu1 %vm422_vm0, %v8901_v40 }
 0x491   : > { %6774 = vmatprep.mubr.msk.bf16.mxu1 %vm422_vm0, %v8938_v18 }
 0x498   : > { %6775 = vmatmul.mubr.msk.bf16.gmra.mrb[8].mxu1 %vm422_vm0, %v9797_v20 }
 0x499   : > { %6778 = vmatprep.mubr.msk.bf16.mxu1 %vm422_vm0, %v9798_v48 }
 0x4a0   : > { %6779 = vmatmul.mubr.msk.bf16.gmra.mrb[12].mxu1 %vm422_vm0, %v9799_v26 }
 0x4a1   : > { %6782 = vmatprep.mubr.msk.bf16.mxu1 %vm422_vm0, %v9070_v32 }
 0x4a8   : > { %6783 = vmatmul.mubr.msk.bf16.gmra.mrb[16].mxu1 %vm422_vm0, %v9076_v43 }
 0x4a9   : > { %6786 = vmatprep.mubr.msk.bf16.mxu1 %vm422_vm0, %v9080_v52 }
 0x4b0   : > { %6787 = vmatmul.mubr.msk.bf16.gmra.mrb[20].mxu1 %vm422_vm0, %v9087_v16 }
 0x4b1   : > { %6790 = vmatprep.mubr.msk.bf16.mxu1 %vm422_vm0, %v9092_v30 }
 0x4b8   : > { %6791 = vmatmul.mubr.msk.bf16.gmra.mrb[24].mxu1 %vm422_vm0, %v9094_v5 }
 0x4b9   : > { %6794 = vmatprep.mubr.msk.bf16.mxu1 %vm422_vm0, %v9125_v25 }
 0x4c0   : > { %6795 = vmatmul.mubr.msk.bf16.gmra.mrb[28].mxu1 %vm422_vm0, %v9130_v15 }
 0x4c1   : > { %6800 = vmatprep.mubr.msk.bf16.mxu1 %vm422_vm0, %v9144_v35  ;;  %v3179_v35 = vld [vmem:[#allocation3 + $0x220] sm:$0xff] }
 0x4c8   : > { %6801 = vmatmul.mubr.msk.bf16.vlgmr.msra.gmra.mrb[0].mxu1 %vm422_vm0, %v9158_v39  ;;  %v3180_v39 = vld [vmem:[#allocation3 + $0x228] sm:$0xff] }
 0x4c9   : > { %6833 = vmatpush3.bf16.msra.mxu1 %v7437_v28  ;;  %6804 = vmatprep.mubr.msk.bf16.mxu1 %vm422_vm0, %v9162_v60  ;;  %v3181_v60 = vld [vmem:[#allocation3 + $0x230] sm:$0xff] }
 0x4ca   : > { %6866 = vmatprep.subr.bf16.mxu1 %v7438_v58 }
 0x4d0   : > { %6805 = vmatmul.mubr.msk.bf16.gmra.mrb[4].mxu1 %vm422_vm0, %v9174_v9  ;;  %v4843_v9 = vrot.slane %v3179_v35, 7 }
 0x4d1   : > { %6808 = vmatprep.mubr.msk.bf16.mxu1 %vm422_vm0, %v9178_v62  ;;  %v4844_v62 = vrot.slane %v3180_v39, 7 }
 0x4d8   : > { %6809 = vmatmul.mubr.msk.bf16.gmra.mrb[8].mxu1 %vm422_vm0, %v9190_v13  ;;  %v4846_v13 = vrot.slane %v3181_v60, 7 }
 0x4d9   : > { %6812 = vmatprep.mubr.msk.bf16.mxu1 %vm422_vm0, %v9194_v51  ;;  %v4845_v51 = vsel %vm649_vm3, %v4843_v9, %v4844_v62 }
 0x4e0   : > { %6813 = vmatmul.mubr.msk.bf16.gmra.mrb[12].mxu1 %vm422_vm0, %v9206_v34  ;;  %v4847_v34 = vsel %vm649_vm3, %v4844_v62, %v4846_v13  ;;  %v5495_v62 = vld [vmem:[%s7825_s15 + $0x98] sm:$0xff] }
 0x4e1   : > { %6816 = vmatprep.mubr.msk.bf16.mxu1 %vm422_vm0, %v9210_v54  ;;  %v4850_v54 = vpack.c.bf16 %v4847_v34, %v4845_v51  ;;  %v5493_v34 = vld [vmem:[%s7825_s15 + $0x88] sm:$0xff] }
 0x4e8   : > { %6817 = vmatmul.mubr.msk.bf16.gmra.mrb[16].mxu1 %vm422_vm0, %v9222_v49  ;;  %v5056_v49 = vpack.c.bf16 %v3181_v60, %v3180_v39 }
 0x4e9   : > { %6820 = vmatprep.mubr.msk.bf16.mxu1 %vm422_vm0, %v9226_v2 }
 0x4f0   : > { %6821 = vmatmul.mubr.msk.bf16.gmra.mrb[20].mxu1 %vm422_vm0, %v9238_v47  ;;  %v5477_v47 = vld [vmem:[%s7825_s15 + $0x8] sm:$0xff] }
 0x4f1   : > { %6824 = vmatprep.mubr.msk.bf16.mxu1 %vm422_vm0, %v9242_v33 }
 0x4f8   : > { %6825 = vmatmul.mubr.msk.bf16.gmra.mrb[24].mxu1 %vm422_vm0, %v9251_v36  ;;  %v5482_v36 = vld [vmem:[%s7825_s15 + $0x30] sm:$0xff] }
 0x4f9   : > { %6828 = vmatprep.mubr.msk.bf16.mxu1 %vm422_vm0, %v9330_v45  ;;  %v5487_v45 = vld [vmem:[%s7825_s15 + $0x58] sm:$0xff] }
 0x500   : > { %6829 = vmatmul.mubr.msk.bf16.gmra.mrb[28].mxu1 %vm422_vm0, %v4850_v54 }
 0x501   : > { %6834 = vmatprep.mubr.msk.bf16.mxu1 %vm422_vm0, %v9803_v0  ;;  %v5485_v0 = vld [vmem:[%s7825_s15 + $0x48] sm:$0xff] }
 0x508   : > { %6835 = vmatmul.mubr.msk.bf16.vlgmr.msra.gmra.mrb[0].mxu1 %vm422_vm0, %v9804_v1 }
 0x509   : > { %6867 = vmatpush3.bf16.msra.mxu1 %v7438_v58  ;;  %6838 = vmatprep.mubr.msk.bf16.mxu1 %vm422_vm0, %v9805_v57 }
 0x510   : > { %6839 = vmatmul.mubr.msk.bf16.gmra.mrb[4].mxu1 %vm422_vm0, %v9806_v10 }
 0x511   : > { %6842 = vmatprep.mubr.msk.bf16.mxu1 %vm422_vm0, %v9807_v37 }
 0x518   : > { %6843 = vmatmul.mubr.msk.bf16.gmra.mrb[8].mxu1 %vm422_vm0, %v9808_v17 }
 0x519   : > { %6846 = vmatprep.mubr.msk.bf16.mxu1 %vm422_vm0, %v9809_v14  ;;  %v5490_v14 = vld [vmem:[%s7825_s15 + $0x70] sm:$0xff] }
 0x520   : > { %6847 = vmatmul.mubr.msk.bf16.gmra.mrb[12].mxu1 %vm422_vm0, %v9810_v6  ;;  %v5488_v6 = vld [vmem:[%s7825_s15 + $0x60] sm:$0xff] }
 0x521   : > { %6850 = vmatprep.mubr.msk.bf16.mxu1 %vm422_vm0, %v9811_v63 }
 0x528   : > { %6851 = vmatmul.mubr.msk.bf16.gmra.mrb[16].mxu1 %vm422_vm0, %v9812_v12  ;;  %v5491_v12 = vld [vmem:[%s7825_s15 + $0x78] sm:$0xff] }
 0x529   : > { %6854 = vmatprep.mubr.msk.bf16.mxu1 %vm422_vm0, %v9813_v50 }
 0x530   : > { %6855 = vmatmul.mubr.msk.bf16.gmra.mrb[20].mxu1 %vm422_vm0, %v9814_v7 }
 0x531   : > { %6858 = vmatprep.mubr.msk.bf16.mxu1 %vm422_vm0, %v9815_v55  ;;  %v5489_v55 = vld [vmem:[%s7825_s15 + $0x68] sm:$0xff] }
 0x538   : > { %6859 = vmatmul.mubr.msk.bf16.gmra.mrb[24].mxu1 %vm422_vm0, %v9816_v59 }
 0x539   : > { %6862 = vmatprep.mubr.msk.bf16.mxu1 %vm422_vm0, %v9817_v38 }
 0x540   : > { %6863 = vmatmul.mubr.msk.bf16.gmra.mrb[28].mxu1 %vm422_vm0, %v5056_v49 }
 0x541   : > { %6868 = vmatprep.mubr.msk.bf16.mxu1 %vm422_vm0, %v8857_v22  ;;  %v5263_v22 = vrot.slane %v3180_v39, 1  ;;  %v5494_v39 = vld [vmem:[%s7825_s15 + $0x90] sm:$0xff] }
 0x548   : > { %6869 = vmatmul.mubr.msk.bf16.vlgmr.msra.gmra.mrb[0].mxu1 %vm422_vm0, %v8893_v41  ;;  %v5264_v41 = vrot.slane %v3181_v60, 1  ;;  %v5492_v60 = vld [vmem:[%s7825_s15 + $0x80] sm:$0xff] }
 0x549   : > { %6872 = vmatprep.mubr.msk.bf16.mxu1 %vm422_vm0, %v8901_v40 }
 0x550   : > { %6873 = vmatmul.mubr.msk.bf16.gmra.mrb[4].mxu1 %vm422_vm0, %v8938_v18  ;;  %v5265_v18 = vsel %vm1245_vm2, %v5263_v22, %v5264_v41 }
 0x551   : > { %6876 = vmatprep.mubr.msk.bf16.mxu1 %vm422_vm0, %v9797_v20  ;;  %v5483_v20 = vld [vmem:[%s7825_s15 + $0x38] sm:$0xff] }
 0x558   : > { %6877 = vmatmul.mubr.msk.bf16.gmra.mrb[8].mxu1 %vm422_vm0, %v9798_v48 }
 0x559   : > { %6880 = vmatprep.mubr.msk.bf16.mxu1 %vm422_vm0, %v9799_v26 }
 0x560   : > { %6881 = vmatmul.mubr.msk.bf16.gmra.mrb[12].mxu1 %vm422_vm0, %v9070_v32  ;;  %v3182_v32 = vld [vmem:[#allocation3 + $0x238] sm:$0x1] }
 0x561   : > { %6884 = vmatprep.mubr.msk.bf16.mxu1 %vm422_vm0, %v9076_v43  ;;  %v5266_v40 = vrot.slane %v3182_v32, 1 }
 0x568   : > { %6885 = vmatmul.mubr.msk.bf16.gmra.mrb[16].mxu1 %vm422_vm0, %v9080_v52  ;;  %v5267_v52 = vsel %vm1245_vm2, %v5264_v41, %v5266_v40  ;;  %v5498_v40 = vld [vmem:[%s7825_s15 + $0xb0] sm:$0xff] }
 0x569   : > { %6888 = vmatprep.mubr.msk.bf16.mxu1 %vm422_vm0, %v9087_v16  ;;  %v5270_v43 = vpack.c.bf16 %v5267_v52, %v5265_v18  ;;  %v5478_v16 = vld [vmem:[%s7825_s15 + $0x10] sm:$0xff]  ;;  %v5496_v18 = vld [vmem:[%s7825_s15 + $0xa0] sm:$0xff] }
 0x570   : > { %6889 = vmatmul.mubr.msk.bf16.gmra.mrb[20].mxu1 %vm422_vm0, %v9092_v30  ;;  %v5476_v30 = vld [vmem:[%s7825_s15] sm:$0xff] }
 0x571   : > { %6892 = vmatprep.mubr.msk.bf16.mxu1 %vm422_vm0, %v9094_v5 }
 0x578   : > { %6893 = vmatmul.mubr.msk.bf16.gmra.mrb[24].mxu1 %vm422_vm0, %v9125_v25 }
 0x579   : > { %6896 = vmatprep.mubr.msk.bf16.mxu1 %vm422_vm0, %v9130_v15  ;;  %v5479_v15 = vld [vmem:[%s7825_s15 + $0x18] sm:$0xff] }
 0x580   : > { %6897 = vmatmul.mubr.msk.bf16.gmra.mrb[28].mxu1 %vm422_vm0, %v5270_v43  ;;  %v5499_v43 = vld [vmem:[%s7825_s15 + $0xb8] sm:$0xff] }
 0x61b   : > { %v6870_v5 = vpop.f32.mrb[0].mxu1 }
 0x61c   : > { %v5510_v25 = vadd.f32 %v6870_v5, %v5478_v16  ;;  %v5317_v2 = vpop.f32.mrb[1].mxu1  ;;  %v5497_v5 = vld [vmem:[%s7825_s15 + $0xa8] sm:$0xff] }
 0x61d   : > { %v5508_v33 = vadd.f32 %v5476_v30, %v5317_v2  ;;  %v6871_v21 = vpop.f32.mrb[2].mxu1 }
 0x61e   : > { %5542 = vst.msk [vmem:[%s9511_s16 + $0x10] sm:$0xff] %vm422_vm0, %v5510_v25  ;;  %v5511_v46 = vadd.f32 %v6871_v21, %v5479_v15  ;;  %v5320_v31 = vpop.f32.mrb[3].mxu1  ;;  %v5502_v21 = vld [vmem:[%s7825_s15 + $0xd0] sm:$0xff] }
 0x61f   : > { %5540 = vst.msk [vmem:[%s9511_s16] sm:$0xff] %vm422_vm0, %v5508_v33  ;;  %v5509_v23 = vadd.f32 %v5477_v47, %v5320_v31 }
 0x620   : > { %5543 = vst.msk [vmem:[%s9511_s16 + $0x18] sm:$0xff] %vm422_vm0, %v5511_v46  ;;  %v5500_v46 = vld [vmem:[%s7825_s15 + $0xc0] sm:$0xff] }
 0x621   : > { %5541 = vst.msk [vmem:[%s9511_s16 + $0x8] sm:$0xff] %vm422_vm0, %v5509_v23  ;;  %v5503_v23 = vld [vmem:[%s7825_s15 + $0xd8] sm:$0xff] }
 0x623   : > { %v6874_v24 = vpop.f32.mrb[4].mxu1 }
 0x624   : > { %v5514_v48 = vadd.f32 %v6874_v24, %v5482_v36  ;;  %v5333_v26 = vpop.f32.mrb[5].mxu1  ;;  %v5501_v24 = vld [vmem:[%s7825_s15 + $0xc8] sm:$0xff] }
 0x625   : > { %v5512_v11 = vadd.f32 %v5480_v29, %v5333_v26  ;;  %v6875_v4 = vpop.f32.mrb[6].mxu1 }
 0x626   : > { %5546 = vst.msk [vmem:[%s9511_s16 + $0x30] sm:$0xff] %vm422_vm0, %v5514_v48  ;;  %v5515_v8 = vadd.f32 %v6875_v4, %v5483_v20  ;;  %v5336_v27 = vpop.f32.mrb[7].mxu1  ;;  %v5506_v4 = vld [vmem:[%s7825_s15 + $0xf0] sm:$0xff] }
 0x627   : > { %5544 = vst.msk [vmem:[%s9511_s16 + $0x20] sm:$0xff] %vm422_vm0, %v5512_v11  ;;  %v5513_v53 = vadd.f32 %v5481_v56, %v5336_v27 }
 0x628   : > { %5547 = vst.msk [vmem:[%s9511_s16 + $0x38] sm:$0xff] %vm422_vm0, %v5515_v8  ;;  %v5504_v8 = vld [vmem:[%s7825_s15 + $0xe0] sm:$0xff] }
 0x629   : > { %5545 = vst.msk [vmem:[%s9511_s16 + $0x28] sm:$0xff] %vm422_vm0, %v5513_v53  ;;  %v5507_v53 = vld [vmem:[%s7825_s15 + $0xf8] sm:$0xff] }
 0x62b   : > { %v6878_v3 = vpop.f32.mrb[8].mxu1 }
 0x62c   : > { %v5518_v42 = vadd.f32 %v6878_v3, %v5486_v44  ;;  %v5349_v61 = vpop.f32.mrb[9].mxu1  ;;  %v5505_v3 = vld [vmem:[%s7825_s15 + $0xe8] sm:$0xff] }
 0x62d   : > { %v5516_v1 = vadd.f32 %v5484_v19, %v5349_v61  ;;  %v6879_v57 = vpop.f32.mrb[10].mxu1 }
 0x62e   : > { %5550 = vst.msk [vmem:[%s9511_s16 + $0x50] sm:$0xff] %vm422_vm0, %v5518_v42  ;;  %v5519_v10 = vadd.f32 %v6879_v57, %v5487_v45  ;;  %v5352_v37 = vpop.f32.mrb[11].mxu1 }
 0x62f   : > { %5548 = vst.msk [vmem:[%s9511_s16 + $0x40] sm:$0xff] %vm422_vm0, %v5516_v1  ;;  %v5517_v17 = vadd.f32 %v5485_v0, %v5352_v37 }
 0x630   : > { %5551 = vst.msk [vmem:[%s9511_s16 + $0x58] sm:$0xff] %vm422_vm0, %v5519_v10 }
 0x631   : > { %5549 = vst.msk [vmem:[%s9511_s16 + $0x48] sm:$0xff] %vm422_vm0, %v5517_v17 }
 0x633   : > { %v6882_v63 = vpop.f32.mrb[12].mxu1 }
 0x634   : > { %v5522_v50 = vadd.f32 %v6882_v63, %v5490_v14  ;;  %v5365_v7 = vpop.f32.mrb[13].mxu1 }
 0x635   : > { %v5520_v59 = vadd.f32 %v5488_v6, %v5365_v7  ;;  %v6883_v38 = vpop.f32.mrb[14].mxu1 }
 0x636   : > { %5554 = vst.msk [vmem:[%s9511_s16 + $0x70] sm:$0xff] %vm422_vm0, %v5522_v50  ;;  %v5523_v28 = vadd.f32 %v6883_v38, %v5491_v12  ;;  %v5368_v58 = vpop.f32.mrb[15].mxu1 }
 0x637   : > { %5552 = vst.msk [vmem:[%s9511_s16 + $0x60] sm:$0xff] %vm422_vm0, %v5520_v59  ;;  %v5521_v35 = vadd.f32 %v5489_v55, %v5368_v58 }
 0x638   : > { %5555 = vst.msk [vmem:[%s9511_s16 + $0x78] sm:$0xff] %vm422_vm0, %v5523_v28 }
 0x639   : > { %5553 = vst.msk [vmem:[%s9511_s16 + $0x68] sm:$0xff] %vm422_vm0, %v5521_v35 }
 0x63b   : > { %v6886_v9 = vpop.f32.mrb[16].mxu1 }
 0x63c   : > { %v5526_v13 = vadd.f32 %v6886_v9, %v5494_v39  ;;  %v5381_v51 = vpop.f32.mrb[17].mxu1 }
 0x63d   : > { %v5524_v54 = vadd.f32 %v5492_v60, %v5381_v51  ;;  %v6887_v49 = vpop.f32.mrb[18].mxu1 }
 0x63e   : > { %5558 = vst.msk [vmem:[%s9511_s16 + $0x90] sm:$0xff] %vm422_vm0, %v5526_v13  ;;  %v5527_v32 = vadd.f32 %v6887_v49, %v5495_v62  ;;  %v5384_v22 = vpop.f32.mrb[19].mxu1 }
 0x63f   : > { %5556 = vst.msk [vmem:[%s9511_s16 + $0x80] sm:$0xff] %vm422_vm0, %v5524_v54  ;;  %v5525_v41 = vadd.f32 %v5493_v34, %v5384_v22 }
 0x640   : > { %5559 = vst.msk [vmem:[%s9511_s16 + $0x98] sm:$0xff] %vm422_vm0, %v5527_v32 }
 0x641   : > { %5557 = vst.msk [vmem:[%s9511_s16 + $0x88] sm:$0xff] %vm422_vm0, %v5525_v41 }
 0x643   : > { %v6890_v52 = vpop.f32.mrb[20].mxu1 }
 0x644   : > { %v5530_v16 = vadd.f32 %v6890_v52, %v5498_v40  ;;  %v5397_v30 = vpop.f32.mrb[21].mxu1 }
 0x645   : > { %v5528_v15 = vadd.f32 %v5496_v18, %v5397_v30  ;;  %v6891_v25 = vpop.f32.mrb[22].mxu1 }
 0x646   : > { %5562 = vst.msk [vmem:[%s9511_s16 + $0xb0] sm:$0xff] %vm422_vm0, %v5530_v16  ;;  %v5531_v2 = vadd.f32 %v6891_v25, %v5499_v43  ;;  %v5400_v47 = vpop.f32.mrb[23].mxu1 }
 0x647   : > { %5560 = vst.msk [vmem:[%s9511_s16 + $0xa0] sm:$0xff] %vm422_vm0, %v5528_v15  ;;  %v5529_v33 = vadd.f32 %v5497_v5, %v5400_v47 }
 0x648   : > { %5563 = vst.msk [vmem:[%s9511_s16 + $0xb8] sm:$0xff] %vm422_vm0, %v5531_v2 }
 0x649   : > { %5561 = vst.msk [vmem:[%s9511_s16 + $0xa8] sm:$0xff] %vm422_vm0, %v5529_v33 }
 0x64b   : > { %v6894_v31 = vpop.f32.mrb[24].mxu1 }
 0x64c   : > { %v5534_v36 = vadd.f32 %v6894_v31, %v5502_v21  ;;  %v5413_v29 = vpop.f32.mrb[25].mxu1 }
 0x64d   : > { %v5532_v20 = vadd.f32 %v5500_v46, %v5413_v29  ;;  %v6895_v48 = vpop.f32.mrb[26].mxu1 }
 0x64e   : > { %5566 = vst.msk [vmem:[%s9511_s16 + $0xd0] sm:$0xff] %vm422_vm0, %v5534_v36  ;;  %v5535_v26 = vadd.f32 %v6895_v48, %v5503_v23  ;;  %v5416_v56 = vpop.f32.mrb[27].mxu1 }
 0x64f   : > { %5564 = vst.msk [vmem:[%s9511_s16 + $0xc0] sm:$0xff] %vm422_vm0, %v5532_v20  ;;  %v5533_v11 = vadd.f32 %v5501_v24, %v5416_v56 }
 0x650   : > { %5567 = vst.msk [vmem:[%s9511_s16 + $0xd8] sm:$0xff] %vm422_vm0, %v5535_v26 }
 0x651   : > { %5565 = vst.msk [vmem:[%s9511_s16 + $0xc8] sm:$0xff] %vm422_vm0, %v5533_v11 }
 0x653   : > { %v6898_v27 = vpop.f32.mrb[28].mxu1 }
 0x654   : > { %v5538_v44 = vadd.f32 %v6898_v27, %v5506_v4  ;;  %v5429_v19 = vpop.f32.mrb[29].mxu1 }
 0x655   : > { %v5536_v45 = vadd.f32 %v5504_v8, %v5429_v19  ;;  %v6899_v42 = vpop.f32.mrb[30].mxu1 }
 0x656   : > { %5570 = vst.msk [vmem:[%s9511_s16 + $0xf0] sm:$0xff] %vm422_vm0, %v5538_v44  ;;  %v5539_v61 = vadd.f32 %v6899_v42, %v5507_v53  ;;  %v5432_v0 = vpop.f32.mrb[31].mxu1 }
 0x657   : > { %5568 = vst.msk [vmem:[%s9511_s16 + $0xe0] sm:$0xff] %vm422_vm0, %v5536_v45  ;;  %v5537_v1 = vadd.f32 %v5505_v3, %v5432_v0 }
 0x658   : > { %5571 = vst.msk [vmem:[%s9511_s16 + $0xf8] sm:$0xff] %vm422_vm0, %v5539_v61 }
 0x659   : > { %5569 = vst.msk [vmem:[%s9511_s16 + $0xe8] sm:$0xff] %vm422_vm0, %v5537_v1 }
 0x65a PF: > { %s17_s24 = sadd.s32 1, %s7445_s24  }
 0x65b   : > { %p14_p4 = scmp.ge.s32.totalorder %s17_s24, 4  }
 0x65d   :  { %16 = sbr.rel (!%p14_p4) target bundleno = 1 (0x1), region = 96 }

</bundles_post_ra>
